<compile_context>
chip_gen: v6e
topology: v6e:2x2x1
jax: 0.10.0
libtpu: 0.0.40
codegen_flags: <defaults>
</compile_context>

<pallas_src>
import functools

import jax
import jax.numpy as jnp
from jax.experimental import pallas as pl
from jax.experimental.pallas import tpu as pltpu


# ----------------------------------------------------------------------------
# In-kernel helper: 3x3 conv in folded-W layout + folded BN + ReLU
# ----------------------------------------------------------------------------
def _conv3x3_folded(p_ref, w_ref, scale_ref, bias_ref, *, hout, wf):
    """p_ref:   ((hout+2)*wf, Cf) f32 VMEM scratch; H-padded (wf zero rows at
                top and bottom), W folded into the lane axis, spatial
                flattened as row r = h*wf + j.
       w_ref:   (9, Cf, Cof) folded conv weights, tap t = dh*3 + s_idx where
                s_idx 0,1,2 corresponds to folded-W shift s = -1,0,+1.
       returns: (hout*wf, Cof) float32 after BN scale/bias and ReLU."""
    r = hout * wf
    cf = p_ref.shape[-1]
    cof = w_ref.shape[-1]

    # W-border masks (folded-W column index of every output row).
    jcol = jax.lax.broadcasted_iota(jnp.int32, (r, cf), 0) % wf
    keep_m1 = jcol != 0          # rows where the s = -1 tap is in bounds
    keep_p1 = jcol != wf - 1     # rows where the s = +1 tap is in bounds

    acc = jnp.zeros((r, cof), dtype=jnp.float32)
    for dh in range(3):
        # Sublane-aligned slice: rows [dh*wf, dh*wf + r) of the padded input.
        base = p_ref[dh * wf:dh * wf + r, :]
        for s_idx, s in enumerate((-1, 0, 1)):
            if s == 0:
                tap = base
            else:
                # W shift via a sublane rotate; wrapped / boundary-crossing
                # rows are exactly the W-border rows, which the mask zeroes.
                tap = pltpu.roll(base, shift=(-s) % r, axis=0)
                tap = jnp.where(keep_m1 if s < 0 else keep_p1, tap, 0.0)
            acc = acc + jnp.dot(tap.astype(w_ref.dtype),
                                w_ref[dh * 3 + s_idx],
                                preferred_element_type=jnp.float32)
    y = acc * scale_ref[...] + bias_ref[...]
    return jnp.maximum(y, 0.0)


def _decoder_block_kernel(*refs, hout, wf, has_skip):
    if has_skip:
        (x_ref, skip_ref, w1_ref, s1_ref, b1_ref,
         w2_ref, s2_ref, b2_ref, out_ref, p1_ref, p2_ref) = refs
    else:
        (x_ref, w1_ref, s1_ref, b1_ref,
         w2_ref, s2_ref, b2_ref, out_ref, p1_ref, p2_ref) = refs
        skip_ref = None

    r = hout * wf
    rp = (hout + 2) * wf

    # --- fused nearest-2x upsample + skip concat, built directly in VMEM ----
    x32 = x_ref[0].astype(jnp.float32)                  # (H, wf, Cin) low-res
    # nearest-2x along H: duplicate rows along the (untiled) leading axis.
    x_up = jnp.concatenate([x32[:, None], x32[:, None]], axis=1)
    x_up = x_up.reshape(hout, wf, x32.shape[-1])
    # nearest-2x along W: already folded into the conv1 weights (the two
    # W-phases of the upsampled x are identical, so their folded weight rows
    # were pre-summed on the host) -- nothing to do here.
    if has_skip:
        u = jnp.concatenate([x_up, skip_ref[0].astype(jnp.float32)], axis=-1)
    else:
        u = x_up

    # conv1 input: H-padded, spatially flattened, resident in VMEM.
    cf1 = p1_ref.shape[-1]
    p1_ref[0:wf, :] = jnp.zeros((wf, cf1), jnp.float32)
    p1_ref[wf + r:rp, :] = jnp.zeros((wf, cf1), jnp.float32)
    p1_ref[wf:wf + r, :] = u.reshape(r, cf1)

    # --- conv1 + BN + ReLU ---------------------------------------------------
    y1 = _conv3x3_folded(p1_ref, w1_ref, s1_ref, b1_ref, hout=hout, wf=wf)

    # Intermediate stays in VMEM (no HBM round trip).
    cf2 = p2_ref.shape[-1]
    p2_ref[0:wf, :] = jnp.zeros((wf, cf2), jnp.float32)
    p2_ref[wf + r:rp, :] = jnp.zeros((wf, cf2), jnp.float32)
    p2_ref[wf:wf + r, :] = y1

    # --- conv2 + BN + ReLU ---------------------------------------------------
    y2 = _conv3x3_folded(p2_ref, w2_ref, s2_ref, b2_ref, hout=hout, wf=wf)
    out_ref[0] = y2.astype(out_ref.dtype)


# ----------------------------------------------------------------------------
# Host-side weight / BN folding (pure layout plumbing, done in the wrapper)
# ----------------------------------------------------------------------------
def _fold_conv3x3_weights(w):
    """Fold a (3, 3, C, Co) HWIO conv kernel for the folded-W layout.

    Returns (9, 2*C, 2*Co): tap t = dh*3 + s_idx (s_idx 0,1,2 <-> folded-W
    shift -1,0,+1); input rows ordered p*C + c (p = W-parity of the input
    position); output columns ordered b*Co + co (b = W-parity of the output).
    """
    C, Co = w.shape[2], w.shape[3]
    wf = jnp.zeros((3, 3, 2, C, 2, Co), dtype=w.dtype)  # [dh, s, p, c, b, co]
    # s = -1 : input parity 1 feeds output parity 0 through w[:, dw=0]
    wf = wf.at[:, 0, 1, :, 0, :].set(w[:, 0])
    # s = 0
    wf = wf.at[:, 1, 0, :, 0, :].set(w[:, 1])
    wf = wf.at[:, 1, 1, :, 0, :].set(w[:, 2])
    wf = wf.at[:, 1, 0, :, 1, :].set(w[:, 0])
    wf = wf.at[:, 1, 1, :, 1, :].set(w[:, 1])
    # s = +1 : input parity 0 feeds output parity 1 through w[:, dw=2]
    wf = wf.at[:, 2, 0, :, 1, :].set(w[:, 2])
    return wf.reshape(9, 2 * C, 2 * Co)


def _fold_bn(gamma, beta, running_mean, running_var, eps=1e-5):
    scale = gamma / jnp.sqrt(running_var + eps)
    bias = beta - running_mean * scale
    return scale, bias


def make_decoder_block_params(key, in_channels, skip_channels, out_channels):
    c1_in = in_channels + skip_channels
    k1, k2, k3, k4 = jax.random.split(key, 4)

    def conv_w(k, cin, cout):
        return 0.1 * jax.random.normal(k, (3, 3, cin, cout), dtype=jnp.float32)

    def bn_params(k, c):
        a, b = jax.random.split(k)
        gamma = 1.0 + 0.05 * jax.random.normal(a, (c,), dtype=jnp.float32)
        beta = 0.05 * jax.random.normal(b, (c,), dtype=jnp.float32)
        running_mean = jnp.linspace(-0.1, 0.1, c, dtype=jnp.float32)
        running_var = jnp.linspace(0.9, 1.1, c, dtype=jnp.float32)
        return _fold_bn(gamma, beta, running_mean, running_var)

    params = {"w1": conv_w(k1, c1_in, out_channels),
              "w2": conv_w(k2, out_channels, out_channels)}
    params["scale1"], params["bias1"] = bn_params(k3, out_channels)
    params["scale2"], params["bias2"] = bn_params(k4, out_channels)
    return params


# ----------------------------------------------------------------------------
# Forward pass (matches DecoderBlock.forward, BN folded in inference mode)
# ----------------------------------------------------------------------------
@functools.partial(jax.jit, static_argnames=("compute_dtype",))
def decoder_block_forward(params, x_nchw, skip_nchw=None,
                          compute_dtype=jnp.bfloat16):
    """x_nchw: (N, Cin, H, W); skip_nchw: (N, Cskip, 2H, 2W) or None.
    Returns (N, Cout, 2H, 2W) float32."""
    N, Cin, H, W = x_nchw.shape
    Hout, Wout = 2 * H, 2 * W
    Wf = W                              # folded-W width (= Wout // 2)
    Cout = params["w1"].shape[-1]
    assert Wf % 8 == 0, "folded width (W) must be a multiple of 8 sublanes"

    # NCHW -> NHWC at the module boundary only.
    x = jnp.transpose(x_nchw, (0, 2, 3, 1)).astype(compute_dtype)

    w1, w2 = params["w1"], params["w2"]
    # conv1 x-part: the two W-phases of the nearest-upsampled x are identical,
    # so their folded weight rows are pre-summed (upsample folded into weights).
    w1x = _fold_conv3x3_weights(w1[:, :, :Cin, :])
    w1x = w1x.reshape(9, 2, Cin, 2 * Cout).sum(axis=1)          # (9, Cin, 2Co)
    if skip_nchw is not None:
        Cs = skip_nchw.shape[1]
        assert skip_nchw.shape == (N, Cs, Hout, Wout)
        skip = jnp.transpose(skip_nchw, (0, 2, 3, 1))           # (N,Hout,Wout,Cs)
        # Fold W pairs into lanes: metadata-only reshape (no data movement).
        skip_f = skip.reshape(N, Hout, Wf, 2 * Cs).astype(compute_dtype)
        w1f = jnp.concatenate(
            [w1x, _fold_conv3x3_weights(w1[:, :, Cin:, :])], axis=1)
    else:
        Cs = 0
        skip_f = None
        w1f = w1x
    w2f = _fold_conv3x3_weights(w2)                             # (9, 2Co, 2Co)

    cf1 = Cin + 2 * Cs
    cof = 2 * Cout
    r = Hout * Wf
    rp = (Hout + 2) * Wf

    def dup(v):  # per-channel BN vector -> folded (1, 2*Cout) lane vector
        return jnp.tile(v, 2).reshape(1, cof).astype(jnp.float32)

    s1f, b1f = dup(params["scale1"]), dup(params["bias1"])
    s2f, b2f = dup(params["scale2"]), dup(params["bias2"])

    inputs = [x]
    in_specs = [pl.BlockSpec((1, H, Wf, Cin), lambda n: (n, 0, 0, 0))]
    if skip_f is not None:
        inputs.append(skip_f)
        in_specs.append(
            pl.BlockSpec((1, Hout, Wf, 2 * Cs), lambda n: (n, 0, 0, 0)))
    inputs += [w1f.astype(compute_dtype), s1f, b1f,
               w2f.astype(compute_dtype), s2f, b2f]
    in_specs += [
        pl.BlockSpec((9, cf1, cof), lambda n: (0, 0, 0)),
        pl.BlockSpec((1, cof), lambda n: (0, 0)),
        pl.BlockSpec((1, cof), lambda n: (0, 0)),
        pl.BlockSpec((9, cof, cof), lambda n: (0, 0, 0)),
        pl.BlockSpec((1, cof), lambda n: (0, 0)),
        pl.BlockSpec((1, cof), lambda n: (0, 0)),
    ]

    kernel = functools.partial(_decoder_block_kernel, hout=Hout, wf=Wf,
                               has_skip=skip_f is not None)

    out_folded = pl.pallas_call(
        kernel,
        out_shape=jax.ShapeDtypeStruct((N, r, cof), jnp.float32),
        grid_spec=pltpu.PrefetchScalarGridSpec(
            num_scalar_prefetch=0,
            grid=(N,),
            in_specs=in_specs,
            out_specs=pl.BlockSpec((1, r, cof), lambda n: (n, 0, 0)),
            scratch_shapes=[
                pltpu.VMEM((rp, cf1), jnp.float32),   # conv1 input (H-padded)
                pltpu.VMEM((rp, cof), jnp.float32),   # conv1 out / conv2 input
            ],
        ),
        compiler_params=pltpu.CompilerParams(
            dimension_semantics=("parallel",),
        ),
    )(*inputs)

    # Un-fold W (metadata-only reshapes) and return NCHW like the PyTorch module.
    out = out_folded.reshape(N, Hout, Wf, 2, Cout).reshape(N, Hout, Wout, Cout)
    return jnp.transpose(out, (0, 3, 1, 2))


# ----------------------------------------------------------------------------
# Pure-JAX float32 reference (mirrors the PyTorch module in eval mode)
# ----------------------------------------------------------------------------
def decoder_block_reference(params, x_nchw, skip_nchw=None):
    x = jnp.repeat(jnp.repeat(x_nchw, 2, axis=2), 2, axis=3)
    if skip_nchw is not None:
        x = jnp.concatenate([x, skip_nchw], axis=1)

    def conv_bn_relu(h, w, scale, bias):
        y = jax.lax.conv_general_dilated(
            h, w, window_strides=(1, 1), padding=((1, 1), (1, 1)),
            dimension_numbers=("NCHW", "HWIO", "NCHW"))
        y = y * scale[None, :, None, None] + bias[None, :, None, None]
        return jnp.maximum(y, 0.0)

    x = conv_bn_relu(x, params["w1"], params["scale1"], params["bias1"])
    x = conv_bn_relu(x, params["w2"], params["scale2"], params["bias2"])
    return x


if __name__ == "__main__":
    key = jax.random.PRNGKey(0)
    k_x, k_skip, k_params = jax.random.split(key, 3)

    # Small shapes consistent with the PyTorch module:
    #   x: (N=2, in_channels=4, 8, 8) -> upsampled to 16x16
    #   skip: (2, skip_channels=4, 16, 16) ; output: (2, 8, 16, 16)
    N, Cin, Cskip, Cout = 2, 4, 4, 8
    H, W = 8, 8

    x = jax.random.normal(k_x, (N, Cin, H, W), dtype=jnp.float32)
    skip = jax.random.normal(k_skip, (N, Cskip, 2 * H, 2 * W), dtype=jnp.float32)
    params = make_decoder_block_params(k_params, Cin, Cskip, Cout)

    out = jax.block_until_ready(decoder_block_forward(params, x, skip))
    assert out.shape == (N, Cout, 2 * H, 2 * W), out.shape

    # Sanity-check against the f32 reference (tolerance covers bf16 matmuls).
    ref = jax.block_until_ready(decoder_block_reference(params, x, skip))
    max_err = float(jnp.max(jnp.abs(out - ref)))
    assert max_err < 5e-2, f"kernel mismatch vs reference: max|err|={max_err}"

    print("KERNEL_OK")
</pallas_src>

<mosaic_0001>
module attributes {stable_mosaic.version = 11 : i64} {
  func.func @_decoder_block_kernel(%arg0: i32, %arg1: memref<1x8x8x4xbf16, #tpu.memory_space<vmem>>, %arg2: memref<1x16x8x8xbf16, #tpu.memory_space<vmem>>, %arg3: memref<9x12x16xbf16, #tpu.memory_space<vmem>>, %arg4: memref<1x16xf32, #tpu.memory_space<vmem>>, %arg5: memref<1x16xf32, #tpu.memory_space<vmem>>, %arg6: memref<9x16x16xbf16, #tpu.memory_space<vmem>>, %arg7: memref<1x16xf32, #tpu.memory_space<vmem>>, %arg8: memref<1x16xf32, #tpu.memory_space<vmem>>, %arg9: memref<1x128x16xf32, #tpu.memory_space<vmem>>, %arg10: memref<144x12xf32, #tpu.memory_space<vmem>>, %arg11: memref<144x16xf32, #tpu.memory_space<vmem>>) attributes {dimension_semantics = [#tpu.dimension_semantics<parallel>], iteration_bounds = array<i64: 2>, scalar_prefetch = 0 : i64, scratch_operands = 2 : i64, tpu.core_type = #tpu.core_type<tc>, window_params = [{transform_indices = @transform_0, window_bounds = array<i64: 1, 8, 8, 4>}, {transform_indices = @transform_1, window_bounds = array<i64: 1, 16, 8, 8>}, {pipeline_mode = #tpu.pipeline_mode<synchronous>, transform_indices = @transform_2, window_bounds = array<i64: 9, 12, 16>}, {pipeline_mode = #tpu.pipeline_mode<synchronous>, transform_indices = @transform_3, window_bounds = array<i64: 1, 16>}, {pipeline_mode = #tpu.pipeline_mode<synchronous>, transform_indices = @transform_4, window_bounds = array<i64: 1, 16>}, {pipeline_mode = #tpu.pipeline_mode<synchronous>, transform_indices = @transform_5, window_bounds = array<i64: 9, 16, 16>}, {pipeline_mode = #tpu.pipeline_mode<synchronous>, transform_indices = @transform_6, window_bounds = array<i64: 1, 16>}, {pipeline_mode = #tpu.pipeline_mode<synchronous>, transform_indices = @transform_7, window_bounds = array<i64: 1, 16>}, {transform_indices = @transform_8, window_bounds = array<i64: 1, 128, 16>}]} {
    %c0 = arith.constant 0 : index
    %c0_0 = arith.constant 0 : index
    %c0_1 = arith.constant 0 : index
    %c0_2 = arith.constant 0 : index
    %0 = vector.load %arg1[%c0, %c0_0, %c0_1, %c0_2] : memref<1x8x8x4xbf16, #tpu.memory_space<vmem>>, vector<1x8x8x4xbf16>
    %1 = vector.shape_cast %0 : vector<1x8x8x4xbf16> to vector<8x8x4xbf16>
    %2 = arith.extf %1 : vector<8x8x4xbf16> to vector<8x8x4xf32>
    %3 = vector.shape_cast %2 : vector<8x8x4xf32> to vector<8x1x8x4xf32>
    %4 = vector.shape_cast %2 : vector<8x8x4xf32> to vector<8x1x8x4xf32>
    %5 = tpu.concatenate %3, %4 in 1 : vector<8x1x8x4xf32>, vector<8x1x8x4xf32> -> vector<8x2x8x4xf32>
    %6 = vector.shape_cast %5 : vector<8x2x8x4xf32> to vector<16x8x4xf32>
    %c0_3 = arith.constant 0 : index
    %c0_4 = arith.constant 0 : index
    %c0_5 = arith.constant 0 : index
    %c0_6 = arith.constant 0 : index
    %7 = vector.load %arg2[%c0_3, %c0_4, %c0_5, %c0_6] : memref<1x16x8x8xbf16, #tpu.memory_space<vmem>>, vector<1x16x8x8xbf16>
    %8 = vector.shape_cast %7 : vector<1x16x8x8xbf16> to vector<16x8x8xbf16>
    %9 = arith.extf %8 : vector<16x8x8xbf16> to vector<16x8x8xf32>
    %10 = tpu.concatenate %6, %9 in 2 : vector<16x8x4xf32>, vector<16x8x8xf32> -> vector<16x8x12xf32>
    %cst = arith.constant 0.000000e+00 : f32
    %11 = vector.broadcast %cst : f32 to vector<8x12xf32>
    %c0_7 = arith.constant 0 : index
    %c0_8 = arith.constant 0 : index
    %12 = vector.load %arg10[%c0_7, %c0_8] : memref<144x12xf32, #tpu.memory_space<vmem>>, vector<8x12xf32>
    tpu.vector_store %arg10[%c0_7, %c0_8], %11 {strides = array<i32>} : memref<144x12xf32, #tpu.memory_space<vmem>>, vector<8x12xf32>,
    %cst_9 = arith.constant 0.000000e+00 : f32
    %13 = vector.broadcast %cst_9 : f32 to vector<8x12xf32>
    %c136 = arith.constant 136 : index
    %c0_10 = arith.constant 0 : index
    %14 = vector.load %arg10[%c136, %c0_10] : memref<144x12xf32, #tpu.memory_space<vmem>>, vector<8x12xf32>
    tpu.vector_store %arg10[%c136, %c0_10], %13 {strides = array<i32>} : memref<144x12xf32, #tpu.memory_space<vmem>>, vector<8x12xf32>,
    %15 = vector.shape_cast %10 : vector<16x8x12xf32> to vector<128x12xf32>
    %c8 = arith.constant 8 : index
    %c0_11 = arith.constant 0 : index
    %16 = vector.load %arg10[%c8, %c0_11] : memref<144x12xf32, #tpu.memory_space<vmem>>, vector<128x12xf32>
    tpu.vector_store %arg10[%c8, %c0_11], %15 {strides = array<i32>} : memref<144x12xf32, #tpu.memory_space<vmem>>, vector<128x12xf32>,
    %17 = tpu.iota {dimensions = array<i32: 0>} : vector<128x12xi32>
    %c8_i32 = arith.constant 8 : i32
    %c0_i32 = arith.constant 0 : i32
    %18 = arith.cmpi eq, %c8_i32, %c0_i32 : i32
    %c1_i32 = arith.constant 1 : i32
    %19 = arith.select %18, %c1_i32, %c8_i32 : i32
    %20 = vector.broadcast %19 : i32 to vector<128x12xi32>
    %21 = arith.remsi %17, %20 : vector<128x12xi32>
    %c0_i32_12 = arith.constant 0 : i32
    %22 = vector.broadcast %c0_i32_12 : i32 to vector<128x12xi32>
    %23 = arith.cmpi ne, %21, %22 : vector<128x12xi32>
    %c0_i32_13 = arith.constant 0 : i32
    %24 = vector.broadcast %c0_i32_13 : i32 to vector<128x12xi32>
    %25 = arith.cmpi slt, %21, %24 : vector<128x12xi32>
    %c0_i32_14 = arith.constant 0 : i32
    %26 = arith.cmpi slt, %19, %c0_i32_14 : i32
    %27 = vector.broadcast %26 : i1 to vector<128x12xi1>
    %28 = vector.broadcast %27 : vector<128x12xi1> to vector<128x12xi1>
    %29 = arith.xori %25, %28 : vector<128x12xi1>
    %30 = arith.andi %29, %23 : vector<128x12xi1>
    %31 = vector.broadcast %19 : i32 to vector<128x12xi32>
    %32 = arith.addi %21, %31 : vector<128x12xi32>
    %33 = arith.select %30, %32, %21 : vector<128x12xi1>, vector<128x12xi32>
    %c0_i32_15 = arith.constant 0 : i32
    %34 = vector.broadcast %c0_i32_15 : i32 to vector<128x12xi32>
    %35 = arith.cmpi ne, %33, %34 : vector<128x12xi32>
    %c7_i32 = arith.constant 7 : i32
    %36 = vector.broadcast %c7_i32 : i32 to vector<128x12xi32>
    %37 = arith.cmpi ne, %33, %36 : vector<128x12xi32>
    %cst_16 = arith.constant 0.000000e+00 : f32
    %38 = vector.broadcast %cst_16 : f32 to vector<128x16xf32>
    %c0_17 = arith.constant 0 : index
    %c0_18 = arith.constant 0 : index
    %39 = vector.load %arg10[%c0_17, %c0_18] : memref<144x12xf32, #tpu.memory_space<vmem>>, vector<128x12xf32>
    %c1_i32_19 = arith.constant 1 : i32
    %40 = tpu.dynamic_rotate %39 by %c1_i32_19 dim 0 : vector<128x12xf32>, i32 -> vector<128x12xf32>
    %cst_20 = arith.constant 0.000000e+00 : f32
    %41 = vector.broadcast %cst_20 : f32 to vector<128x12xf32>
    %42 = arith.select %35, %40, %41 : vector<128x12xi1>, vector<128x12xf32>
    %43 = arith.truncf %42 : vector<128x12xf32> to vector<128x12xbf16>
    %c0_21 = arith.constant 0 : index
    %c0_22 = arith.constant 0 : index
    %c0_23 = arith.constant 0 : index
    %44 = vector.load %arg3[%c0_21, %c0_22, %c0_23] : memref<9x12x16xbf16, #tpu.memory_space<vmem>>, vector<1x12x16xbf16>
    %45 = vector.shape_cast %44 : vector<1x12x16xbf16> to vector<12x16xbf16>
    %cst_24 = arith.constant dense<0.000000e+00> : vector<128x16xf32>
    %46 = tpu.matmul %43, %45, %cst_24 {dimension_numbers = #tpu.dot_dimension_numbers<[1], [0], [0], [1], [0, 0, 1, 1], [], []>} : vector<128x12xbf16>, vector<12x16xbf16>, vector<128x16xf32> -> vector<128x16xf32>
    %47 = arith.addf %38, %46 : vector<128x16xf32>
    %48 = arith.truncf %39 : vector<128x12xf32> to vector<128x12xbf16>
    %c1 = arith.constant 1 : index
    %c0_25 = arith.constant 0 : index
    %c0_26 = arith.constant 0 : index
    %49 = vector.load %arg3[%c1, %c0_25, %c0_26] : memref<9x12x16xbf16, #tpu.memory_space<vmem>>, vector<1x12x16xbf16>
    %50 = vector.shape_cast %49 : vector<1x12x16xbf16> to vector<12x16xbf16>
    %cst_27 = arith.constant dense<0.000000e+00> : vector<128x16xf32>
    %51 = tpu.matmul %48, %50, %cst_27 {dimension_numbers = #tpu.dot_dimension_numbers<[1], [0], [0], [1], [0, 0, 1, 1], [], []>} : vector<128x12xbf16>, vector<12x16xbf16>, vector<128x16xf32> -> vector<128x16xf32>
    %52 = arith.addf %47, %51 : vector<128x16xf32>
    %c127_i32 = arith.constant 127 : i32
    %53 = tpu.dynamic_rotate %39 by %c127_i32 dim 0 : vector<128x12xf32>, i32 -> vector<128x12xf32>
    %cst_28 = arith.constant 0.000000e+00 : f32
    %54 = vector.broadcast %cst_28 : f32 to vector<128x12xf32>
    %55 = arith.select %37, %53, %54 : vector<128x12xi1>, vector<128x12xf32>
    %56 = arith.truncf %55 : vector<128x12xf32> to vector<128x12xbf16>
    %c2 = arith.constant 2 : index
    %c0_29 = arith.constant 0 : index
    %c0_30 = arith.constant 0 : index
    %57 = vector.load %arg3[%c2, %c0_29, %c0_30] : memref<9x12x16xbf16, #tpu.memory_space<vmem>>, vector<1x12x16xbf16>
    %58 = vector.shape_cast %57 : vector<1x12x16xbf16> to vector<12x16xbf16>
    %cst_31 = arith.constant dense<0.000000e+00> : vector<128x16xf32>
    %59 = tpu.matmul %56, %58, %cst_31 {dimension_numbers = #tpu.dot_dimension_numbers<[1], [0], [0], [1], [0, 0, 1, 1], [], []>} : vector<128x12xbf16>, vector<12x16xbf16>, vector<128x16xf32> -> vector<128x16xf32>
    %60 = arith.addf %52, %59 : vector<128x16xf32>
    %c8_32 = arith.constant 8 : index
    %c0_33 = arith.constant 0 : index
    %61 = vector.load %arg10[%c8_32, %c0_33] : memref<144x12xf32, #tpu.memory_space<vmem>>, vector<128x12xf32>
    %c1_i32_34 = arith.constant 1 : i32
    %62 = tpu.dynamic_rotate %61 by %c1_i32_34 dim 0 : vector<128x12xf32>, i32 -> vector<128x12xf32>
    %cst_35 = arith.constant 0.000000e+00 : f32
    %63 = vector.broadcast %cst_35 : f32 to vector<128x12xf32>
    %64 = arith.select %35, %62, %63 : vector<128x12xi1>, vector<128x12xf32>
    %65 = arith.truncf %64 : vector<128x12xf32> to vector<128x12xbf16>
    %c3 = arith.constant 3 : index
    %c0_36 = arith.constant 0 : index
    %c0_37 = arith.constant 0 : index
    %66 = vector.load %arg3[%c3, %c0_36, %c0_37] : memref<9x12x16xbf16, #tpu.memory_space<vmem>>, vector<1x12x16xbf16>
    %67 = vector.shape_cast %66 : vector<1x12x16xbf16> to vector<12x16xbf16>
    %cst_38 = arith.constant dense<0.000000e+00> : vector<128x16xf32>
    %68 = tpu.matmul %65, %67, %cst_38 {dimension_numbers = #tpu.dot_dimension_numbers<[1], [0], [0], [1], [0, 0, 1, 1], [], []>} : vector<128x12xbf16>, vector<12x16xbf16>, vector<128x16xf32> -> vector<128x16xf32>
    %69 = arith.addf %60, %68 : vector<128x16xf32>
    %70 = arith.truncf %61 : vector<128x12xf32> to vector<128x12xbf16>
    %c4 = arith.constant 4 : index
    %c0_39 = arith.constant 0 : index
    %c0_40 = arith.constant 0 : index
    %71 = vector.load %arg3[%c4, %c0_39, %c0_40] : memref<9x12x16xbf16, #tpu.memory_space<vmem>>, vector<1x12x16xbf16>
    %72 = vector.shape_cast %71 : vector<1x12x16xbf16> to vector<12x16xbf16>
    %cst_41 = arith.constant dense<0.000000e+00> : vector<128x16xf32>
    %73 = tpu.matmul %70, %72, %cst_41 {dimension_numbers = #tpu.dot_dimension_numbers<[1], [0], [0], [1], [0, 0, 1, 1], [], []>} : vector<128x12xbf16>, vector<12x16xbf16>, vector<128x16xf32> -> vector<128x16xf32>
    %74 = arith.addf %69, %73 : vector<128x16xf32>
    %c127_i32_42 = arith.constant 127 : i32
    %75 = tpu.dynamic_rotate %61 by %c127_i32_42 dim 0 : vector<128x12xf32>, i32 -> vector<128x12xf32>
    %cst_43 = arith.constant 0.000000e+00 : f32
    %76 = vector.broadcast %cst_43 : f32 to vector<128x12xf32>
    %77 = arith.select %37, %75, %76 : vector<128x12xi1>, vector<128x12xf32>
    %78 = arith.truncf %77 : vector<128x12xf32> to vector<128x12xbf16>
    %c5 = arith.constant 5 : index
    %c0_44 = arith.constant 0 : index
    %c0_45 = arith.constant 0 : index
    %79 = vector.load %arg3[%c5, %c0_44, %c0_45] : memref<9x12x16xbf16, #tpu.memory_space<vmem>>, vector<1x12x16xbf16>
    %80 = vector.shape_cast %79 : vector<1x12x16xbf16> to vector<12x16xbf16>
    %cst_46 = arith.constant dense<0.000000e+00> : vector<128x16xf32>
    %81 = tpu.matmul %78, %80, %cst_46 {dimension_numbers = #tpu.dot_dimension_numbers<[1], [0], [0], [1], [0, 0, 1, 1], [], []>} : vector<128x12xbf16>, vector<12x16xbf16>, vector<128x16xf32> -> vector<128x16xf32>
    %82 = arith.addf %74, %81 : vector<128x16xf32>
    %c16 = arith.constant 16 : index
    %c0_47 = arith.constant 0 : index
    %83 = vector.load %arg10[%c16, %c0_47] : memref<144x12xf32, #tpu.memory_space<vmem>>, vector<128x12xf32>
    %c1_i32_48 = arith.constant 1 : i32
    %84 = tpu.dynamic_rotate %83 by %c1_i32_48 dim 0 : vector<128x12xf32>, i32 -> vector<128x12xf32>
    %cst_49 = arith.constant 0.000000e+00 : f32
    %85 = vector.broadcast %cst_49 : f32 to vector<128x12xf32>
    %86 = arith.select %35, %84, %85 : vector<128x12xi1>, vector<128x12xf32>
    %87 = arith.truncf %86 : vector<128x12xf32> to vector<128x12xbf16>
    %c6 = arith.constant 6 : index
    %c0_50 = arith.constant 0 : index
    %c0_51 = arith.constant 0 : index
    %88 = vector.load %arg3[%c6, %c0_50, %c0_51] : memref<9x12x16xbf16, #tpu.memory_space<vmem>>, vector<1x12x16xbf16>
    %89 = vector.shape_cast %88 : vector<1x12x16xbf16> to vector<12x16xbf16>
    %cst_52 = arith.constant dense<0.000000e+00> : vector<128x16xf32>
    %90 = tpu.matmul %87, %89, %cst_52 {dimension_numbers = #tpu.dot_dimension_numbers<[1], [0], [0], [1], [0, 0, 1, 1], [], []>} : vector<128x12xbf16>, vector<12x16xbf16>, vector<128x16xf32> -> vector<128x16xf32>
    %91 = arith.addf %82, %90 : vector<128x16xf32>
    %92 = arith.truncf %83 : vector<128x12xf32> to vector<128x12xbf16>
    %c7 = arith.constant 7 : index
    %c0_53 = arith.constant 0 : index
    %c0_54 = arith.constant 0 : index
    %93 = vector.load %arg3[%c7, %c0_53, %c0_54] : memref<9x12x16xbf16, #tpu.memory_space<vmem>>, vector<1x12x16xbf16>
    %94 = vector.shape_cast %93 : vector<1x12x16xbf16> to vector<12x16xbf16>
    %cst_55 = arith.constant dense<0.000000e+00> : vector<128x16xf32>
    %95 = tpu.matmul %92, %94, %cst_55 {dimension_numbers = #tpu.dot_dimension_numbers<[1], [0], [0], [1], [0, 0, 1, 1], [], []>} : vector<128x12xbf16>, vector<12x16xbf16>, vector<128x16xf32> -> vector<128x16xf32>
    %96 = arith.addf %91, %95 : vector<128x16xf32>
    %c127_i32_56 = arith.constant 127 : i32
    %97 = tpu.dynamic_rotate %83 by %c127_i32_56 dim 0 : vector<128x12xf32>, i32 -> vector<128x12xf32>
    %cst_57 = arith.constant 0.000000e+00 : f32
    %98 = vector.broadcast %cst_57 : f32 to vector<128x12xf32>
    %99 = arith.select %37, %97, %98 : vector<128x12xi1>, vector<128x12xf32>
    %100 = arith.truncf %99 : vector<128x12xf32> to vector<128x12xbf16>
    %c8_58 = arith.constant 8 : index
    %c0_59 = arith.constant 0 : index
    %c0_60 = arith.constant 0 : index
    %101 = vector.load %arg3[%c8_58, %c0_59, %c0_60] : memref<9x12x16xbf16, #tpu.memory_space<vmem>>, vector<1x12x16xbf16>
    %102 = vector.shape_cast %101 : vector<1x12x16xbf16> to vector<12x16xbf16>
    %cst_61 = arith.constant dense<0.000000e+00> : vector<128x16xf32>
    %103 = tpu.matmul %100, %102, %cst_61 {dimension_numbers = #tpu.dot_dimension_numbers<[1], [0], [0], [1], [0, 0, 1, 1], [], []>} : vector<128x12xbf16>, vector<12x16xbf16>, vector<128x16xf32> -> vector<128x16xf32>
    %104 = arith.addf %96, %103 : vector<128x16xf32>
    %c0_62 = arith.constant 0 : index
    %c0_63 = arith.constant 0 : index
    %105 = vector.load %arg4[%c0_62, %c0_63] : memref<1x16xf32, #tpu.memory_space<vmem>>, vector<1x16xf32>
    %106 = vector.broadcast %105 : vector<1x16xf32> to vector<128x16xf32>
    %107 = arith.mulf %104, %106 : vector<128x16xf32>
    %c0_64 = arith.constant 0 : index
    %c0_65 = arith.constant 0 : index
    %108 = vector.load %arg5[%c0_64, %c0_65] : memref<1x16xf32, #tpu.memory_space<vmem>>, vector<1x16xf32>
    %109 = vector.broadcast %108 : vector<1x16xf32> to vector<128x16xf32>
    %110 = arith.addf %107, %109 : vector<128x16xf32>
    %cst_66 = arith.constant 0.000000e+00 : f32
    %111 = vector.broadcast %cst_66 : f32 to vector<128x16xf32>
    %112 = arith.maximumf %110, %111 : vector<128x16xf32>
    %cst_67 = arith.constant 0.000000e+00 : f32
    %113 = vector.broadcast %cst_67 : f32 to vector<8x16xf32>
    %c0_68 = arith.constant 0 : index
    %c0_69 = arith.constant 0 : index
    %114 = vector.load %arg11[%c0_68, %c0_69] : memref<144x16xf32, #tpu.memory_space<vmem>>, vector<8x16xf32>
    tpu.vector_store %arg11[%c0_68, %c0_69], %113 {strides = array<i32>} : memref<144x16xf32, #tpu.memory_space<vmem>>, vector<8x16xf32>,
    %cst_70 = arith.constant 0.000000e+00 : f32
    %115 = vector.broadcast %cst_70 : f32 to vector<8x16xf32>
    %c136_71 = arith.constant 136 : index
    %c0_72 = arith.constant 0 : index
    %116 = vector.load %arg11[%c136_71, %c0_72] : memref<144x16xf32, #tpu.memory_space<vmem>>, vector<8x16xf32>
    tpu.vector_store %arg11[%c136_71, %c0_72], %115 {strides = array<i32>} : memref<144x16xf32, #tpu.memory_space<vmem>>, vector<8x16xf32>,
    %c8_73 = arith.constant 8 : index
    %c0_74 = arith.constant 0 : index
    %117 = vector.load %arg11[%c8_73, %c0_74] : memref<144x16xf32, #tpu.memory_space<vmem>>, vector<128x16xf32>
    tpu.vector_store %arg11[%c8_73, %c0_74], %112 {strides = array<i32>} : memref<144x16xf32, #tpu.memory_space<vmem>>, vector<128x16xf32>,
    %118 = tpu.iota {dimensions = array<i32: 0>} : vector<128x16xi32>
    %c8_i32_75 = arith.constant 8 : i32
    %c0_i32_76 = arith.constant 0 : i32
    %119 = arith.cmpi eq, %c8_i32_75, %c0_i32_76 : i32
    %c1_i32_77 = arith.constant 1 : i32
    %120 = arith.select %119, %c1_i32_77, %c8_i32_75 : i32
    %121 = vector.broadcast %120 : i32 to vector<128x16xi32>
    %122 = arith.remsi %118, %121 : vector<128x16xi32>
    %c0_i32_78 = arith.constant 0 : i32
    %123 = vector.broadcast %c0_i32_78 : i32 to vector<128x16xi32>
    %124 = arith.cmpi ne, %122, %123 : vector<128x16xi32>
    %c0_i32_79 = arith.constant 0 : i32
    %125 = vector.broadcast %c0_i32_79 : i32 to vector<128x16xi32>
    %126 = arith.cmpi slt, %122, %125 : vector<128x16xi32>
    %c0_i32_80 = arith.constant 0 : i32
    %127 = arith.cmpi slt, %120, %c0_i32_80 : i32
    %128 = vector.broadcast %127 : i1 to vector<128x16xi1>
    %129 = vector.broadcast %128 : vector<128x16xi1> to vector<128x16xi1>
    %130 = arith.xori %126, %129 : vector<128x16xi1>
    %131 = arith.andi %130, %124 : vector<128x16xi1>
    %132 = vector.broadcast %120 : i32 to vector<128x16xi32>
    %133 = arith.addi %122, %132 : vector<128x16xi32>
    %134 = arith.select %131, %133, %122 : vector<128x16xi1>, vector<128x16xi32>
    %c0_i32_81 = arith.constant 0 : i32
    %135 = vector.broadcast %c0_i32_81 : i32 to vector<128x16xi32>
    %136 = arith.cmpi ne, %134, %135 : vector<128x16xi32>
    %c7_i32_82 = arith.constant 7 : i32
    %137 = vector.broadcast %c7_i32_82 : i32 to vector<128x16xi32>
    %138 = arith.cmpi ne, %134, %137 : vector<128x16xi32>
    %cst_83 = arith.constant 0.000000e+00 : f32
    %139 = vector.broadcast %cst_83 : f32 to vector<128x16xf32>
    %c0_84 = arith.constant 0 : index
    %c0_85 = arith.constant 0 : index
    %140 = vector.load %arg11[%c0_84, %c0_85] : memref<144x16xf32, #tpu.memory_space<vmem>>, vector<128x16xf32>
    %c1_i32_86 = arith.constant 1 : i32
    %141 = tpu.dynamic_rotate %140 by %c1_i32_86 dim 0 : vector<128x16xf32>, i32 -> vector<128x16xf32>
    %cst_87 = arith.constant 0.000000e+00 : f32
    %142 = vector.broadcast %cst_87 : f32 to vector<128x16xf32>
    %143 = arith.select %136, %141, %142 : vector<128x16xi1>, vector<128x16xf32>
    %144 = arith.truncf %143 : vector<128x16xf32> to vector<128x16xbf16>
    %c0_88 = arith.constant 0 : index
    %c0_89 = arith.constant 0 : index
    %c0_90 = arith.constant 0 : index
    %145 = vector.load %arg6[%c0_88, %c0_89, %c0_90] : memref<9x16x16xbf16, #tpu.memory_space<vmem>>, vector<1x16x16xbf16>
    %146 = vector.shape_cast %145 : vector<1x16x16xbf16> to vector<16x16xbf16>
    %cst_91 = arith.constant dense<0.000000e+00> : vector<128x16xf32>
    %147 = tpu.matmul %144, %146, %cst_91 {dimension_numbers = #tpu.dot_dimension_numbers<[1], [0], [0], [1], [0, 0, 1, 1], [], []>} : vector<128x16xbf16>, vector<16x16xbf16>, vector<128x16xf32> -> vector<128x16xf32>
    %148 = arith.addf %139, %147 : vector<128x16xf32>
    %149 = arith.truncf %140 : vector<128x16xf32> to vector<128x16xbf16>
    %c1_92 = arith.constant 1 : index
    %c0_93 = arith.constant 0 : index
    %c0_94 = arith.constant 0 : index
    %150 = vector.load %arg6[%c1_92, %c0_93, %c0_94] : memref<9x16x16xbf16, #tpu.memory_space<vmem>>, vector<1x16x16xbf16>
    %151 = vector.shape_cast %150 : vector<1x16x16xbf16> to vector<16x16xbf16>
    %cst_95 = arith.constant dense<0.000000e+00> : vector<128x16xf32>
    %152 = tpu.matmul %149, %151, %cst_95 {dimension_numbers = #tpu.dot_dimension_numbers<[1], [0], [0], [1], [0, 0, 1, 1], [], []>} : vector<128x16xbf16>, vector<16x16xbf16>, vector<128x16xf32> -> vector<128x16xf32>
    %153 = arith.addf %148, %152 : vector<128x16xf32>
    %c127_i32_96 = arith.constant 127 : i32
    %154 = tpu.dynamic_rotate %140 by %c127_i32_96 dim 0 : vector<128x16xf32>, i32 -> vector<128x16xf32>
    %cst_97 = arith.constant 0.000000e+00 : f32
    %155 = vector.broadcast %cst_97 : f32 to vector<128x16xf32>
    %156 = arith.select %138, %154, %155 : vector<128x16xi1>, vector<128x16xf32>
    %157 = arith.truncf %156 : vector<128x16xf32> to vector<128x16xbf16>
    %c2_98 = arith.constant 2 : index
    %c0_99 = arith.constant 0 : index
    %c0_100 = arith.constant 0 : index
    %158 = vector.load %arg6[%c2_98, %c0_99, %c0_100] : memref<9x16x16xbf16, #tpu.memory_space<vmem>>, vector<1x16x16xbf16>
    %159 = vector.shape_cast %158 : vector<1x16x16xbf16> to vector<16x16xbf16>
    %cst_101 = arith.constant dense<0.000000e+00> : vector<128x16xf32>
    %160 = tpu.matmul %157, %159, %cst_101 {dimension_numbers = #tpu.dot_dimension_numbers<[1], [0], [0], [1], [0, 0, 1, 1], [], []>} : vector<128x16xbf16>, vector<16x16xbf16>, vector<128x16xf32> -> vector<128x16xf32>
    %161 = arith.addf %153, %160 : vector<128x16xf32>
    %c8_102 = arith.constant 8 : index
    %c0_103 = arith.constant 0 : index
    %162 = vector.load %arg11[%c8_102, %c0_103] : memref<144x16xf32, #tpu.memory_space<vmem>>, vector<128x16xf32>
    %c1_i32_104 = arith.constant 1 : i32
    %163 = tpu.dynamic_rotate %162 by %c1_i32_104 dim 0 : vector<128x16xf32>, i32 -> vector<128x16xf32>
    %cst_105 = arith.constant 0.000000e+00 : f32
    %164 = vector.broadcast %cst_105 : f32 to vector<128x16xf32>
    %165 = arith.select %136, %163, %164 : vector<128x16xi1>, vector<128x16xf32>
    %166 = arith.truncf %165 : vector<128x16xf32> to vector<128x16xbf16>
    %c3_106 = arith.constant 3 : index
    %c0_107 = arith.constant 0 : index
    %c0_108 = arith.constant 0 : index
    %167 = vector.load %arg6[%c3_106, %c0_107, %c0_108] : memref<9x16x16xbf16, #tpu.memory_space<vmem>>, vector<1x16x16xbf16>
    %168 = vector.shape_cast %167 : vector<1x16x16xbf16> to vector<16x16xbf16>
    %cst_109 = arith.constant dense<0.000000e+00> : vector<128x16xf32>
    %169 = tpu.matmul %166, %168, %cst_109 {dimension_numbers = #tpu.dot_dimension_numbers<[1], [0], [0], [1], [0, 0, 1, 1], [], []>} : vector<128x16xbf16>, vector<16x16xbf16>, vector<128x16xf32> -> vector<128x16xf32>
    %170 = arith.addf %161, %169 : vector<128x16xf32>
    %171 = arith.truncf %162 : vector<128x16xf32> to vector<128x16xbf16>
    %c4_110 = arith.constant 4 : index
    %c0_111 = arith.constant 0 : index
    %c0_112 = arith.constant 0 : index
    %172 = vector.load %arg6[%c4_110, %c0_111, %c0_112] : memref<9x16x16xbf16, #tpu.memory_space<vmem>>, vector<1x16x16xbf16>
    %173 = vector.shape_cast %172 : vector<1x16x16xbf16> to vector<16x16xbf16>
    %cst_113 = arith.constant dense<0.000000e+00> : vector<128x16xf32>
    %174 = tpu.matmul %171, %173, %cst_113 {dimension_numbers = #tpu.dot_dimension_numbers<[1], [0], [0], [1], [0, 0, 1, 1], [], []>} : vector<128x16xbf16>, vector<16x16xbf16>, vector<128x16xf32> -> vector<128x16xf32>
    %175 = arith.addf %170, %174 : vector<128x16xf32>
    %c127_i32_114 = arith.constant 127 : i32
    %176 = tpu.dynamic_rotate %162 by %c127_i32_114 dim 0 : vector<128x16xf32>, i32 -> vector<128x16xf32>
    %cst_115 = arith.constant 0.000000e+00 : f32
    %177 = vector.broadcast %cst_115 : f32 to vector<128x16xf32>
    %178 = arith.select %138, %176, %177 : vector<128x16xi1>, vector<128x16xf32>
    %179 = arith.truncf %178 : vector<128x16xf32> to vector<128x16xbf16>
    %c5_116 = arith.constant 5 : index
    %c0_117 = arith.constant 0 : index
    %c0_118 = arith.constant 0 : index
    %180 = vector.load %arg6[%c5_116, %c0_117, %c0_118] : memref<9x16x16xbf16, #tpu.memory_space<vmem>>, vector<1x16x16xbf16>
    %181 = vector.shape_cast %180 : vector<1x16x16xbf16> to vector<16x16xbf16>
    %cst_119 = arith.constant dense<0.000000e+00> : vector<128x16xf32>
    %182 = tpu.matmul %179, %181, %cst_119 {dimension_numbers = #tpu.dot_dimension_numbers<[1], [0], [0], [1], [0, 0, 1, 1], [], []>} : vector<128x16xbf16>, vector<16x16xbf16>, vector<128x16xf32> -> vector<128x16xf32>
    %183 = arith.addf %175, %182 : vector<128x16xf32>
    %c16_120 = arith.constant 16 : index
    %c0_121 = arith.constant 0 : index
    %184 = vector.load %arg11[%c16_120, %c0_121] : memref<144x16xf32, #tpu.memory_space<vmem>>, vector<128x16xf32>
    %c1_i32_122 = arith.constant 1 : i32
    %185 = tpu.dynamic_rotate %184 by %c1_i32_122 dim 0 : vector<128x16xf32>, i32 -> vector<128x16xf32>
    %cst_123 = arith.constant 0.000000e+00 : f32
    %186 = vector.broadcast %cst_123 : f32 to vector<128x16xf32>
    %187 = arith.select %136, %185, %186 : vector<128x16xi1>, vector<128x16xf32>
    %188 = arith.truncf %187 : vector<128x16xf32> to vector<128x16xbf16>
    %c6_124 = arith.constant 6 : index
    %c0_125 = arith.constant 0 : index
    %c0_126 = arith.constant 0 : index
    %189 = vector.load %arg6[%c6_124, %c0_125, %c0_126] : memref<9x16x16xbf16, #tpu.memory_space<vmem>>, vector<1x16x16xbf16>
    %190 = vector.shape_cast %189 : vector<1x16x16xbf16> to vector<16x16xbf16>
    %cst_127 = arith.constant dense<0.000000e+00> : vector<128x16xf32>
    %191 = tpu.matmul %188, %190, %cst_127 {dimension_numbers = #tpu.dot_dimension_numbers<[1], [0], [0], [1], [0, 0, 1, 1], [], []>} : vector<128x16xbf16>, vector<16x16xbf16>, vector<128x16xf32> -> vector<128x16xf32>
    %192 = arith.addf %183, %191 : vector<128x16xf32>
    %193 = arith.truncf %184 : vector<128x16xf32> to vector<128x16xbf16>
    %c7_128 = arith.constant 7 : index
    %c0_129 = arith.constant 0 : index
    %c0_130 = arith.constant 0 : index
    %194 = vector.load %arg6[%c7_128, %c0_129, %c0_130] : memref<9x16x16xbf16, #tpu.memory_space<vmem>>, vector<1x16x16xbf16>
    %195 = vector.shape_cast %194 : vector<1x16x16xbf16> to vector<16x16xbf16>
    %cst_131 = arith.constant dense<0.000000e+00> : vector<128x16xf32>
    %196 = tpu.matmul %193, %195, %cst_131 {dimension_numbers = #tpu.dot_dimension_numbers<[1], [0], [0], [1], [0, 0, 1, 1], [], []>} : vector<128x16xbf16>, vector<16x16xbf16>, vector<128x16xf32> -> vector<128x16xf32>
    %197 = arith.addf %192, %196 : vector<128x16xf32>
    %c127_i32_132 = arith.constant 127 : i32
    %198 = tpu.dynamic_rotate %184 by %c127_i32_132 dim 0 : vector<128x16xf32>, i32 -> vector<128x16xf32>
    %cst_133 = arith.constant 0.000000e+00 : f32
    %199 = vector.broadcast %cst_133 : f32 to vector<128x16xf32>
    %200 = arith.select %138, %198, %199 : vector<128x16xi1>, vector<128x16xf32>
    %201 = arith.truncf %200 : vector<128x16xf32> to vector<128x16xbf16>
    %c8_134 = arith.constant 8 : index
    %c0_135 = arith.constant 0 : index
    %c0_136 = arith.constant 0 : index
    %202 = vector.load %arg6[%c8_134, %c0_135, %c0_136] : memref<9x16x16xbf16, #tpu.memory_space<vmem>>, vector<1x16x16xbf16>
    %203 = vector.shape_cast %202 : vector<1x16x16xbf16> to vector<16x16xbf16>
    %cst_137 = arith.constant dense<0.000000e+00> : vector<128x16xf32>
    %204 = tpu.matmul %201, %203, %cst_137 {dimension_numbers = #tpu.dot_dimension_numbers<[1], [0], [0], [1], [0, 0, 1, 1], [], []>} : vector<128x16xbf16>, vector<16x16xbf16>, vector<128x16xf32> -> vector<128x16xf32>
    %205 = arith.addf %197, %204 : vector<128x16xf32>
    %c0_138 = arith.constant 0 : index
    %c0_139 = arith.constant 0 : index
    %206 = vector.load %arg7[%c0_138, %c0_139] : memref<1x16xf32, #tpu.memory_space<vmem>>, vector<1x16xf32>
    %207 = vector.broadcast %206 : vector<1x16xf32> to vector<128x16xf32>
    %208 = arith.mulf %205, %207 : vector<128x16xf32>
    %c0_140 = arith.constant 0 : index
    %c0_141 = arith.constant 0 : index
    %209 = vector.load %arg8[%c0_140, %c0_141] : memref<1x16xf32, #tpu.memory_space<vmem>>, vector<1x16xf32>
    %210 = vector.broadcast %209 : vector<1x16xf32> to vector<128x16xf32>
    %211 = arith.addf %208, %210 : vector<128x16xf32>
    %cst_142 = arith.constant 0.000000e+00 : f32
    %212 = vector.broadcast %cst_142 : f32 to vector<128x16xf32>
    %213 = arith.maximumf %211, %212 : vector<128x16xf32>
    %c0_143 = arith.constant 0 : index
    %c0_144 = arith.constant 0 : index
    %c0_145 = arith.constant 0 : index
    %214 = vector.load %arg9[%c0_143, %c0_144, %c0_145] : memref<1x128x16xf32, #tpu.memory_space<vmem>>, vector<1x128x16xf32>
    %215 = vector.shape_cast %214 : vector<1x128x16xf32> to vector<128x16xf32>
    %216 = vector.shape_cast %213 : vector<128x16xf32> to vector<1x128x16xf32>
    tpu.vector_store %arg9[%c0_143, %c0_144, %c0_145], %216 {strides = array<i32>} : memref<1x128x16xf32, #tpu.memory_space<vmem>>, vector<1x128x16xf32>,
    return
  }
  func.func @transform_0(%arg0: i32) -> (i32, i32, i32, i32) {
    %c0_i32 = arith.constant 0 : i32
    %c0_i32_0 = arith.constant 0 : i32
    %c0_i32_1 = arith.constant 0 : i32
    %c0_i32_2 = arith.constant 0 : i32
    return %arg0, %c0_i32, %c0_i32_0, %c0_i32_1 : i32, i32, i32, i32
  }
  func.func @transform_1(%arg0: i32) -> (i32, i32, i32, i32) {
    %c0_i32 = arith.constant 0 : i32
    %c0_i32_0 = arith.constant 0 : i32
    %c0_i32_1 = arith.constant 0 : i32
    %c0_i32_2 = arith.constant 0 : i32
    return %arg0, %c0_i32, %c0_i32_0, %c0_i32_1 : i32, i32, i32, i32
  }
  func.func @transform_2(%arg0: i32) -> (i32, i32, i32) {
    %c0_i32 = arith.constant 0 : i32
    %c0_i32_0 = arith.constant 0 : i32
    %c0_i32_1 = arith.constant 0 : i32
    %c0_i32_2 = arith.constant 0 : i32
    return %c0_i32, %c0_i32_0, %c0_i32_1 : i32, i32, i32
  }
  func.func @transform_3(%arg0: i32) -> (i32, i32) {
    %c0_i32 = arith.constant 0 : i32
    %c0_i32_0 = arith.constant 0 : i32
    %c0_i32_1 = arith.constant 0 : i32
    return %c0_i32, %c0_i32_0 : i32, i32
  }
  func.func @transform_4(%arg0: i32) -> (i32, i32) {
    %c0_i32 = arith.constant 0 : i32
    %c0_i32_0 = arith.constant 0 : i32
    %c0_i32_1 = arith.constant 0 : i32
    return %c0_i32, %c0_i32_0 : i32, i32
  }
  func.func @transform_5(%arg0: i32) -> (i32, i32, i32) {
    %c0_i32 = arith.constant 0 : i32
    %c0_i32_0 = arith.constant 0 : i32
    %c0_i32_1 = arith.constant 0 : i32
    %c0_i32_2 = arith.constant 0 : i32
    return %c0_i32, %c0_i32_0, %c0_i32_1 : i32, i32, i32
  }
  func.func @transform_6(%arg0: i32) -> (i32, i32) {
    %c0_i32 = arith.constant 0 : i32
    %c0_i32_0 = arith.constant 0 : i32
    %c0_i32_1 = arith.constant 0 : i32
    return %c0_i32, %c0_i32_0 : i32, i32
  }
  func.func @transform_7(%arg0: i32) -> (i32, i32) {
    %c0_i32 = arith.constant 0 : i32
    %c0_i32_0 = arith.constant 0 : i32
    %c0_i32_1 = arith.constant 0 : i32
    return %c0_i32, %c0_i32_0 : i32, i32
  }
  func.func @transform_8(%arg0: i32) -> (i32, i32, i32) {
    %c0_i32 = arith.constant 0 : i32
    %c0_i32_0 = arith.constant 0 : i32
    %c0_i32_1 = arith.constant 0 : i32
    return %arg0, %c0_i32, %c0_i32_0 : i32, i32, i32
  }
}

</mosaic_0001>

<bundles_post_ra>
// kernel: tile.28
= control target key start
LH: loop header
LB: loop body
LE: loop exit
PB: predicated region body
PF: predicated region fallthrough
CT: control target
= control target key end

     0   :  { %2 = vsyncpa [#allocation1], 0  ;;  %s42_s6 = smov [#allocation0]   ;;  %s59_s0 = inlined_call_operand.hbm [shape: f32[8], index: 0, kind: input, shape index: {}]   ;;  %s60_s1 = inlined_call_operand.vmem [shape: f32[2,8], index: 1, kind: output, shape index: {}]  }
   0x1   :  { %s9_s7 = sshll.u32 %s42_s6, 4  ;;  %s10_s7 = int_to_ptr.vmem [resolvable:$true] %s9_s7 }
   0x2   :  { %s28_s8 = scalar_lea.vmem %s10_s7, 16  ;;  %s32_s9 = scalar_lea.vmem %s10_s7, 32 }
   0x3   :  { %p29_p0 = scmp.ne.s32.totalorder %s10_s7, %s28_s8  ;;  %p33_p1 = scmp.lt.s32.totalorder %s10_s7, %s10_s7 }
   0x4   :  { %p34_p2 = scmp.lt.s32.totalorder %s32_s9, %s28_s8 }
   0x6   :  { %p35_p3 = por %p34_p2, %p33_p1 }
   0x8   :  { %p36_p4 = pnand %p35_p3, %p29_p0 }
   0xa   :  { %39 = shalt.err (!%p36_p4)
}
   0xb   :  { %12 = dma.hbm_to_vmem [thread:$0]  %s59_s0, 16, %s10_s7, [#allocation1]  }
   0xc   :  { %40 = dma.done.wait [#allocation1], 16  }
   0xd   :  { %41 = vsyncadd [#allocation1], 4294967280  ;;  %v16_v0 = vld [vmem:[#allocation0] ss:$0 sm:$0xff] }
   0xe   :  { %17 = vst [vmem:[%s60_s1] sm:$0x3] %v16_v0 }
   0xf   :  { %18 = vsyncpa [#allocation1], 1 }

// kernel: tile.29
= control target key start
LH: loop header
LB: loop body
LE: loop exit
PB: predicated region body
PF: predicated region fallthrough
CT: control target
= control target key end

     0   :  { %vm8_vm0 = vcmask 64512   ;;  %vm14_vm1 = vcmask 130112   ;;  %s42_s0 = inlined_call_operand.vmem [shape: f32[2,8], index: 0, kind: input, shape index: {}]   ;;  %s43_s1 = inlined_call_operand.vmem [shape: f32[1,16], index: 1, kind: output, shape index: {}]  }
   0x1   :  { %v5_v0 = vld [vmem:[%s42_s0] sm:$0x3]  ;;  %s25_s0 = smov 8  }
   0x2   :  { %6 = vst [vmem:[#allocation1] sm:$0x3] %v5_v0 }
   0x9   :  { %v11_v1 = vld [vmem:[#allocation1 + $0x1] sm:$0x1]   ;;  %v7_v2 = vld [vmem:[#allocation1] sm:$0x1]  }
   0xa   :  { %12 = vrot.lane.b32.xlu0 %v11_v1, %s25_s0  ;;  %9 = vst.msk [vmem:[#allocation0] sm:$0x1] %vm8_vm0, %v7_v2  }
  0x7c   :  { %v13_v3 = vpop.permute.xlu0 %12  }
  0x7d   :  { %15 = vst.msk [vmem:[#allocation0] sm:$0x1] %vm14_vm1, %v13_v3  }
  0x84   :  { %v20_v4 = vld [vmem:[#allocation0] sm:$0x1] }
  0x85   :  { %23 = vst [vmem:[%s43_s1] sm:$0x1] %v20_v4 }

// kernel: decoder_block_forward.1
= control target key start
LH: loop header
LB: loop body
LE: loop exit
PB: predicated region body
PF: predicated region fallthrough
CT: control target
= control target key end

     0   :  { %s5226_s27 = smov 0   ;;  %s7731_s0 = inlined_call_operand.vmem [shape: bf16[2,8,8,4], index: 0, kind: input, shape index: {}]   ;;  %s7732_s1 = inlined_call_operand.vmem [shape: bf16[2,16,8,8], index: 1, kind: input, shape index: {}]   ;;  %s7733_s2 = inlined_call_operand.vmem [shape: bf16[9,12,16], index: 2, kind: input, shape index: {}]   ;;  %s7734_s3 = inlined_call_operand.vmem [shape: f32[1,16], index: 3, kind: input, shape index: {}]   ;;  %s7735_s4 = inlined_call_operand.vmem [shape: f32[1,16], index: 4, kind: input, shape index: {}]   ;;  %s7736_s5 = inlined_call_operand.vmem [shape: bf16[9,16,16], index: 5, kind: input, shape index: {}]   ;;  %s7737_s6 = inlined_call_operand.vmem [shape: f32[1,16], index: 6, kind: input, shape index: {}]   ;;  %s7738_s7 = inlined_call_operand.vmem [shape: f32[1,16], index: 7, kind: input, shape index: {}]   ;;  %s7739_s8 = inlined_call_operand.vmem [shape: f32[2,128,16], index: 8, kind: output, shape index: {}]  }
   0x1 LB: > { %s4341_s28 = sadd.s32 4294967295, %s5177_s27   ;;  %p4345_p0 = scmp.ge.s32.totalorder %s5177_s27, 1  ;;  %s5177_s27 = sphi %s5226_s27, %s18_s27  }
   0x2   : > { %p272_p1 = scmp.lt.s32.totalorder %s5177_s27, 3 }
   0x4   : > { %p273_p2 = pnand %p4345_p0, %p272_p1 }
   0x6   : > { %276 = sbr.rel (%p273_p2) target bundleno = 892 (0x37c), region = 52 }
   0xb   : > { %p311_p3 = scmp.lt.s32.totalorder %s4341_s28, 1  ;;  %vm7767_vm0 = vcmask 97280   ;;  %v5179_v0 = vmov 0.0   ;;  %v5153_v17 = vld [vmem:[%s7733_s2 + $0x8] sm:$0x3f]   ;;  %s5180_s13 = smov 4   ;;  %v475_v49 = vlaneseq }
   0xc   : > { %457 = vst.msk [vmem:[#allocation2] sm:$0xff] %vm7767_vm0, %v5179_v0  ;;  %458 = vst.msk [vmem:[#allocation2 + $0x88] sm:$0xff] %vm7767_vm0, %v5179_v0  ;;  %vm7757_vm1 = vcmask 1045504   ;;  %v5250_v25 = vld [vmem:[%s7733_s2 + $0x10] sm:$0x3f]   ;;  %vm7753_vm2 = vcmask 130048  }
   0xd   : > { %s8758_s28 = smov (!%p311_p3, %s4341_s28), 1  ;;  %5099 = vmatprep.subr.msk.bf16.mxu0 %vm7757_vm1, %v5153_v17  ;;  %v833_v28 = vsel %vm7757_vm1, %v5153_v17, 0  ;;  %2490 = vst.msk [vmem:[#allocation3 + $0x88] sm:$0xff] %vm7753_vm2, %v5179_v0  ;;  %2489 = vst.msk [vmem:[#allocation3] sm:$0xff] %vm7753_vm2, %v5179_v0  ;;  %v5155_v34 = vld [vmem:[%s7733_s2] sm:$0x3f]  }
   0xe   : > { %s4553_s29 = sshll.u32 %s8758_s28, 6  ;;  %4776 = vmatpush3.bf16.msra.mxu0 %v833_v28  ;;  %5100 = vmatprep.subr.msk.bf16.mxu1 %vm7757_vm1, %v5155_v34  ;;  %v962_v36 = vsel %vm7757_vm1, %v5155_v34, 0  ;;  %v5273_v37 = vld [vmem:[%s7733_s2 + $0x18] sm:$0x3f]   ;;  %s4552_s20 = sshll.u32 %s8758_s28, 5  ;;  %vm439_vm3 = vcmask 31744  }
   0xf   : > { %s320_s10 = scalar_lea.vmem %s7732_s1, %s4553_s29  ;;  %5101 = vmatprep.subr.msk.bf16.mxu0 %vm7757_vm1, %v5250_v25  ;;  %4794 = vmatpush3.bf16.msra.mxu1 %v962_v36  ;;  %s315_s23 = scalar_lea.vmem %s7731_s0, %s4552_s20  ;;  %v5294_v63 = vshrl.u32 %v475_v49, 7 }
  0x10   : > { %v4606_v1 = vld [vmem:[%s320_s10 + $0x8] sm:$0xff]   ;;  %v4607_v2 = vld [vmem:[%s320_s10 + $0x10] sm:$0xff]   ;;  %v4572_v3 = vld [vmem:[%s320_s10] sm:$0xff]   ;;  %5102 = vmatprep.subr.msk.bf16.mxu1 %vm7757_vm1, %v5273_v37  ;;  %s4554_s20 = sshll.u32 %s8758_s28, 7 }
  0x11   : > { %v4578_v4 = vunpack.c.h.bf16 %v4606_v1  ;;  %v4581_v5 = vunpack.c.l.bf16 %v4607_v2  ;;  %v4582_v6 = vunpack.c.h.bf16 %v4607_v2  ;;  %v4573_v7 = vunpack.c.l.bf16 %v4572_v3  ;;  %v4608_v8 = vld [vmem:[%s320_s10 + $0x18] sm:$0xff]   ;;  %v4609_v11 = vld [vmem:[%s320_s10 + $0x20] sm:$0xff]   ;;  %v4610_v12 = vld [vmem:[%s320_s10 + $0x28] sm:$0xff]   ;;  %7999 = vst [vmem:[#allocation5_spill] sm:$0xff] %v5294_v63  ;;  %s7627_s22 = scalar_lea.vmem %s7739_s8, %s4554_s20 }
  0x12   : > { %v4574_v9 = vunpack.c.h.bf16 %v4572_v3  ;;  %v4585_v10 = vunpack.c.l.bf16 %v4608_v8  ;;  %v4611_v14 = vld [vmem:[%s320_s10 + $0x30] sm:$0xff]   ;;  %v4612_v16 = vld [vmem:[%s320_s10 + $0x38] sm:$0xff]   ;;  %v4590_v19 = vunpack.c.h.bf16 %v4609_v11  ;;  %v4593_v20 = vunpack.c.l.bf16 %v4610_v12  ;;  %v4603_v38 = vld [vmem:[%s315_s23 + $0x8] sm:$0xff]  }
  0x13   : > { %v5123_v13 = vpack.i.bf16 %v4581_v5, %v4578_v4  ;;  %v4577_v21 = vunpack.c.l.bf16 %v4606_v1  ;;  %v4586_v22 = vunpack.c.h.bf16 %v4608_v8  ;;  %v4589_v23 = vunpack.c.l.bf16 %v4609_v11  ;;  %v4556_v39 = vld [vmem:[%s315_s23] sm:$0xff]   ;;  %v4604_v59 = vld [vmem:[%s315_s23 + $0x10] sm:$0xff]   ;;  %v5290_v61 = vld [vmem:[%s315_s23 + $0x18] sm:$0xff]  }
  0x14   : > { %v5118_v15 = vpack.i.bf16 %v4574_v9, %v4573_v7  ;;  %v5128_v18 = vpack.i.bf16 %v4585_v10, %v4582_v6  ;;  %v4598_v24 = vunpack.c.h.bf16 %v4611_v14  ;;  %v5138_v26 = vpack.i.bf16 %v4593_v20, %v4590_v19  ;;  %v5292_v62 = vld [vmem:[#allocation2] sm:$0xff] }
  0x15   : > { %5124 = vrot.lane.b32.xlu1 %v5123_v13, %s5180_s13  ;;  %v4601_v27 = vunpack.c.l.bf16 %v4612_v16  ;;  %v5133_v29 = vpack.i.bf16 %v4589_v23, %v4586_v22  ;;  %v4594_v30 = vunpack.c.h.bf16 %v4610_v12  ;;  %v4597_v31 = vunpack.c.l.bf16 %v4611_v14  ;;  %7998 = vst [vmem:[#allocation4_spill] sm:$0xff] %v5292_v62 }
  0x16   : > { %5119 = vrot.lane.b32.xlu0 %v5118_v15, %s5180_s13  ;;  %v4602_v35 = vunpack.c.h.bf16 %v4612_v16  ;;  %v4558_v40 = vunpack.c.h.bf16 %v4556_v39  ;;  %v4561_v41 = vunpack.c.l.bf16 %v4603_v38  ;;  %v4557_v43 = vunpack.c.l.bf16 %v4556_v39 }
  0x17   : > { %v5148_v32 = vpack.i.bf16 %v4601_v27, %v4598_v24  ;;  %v5143_v33 = vpack.i.bf16 %v4597_v31, %v4594_v30  ;;  %v4562_v52 = vunpack.c.h.bf16 %v4603_v38  ;;  %v4566_v2 = vunpack.c.h.bf16 %v4604_v59 }
  0x18   : > { %v4565_v4 = vunpack.c.l.bf16 %v4604_v59  ;;  %v4569_v5 = vunpack.c.l.bf16 %v5290_v61  ;;  %v4570_v9 = vunpack.c.h.bf16 %v5290_v61  ;;  %v732_v10 = vrot.slane %v5292_v62, 7 }
  0x19   : > { %5129 = vrot.lane.b32.xlu1 %v5128_v18, %s5180_s13  ;;  %v5305_v13 = vadd.s32 16, %v5294_v63  ;;  %v1151_v14 = vsel %vm7757_vm1, %v5250_v25, 0  ;;  %v5312_v17 = vadd.s32 24, %v5294_v63  ;;  %v5315_v18 = vadd.s32 8, %v5294_v63 }
  0x1a   : > { %395 = vrot.lane.b32.xlu0 %v4577_v21, %s5180_s13  ;;  %v496_v23 = vand.u32 7, %v5294_v63  ;;  %v5325_v24 = vadd.s32 32, %v5294_v63  ;;  %vm7763_vm4 = vcmp.lt.s32.totalorder %v5294_v63, 1  ;;  %v5396_v59 = vadd.s32 72, %v5294_v63 }
  0x1c   : > { %vm5383_vm5 = vcmp.ne.s32.totalorder %v496_v23, 0  ;;  %vm5523_vm15 = vcmp.ne.s32.totalorder %v496_v23, 7 }
  0x1d   : > { %5139 = vrot.lane.b32.xlu1 %v5138_v26, %s5180_s13 }
  0x1e   : > { %5134 = vrot.lane.b32.xlu0 %v5133_v29, %s5180_s13  ;;  %v5332_v29 = vadd.s32 40, %v5294_v63 }
  0x21   : > { %5149 = vrot.lane.b32.xlu1 %v5148_v32, %s5180_s13  ;;  %v7746_v32 = vand.u32 7, %v5305_v13 }
  0x22   : > { %5144 = vrot.lane.b32.xlu0 %v5143_v33, %s5180_s13 }
  0x23   : > { %vm5412_vm6 = vcmp.ne.s32.totalorder %v7746_v32, 0 }
  0x26   : > { %421 = vrot.lane.b32.xlu0 %v4602_v35, %s5180_s13  ;;  %v5340_v35 = vadd.s32 48, %v5294_v63 }
  0x87   : > { %v5125_v42 = vpop.permute.xlu1 %5124 }
  0x88   : > { %v5127_v44 = vunpack.i.h.bf16 %v5125_v42  ;;  %v5126_v45 = vunpack.i.l.bf16 %v5125_v42  ;;  %v5120_v46 = vpop.permute.xlu0 %5119 }
  0x89   : > { %v5122_v47 = vunpack.i.h.bf16 %v5120_v46  ;;  %v5121_v48 = vunpack.i.l.bf16 %v5120_v46 }
  0x8a   : > { %v443_v50 = vsel %vm439_vm3, %v4558_v40, %v5126_v45  ;;  %v444_v51 = vsel %vm439_vm3, %v4561_v41, %v5127_v44  ;;  %v7745_v44 = vand.u32 7, %v5312_v17 }
  0x8b   : > { %462 = vst.msk [vmem:[#allocation2 + $0x20] sm:$0xff] %vm7767_vm0, %v443_v50  ;;  %463 = vst.msk [vmem:[#allocation2 + $0x28] sm:$0xff] %vm7767_vm0, %v444_v51  ;;  %v440_v53 = vsel %vm439_vm3, %v4557_v43, %v5121_v48  ;;  %v441_v54 = vsel %vm439_vm3, %v4557_v43, %v5122_v47  ;;  %v5130_v55 = vpop.permute.xlu1 %5129  ;;  %v5367_v47 = vadd.s32 64, %v5294_v63  ;;  %v503_v51 = vand.u32 7, %v5315_v18 }
  0x8c   : > { %459 = vst.msk [vmem:[#allocation2 + $0x8] sm:$0xff] %vm7767_vm0, %v440_v53  ;;  %460 = vst.msk [vmem:[#allocation2 + $0x10] sm:$0xff] %vm7767_vm0, %v441_v54  ;;  %v5132_v56 = vunpack.i.h.bf16 %v5130_v55  ;;  %v5131_v57 = vunpack.i.l.bf16 %v5130_v55  ;;  %v396_v58 = vpop.permute.xlu0 %395  ;;  %v8007_v53 = vmov 0  ;;  %v7744_v54 = vand.u32 7, %v5325_v24 }
  0x8d   : > { %v442_v60 = vsel %vm439_vm3, %v4558_v40, %v396_v58  ;;  %v5350_v40 = vadd.s32 56, %v5294_v63  ;;  %v8008_v53 = vsel %vm5383_vm5, 4294967295, %v8007_v53  ;;  %v7743_v55 = vand.u32 7, %v5332_v29 }
  0x8e   : > { %v445_v0 = vsel %vm439_vm3, %v4561_v41, %v5131_v57  ;;  %v446_v1 = vsel %vm439_vm3, %v4562_v52, %v5132_v56  ;;  %461 = vst.msk [vmem:[#allocation2 + $0x18] sm:$0xff] %vm7767_vm0, %v442_v60  ;;  %v5355_v41 = vld [vmem:[%s7733_s2 + $0x20] sm:$0x3f]   ;;  %8009 = vst [vmem:[#allocation13_spill] sm:$0xff] %v8008_v53  ;;  %v7742_v56 = vand.u32 7, %v5340_v35  ;;  %v5401_v60 = vadd.s32 120, %v5294_v63 }
  0x8f   : > { %464 = vst.msk [vmem:[#allocation2 + $0x30] sm:$0xff] %vm7767_vm0, %v445_v0  ;;  %465 = vst.msk [vmem:[#allocation2 + $0x38] sm:$0xff] %vm7767_vm0, %v446_v1  ;;  %v5140_v3 = vpop.permute.xlu1 %5139  ;;  %v7741_v58 = vand.u32 7, %v5350_v40  ;;  %vm5418_vm7 = vcmp.ne.s32.totalorder %v7745_v44, 0  ;;  %vm5436_vm8 = vcmp.ne.s32.totalorder %v503_v51, 0  ;;  %vm5446_vm9 = vcmp.ne.s32.totalorder %v7744_v54, 0 }
  0x90   : > { %v5142_v6 = vunpack.i.h.bf16 %v5140_v3  ;;  %v5141_v7 = vunpack.i.l.bf16 %v5140_v3  ;;  %v5135_v8 = vpop.permute.xlu0 %5134  ;;  %v8013_v3 = vmov 0  ;;  %vm5452_vm10 = vcmp.ne.s32.totalorder %v7743_v55, 0 }
  0x91   : > { %v5137_v11 = vunpack.i.h.bf16 %v5135_v8  ;;  %v5136_v12 = vunpack.i.l.bf16 %v5135_v8  ;;  %v8014_v3 = vsel %vm5418_vm7, 4294967295, %v8013_v3  ;;  %vm5466_vm12 = vcmp.ne.s32.totalorder %v7742_v56, 0 }
  0x92   : > { %v449_v15 = vsel %vm439_vm3, %v4565_v4, %v5141_v7  ;;  %v450_v16 = vsel %vm439_vm3, %v4566_v2, %v5142_v6  ;;  %v5362_v45 = vld [vmem:[#allocation2 + $0x20] sm:$0xff]  ;;  %v5364_v46 = vld [vmem:[#allocation2 + $0x28] sm:$0xff]  ;;  %8015 = vst [vmem:[#allocation15_spill] sm:$0xff] %v8014_v3  ;;  %vm5472_vm13 = vcmp.ne.s32.totalorder %v7741_v58, 0  ;;  %v8040_v58 = vmov 0 }
  0x93   : > { %468 = vst.msk [vmem:[#allocation2 + $0x50] sm:$0xff] %vm7767_vm0, %v449_v15  ;;  %469 = vst.msk [vmem:[#allocation2 + $0x58] sm:$0xff] %vm7767_vm0, %v450_v16  ;;  %v447_v19 = vsel %vm439_vm3, %v4562_v52, %v5136_v12  ;;  %v448_v20 = vsel %vm439_vm3, %v4565_v4, %v5137_v11  ;;  %v5150_v21 = vpop.permute.xlu1 %5149  ;;  %v5321_v22 = vld [vmem:[#allocation2 + $0x8] sm:$0xff]  ;;  %v5335_v33 = vld [vmem:[#allocation2 + $0x10] sm:$0xff]  ;;  %v5377_v50 = vpack.c.bf16 %v5364_v46, %v5362_v45  ;;  %v7740_v4 = vand.u32 7, %v5367_v47 }
  0x94   : > { %8000 = vst [vmem:[#allocation6_spill] sm:$0xff] %v5321_v22  ;;  %466 = vst.msk [vmem:[#allocation2 + $0x40] sm:$0xff] %vm7767_vm0, %v447_v19  ;;  %v5152_v25 = vunpack.i.h.bf16 %v5150_v21  ;;  %v5151_v26 = vunpack.i.l.bf16 %v5150_v21  ;;  %v5145_v27 = vpop.permute.xlu0 %5144  ;;  %v791_v28 = vpack.c.bf16 %v5321_v22, %v5292_v62  ;;  %v5404_v61 = vrot.slane %v5321_v22, 7 }
  0x95   : > { %467 = vst.msk [vmem:[#allocation2 + $0x48] sm:$0xff] %vm7767_vm0, %v448_v20  ;;  %v5147_v30 = vunpack.i.h.bf16 %v5145_v27  ;;  %v5146_v31 = vunpack.i.l.bf16 %v5145_v27  ;;  %8001 = vst [vmem:[#allocation7_spill] sm:$0xff] %v5335_v33  ;;  %v5337_v34 = vld [vmem:[#allocation2 + $0x18] sm:$0xff]  ;;  %v736_v6 = vrot.slane %v5362_v45, 7  ;;  %v737_v7 = vrot.slane %v5364_v46, 7 }
  0x96   : > { %8002 = vst [vmem:[#allocation8_spill] sm:$0xff] %v5337_v34  ;;  %v453_v36 = vsel %vm439_vm3, %v4569_v5, %v5151_v26  ;;  %v454_v38 = vsel %vm439_vm3, %v4570_v9, %v5152_v25  ;;  %4777 = vmatprep.mubr.msk.bf16.mxu0 %vm7767_vm0, %v791_v28  ;;  %v5347_v39 = vpack.c.bf16 %v5337_v34, %v5335_v33  ;;  %8004 = vst [vmem:[#allocation10_spill] sm:$0xff] %v5362_v45  ;;  %v5406_v0 = vld [vmem:[#allocation2 + $0x30] sm:$0xff]  ;;  %v5408_v1 = vld [vmem:[#allocation2 + $0x38] sm:$0xff]  ;;  %v8019_v12 = vmov 0 }
  0x97   : > { %472 = vst.msk [vmem:[#allocation2 + $0x70] sm:$0xff] %vm7767_vm0, %v453_v36  ;;  %473 = vst.msk [vmem:[#allocation2 + $0x78] sm:$0xff] %vm7767_vm0, %v454_v38  ;;  %v451_v42 = vsel %vm439_vm3, %v4566_v2, %v5146_v31  ;;  %v452_v43 = vsel %vm439_vm3, %v4569_v5, %v5147_v30  ;;  %v735_v57 = vrot.slane %v5337_v34, 7  ;;  %v8010_v2 = vmov 0 }
  0x98   : > { %8003 = vst [vmem:[#allocation9_spill] sm:$0xff] %v5347_v39  ;;  %8005 = vst [vmem:[#allocation11_spill] sm:$0xff] %v5364_v46  ;;  %v422_v49 = vpop.permute.xlu0 %421  ;;  %4778 = vmatmul.mubr.msk.bf16.vlgmr.msra.gmra.mxu0 %vm7767_vm0, %v5347_v39  ;;  %v8011_v2 = vsel %vm5412_vm6, 4294967295, %v8010_v2  ;;  %v5424_v5 = vrot.slane %v5335_v33, 7  ;;  %v5430_v8 = vpack.c.bf16 %v5408_v1, %v5406_v0  ;;  %v8020_v12 = vsel %vm5436_vm8, 4294967295, %v8019_v12 }
  0x99   : > { %470 = vst.msk [vmem:[#allocation2 + $0x60] sm:$0xff] %vm7767_vm0, %v451_v42  ;;  %471 = vst.msk [vmem:[#allocation2 + $0x68] sm:$0xff] %vm7767_vm0, %v452_v43  ;;  %v455_v52 = vsel %vm439_vm3, %v4570_v9, %v422_v49  ;;  %4812 = vmatpush3.bf16.msra.mxu0 %v1151_v14  ;;  %4781 = vmatprep.mubr.msk.bf16.mxu0 %vm7767_vm0, %v5377_v50  ;;  %v8023_v15 = vmov 0  ;;  %v8026_v16 = vmov 0  ;;  %v8029_v20 = vmov 0 }
  0x9a   : > { %8006 = vst [vmem:[#allocation12_spill] sm:$0xff] %v5377_v50  ;;  %474 = vst.msk [vmem:[#allocation2 + $0x80] sm:$0xff] %vm7767_vm0, %v455_v52  ;;  %5103 = vmatprep.subr.msk.bf16.mxu0 %vm7757_vm1, %v5355_v41  ;;  %v8024_v15 = vsel %vm5446_vm9, 4294967295, %v8023_v15  ;;  %v8027_v16 = vsel %vm5452_vm10, 4294967295, %v8026_v16  ;;  %v5462_v19 = vsel %vm7763_vm4, %v5424_v5, %v735_v57  ;;  %v8030_v20 = vsel %vm5466_vm12, 4294967295, %v8029_v20 }
  0x9b   : > { %8012 = vst [vmem:[#allocation14_spill] sm:$0xff] %v8011_v2  ;;  %8016 = vst [vmem:[#allocation16_spill] sm:$0xff] %v5430_v8  ;;  %v5432_v9 = vld [vmem:[#allocation2 + $0x40] sm:$0xff]  ;;  %v8032_v21 = vmov 0  ;;  %v5478_v26 = vadd.s32 80, %v5294_v63  ;;  %v763_v30 = vsel %vm7763_vm4, %v732_v10, %v5404_v61  ;;  %vm5491_vm14 = vcmp.ne.s32.totalorder %v7740_v4, 0 }
  0x9c   : > { %8017 = vst [vmem:[#allocation17_spill] sm:$0xff] %v5432_v9  ;;  %v5434_v11 = vld [vmem:[#allocation2 + $0x48] sm:$0xff]  ;;  %8021 = vst [vmem:[#allocation19_spill] sm:$0xff] %v8020_v12  ;;  %v8033_v21 = vsel %vm5472_vm13, 4294967295, %v8032_v21  ;;  %v8036_v31 = vmov 0  ;;  %v5496_v36 = vadd.s32 88, %v5294_v63  ;;  %v5507_v42 = vsel %vm7763_vm4, %v5404_v61, %v5424_v5 }
  0x9d   : > { %8018 = vst [vmem:[#allocation18_spill] sm:$0xff] %v5434_v11  ;;  %v5442_v14 = vpack.c.bf16 %v5434_v11, %v5432_v9  ;;  %8025 = vst [vmem:[#allocation21_spill] sm:$0xff] %v8024_v15  ;;  %v8037_v31 = vsel %vm5491_vm14, 4294967295, %v8036_v31  ;;  %v5499_v38 = vadd.s32 112, %v5294_v63  ;;  %v5511_v43 = vsel %vm7763_vm4, %v736_v6, %v737_v7 }
  0x9e   : > { %8028 = vst [vmem:[#allocation22_spill] sm:$0xff] %v8027_v16  ;;  %v5457_v18 = vld [vmem:[#allocation2 + $0x78] sm:$0xff]  ;;  %8031 = vst [vmem:[#allocation23_spill] sm:$0xff] %v8030_v20  ;;  %v5515_v49 = vsel %vm7763_vm4, %v735_v57, %v736_v6  ;;  %v1371_v52 = vsel %vm7757_vm1, %v5273_v37, 0  ;;  %v738_v4 = vrot.slane %v5406_v0, 7  ;;  %v739_v27 = vrot.slane %v5408_v1, 7 }
  0x9f   : > { %8022 = vst [vmem:[#allocation20_spill] sm:$0xff] %v5442_v14  ;;  %8034 = vst [vmem:[#allocation24_spill] sm:$0xff] %v8033_v21  ;;  %v5482_v28 = vrot.slane %v5457_v18, 7  ;;  %v8041_v58 = vsel %vm5523_vm15, 4294967295, %v8040_v58  ;;  %vm5527_vm3 = vcmp.ne.s32.totalorder %v503_v51, 7  ;;  %v8043_v56 = vmov 0 }
  0xa0   : > { %8038 = vst [vmem:[#allocation26_spill] sm:$0xff] %v8037_v31  ;;  %4782 = vmatmul.mubr.msk.bf16.gmra.mxu0 %vm7767_vm0, %v5430_v8  ;;  %8039 = vst [vmem:[#allocation27_spill] sm:$0xff] %v5511_v43  ;;  %v8044_v56 = vsel %vm5527_vm3, 4294967295, %v8043_v56  ;;  %v768_v23 = vsel %vm5418_vm7, %v5462_v19, 0.0  ;;  %v5541_v57 = vld [vmem:[#allocation2 + $0x50] sm:$0xff]  ;;  %v5543_v6 = vld [vmem:[#allocation2 + $0x58] sm:$0xff] }
  0xa1   : > { %8035 = vst [vmem:[#allocation25_spill] sm:$0xff] %v5482_v28  ;;  %8042 = vst [vmem:[#allocation28_spill] sm:$0xff] %v8041_v58  ;;  %v764_v37 = vsel %vm7763_vm4, %v5482_v28, %v732_v10  ;;  %4785 = vmatprep.mubr.msk.bf16.mxu0 %vm7767_vm0, %v5442_v14  ;;  %v766_v55 = vsel %vm5436_vm8, %v763_v30, 0.0  ;;  %v769_v10 = vsel %vm5446_vm9, %v5515_v49, 0.0  ;;  %v770_v54 = vsel %vm5452_vm10, %v5511_v43, 0.0  ;;  %v5564_v14 = vld [vmem:[#allocation2 + $0x60] sm:$0xff] }
  0xa2   : > { %8045 = vst [vmem:[#allocation29_spill] sm:$0xff] %v8044_v56  ;;  %8046 = vst [vmem:[#allocation30_spill] sm:$0xff] %v5541_v57  ;;  %v765_v51 = vsel %vm5383_vm5, %v764_v37, 0.0  ;;  %v740_v44 = vrot.slane %v5432_v9, 7  ;;  %v741_v25 = vrot.slane %v5434_v11, 7  ;;  %v767_v37 = vsel %vm5412_vm6, %v5507_v42, 0.0 }
  0xa3   : > { %8047 = vst [vmem:[#allocation31_spill] sm:$0xff] %v5543_v6  ;;  %v781_v48 = vpack.c.bf16 %v766_v55, %v765_v51  ;;  %v782_v32 = vpack.c.bf16 %v768_v23, %v767_v37  ;;  %v5562_v30 = vpack.c.bf16 %v5543_v6, %v5541_v57  ;;  %8049 = vst [vmem:[#allocation33_spill] sm:$0xff] %v5564_v14  ;;  %v5566_v8 = vld [vmem:[#allocation2 + $0x68] sm:$0xff]  ;;  %v5570_v55 = vadd.s32 96, %v5294_v63 }
  0xa4   : > { %8050 = vst [vmem:[#allocation34_spill] sm:$0xff] %v5566_v8  ;;  %v5575_v51 = vld [vmem:[%s7733_s2 + $0x28] sm:$0x3f]   ;;  %v5578_v23 = vrot.slane %v5321_v22, 1  ;;  %v5581_v37 = vrot.slane %v5335_v33, 1  ;;  %v783_v39 = vpack.c.bf16 %v770_v54, %v769_v10  ;;  %v5586_v50 = vpack.c.bf16 %v5566_v8, %v5564_v14 }
  0xa5   : > { %8048 = vst [vmem:[#allocation32_spill] sm:$0xff] %v5562_v30  ;;  %4795 = vmatprep.mubr.msk.bf16.mxu1 %vm7767_vm0, %v781_v48  ;;  %v8054_v16 = vand.u32 7, %v5305_v13  ;;  %v8055_v15 = vmov 0  ;;  %v5597_v22 = vsel %vm7763_vm4, %v738_v4, %v739_v27  ;;  %v5601_v48 = vsel %vm7763_vm4, %v737_v7, %v738_v4 }
  0xa6   : > { %8051 = vst [vmem:[#allocation35_spill] sm:$0xff] %v5578_v23  ;;  %8052 = vst [vmem:[#allocation36_spill] sm:$0xff] %v5581_v37  ;;  %4796 = vmatmul.mubr.msk.bf16.vlgmr.msra.gmra.mxu1 %vm7767_vm0, %v782_v32  ;;  %v8059_v54 = vand.u32 7, %v5396_v59  ;;  %v8060_v10 = vmov 0  ;;  %v5610_v13 = vadd.s32 104, %v5294_v63  ;;  %v8064_v32 = vmov 0 }
  0xa7   : > { %8053 = vst [vmem:[#allocation37_spill] sm:$0xff] %v5586_v50  ;;  %vm5590_vm2 = vcmp.ne.s32.totalorder %v8054_v16, 7  ;;  %8058 = vst [vmem:[#allocation39_spill] sm:$0xff] %v5597_v22  ;;  %v8063_v16 = vand.u32 7, %v5312_v17  ;;  %4799 = vmatprep.mubr.msk.bf16.mxu1 %vm7767_vm0, %v783_v39  ;;  %v5621_v4 = vsel %vm7763_vm4, %v740_v44, %v741_v25  ;;  %v5625_v7 = vsel %vm7763_vm4, %v739_v27, %v740_v44 }
  0xa8   : > { %v8056_v15 = vsel %vm5590_vm2, 4294967295, %v8055_v15  ;;  %vm5605_vm11 = vcmp.ne.s32.totalorder %v8059_v54, 0  ;;  %8067 = vst [vmem:[#allocation42_spill] sm:$0xff] %v5621_v4  ;;  %8068 = vst [vmem:[#allocation43_spill] sm:$0xff] %v5625_v7  ;;  %4830 = vmatpush3.bf16.msra.mxu1 %v1371_v52  ;;  %v742_v17 = vrot.slane %v5541_v57, 7  ;;  %4786 = vmatmul.mubr.msk.bf16.gmra.mxu0 %vm7767_vm0, %v5562_v30  ;;  %v8069_v39 = vand.u32 7, %v5478_v26 }
  0xa9   : > { %8057 = vst [vmem:[#allocation38_spill] sm:$0xff] %v8056_v15  ;;  %v8061_v10 = vsel %vm5605_vm11, 4294967295, %v8060_v10  ;;  %vm5614_vm1 = vcmp.ne.s32.totalorder %v8063_v16, 7  ;;  %v743_v16 = vrot.slane %v5543_v6, 7  ;;  %v8070_v43 = vmov 0  ;;  %4789 = vmatprep.mubr.msk.bf16.mxu0 %vm7767_vm0, %v5586_v50 }
  0xaa   : > { %8062 = vst [vmem:[#allocation40_spill] sm:$0xff] %v8061_v10  ;;  %v8065_v32 = vsel %vm5614_vm1, 4294967295, %v8064_v32  ;;  %vm5635_vm10 = vcmp.ne.s32.totalorder %v8069_v39, 0  ;;  %vm8073_vm4 = vcmask 1045504   ;;  %v771_v27 = vsel %vm5466_vm12, %v5601_v48, 0.0  ;;  %v5650_v39 = vld [vmem:[#allocation2 + $0x70] sm:$0xff] }
  0xab   : > { %8066 = vst [vmem:[#allocation41_spill] sm:$0xff] %v8065_v32  ;;  %v8071_v43 = vsel %vm5635_vm10, 4294967295, %v8070_v43  ;;  %5104 = vmatprep.subr.msk.bf16.mxu1 %vm8073_vm4, %v5575_v51  ;;  %v772_v52 = vsel %vm5472_vm13, %v5597_v22, 0.0  ;;  %8074 = vst [vmem:[#allocation45_spill] sm:$0xff] %v5650_v39  ;;  %vm8075_vm9 = vcmp.lt.s32.totalorder %v5294_v63, 7  ;;  %v8077_v44 = vrot.slane %v5292_v62, 1 }
  0xac   : > { %8072 = vst [vmem:[#allocation44_spill] sm:$0xff] %v8071_v43  ;;  %v5656_v33 = vsel %vm8075_vm9, %v5578_v23, %v5581_v37  ;;  %vm8078_vm4 = vmmov %vm8075_vm9  ;;  %v8079_v50 = vand.u32 7, %v5325_v24  ;;  %v8080_v30 = vmov 0  ;;  %v8083_v21 = vand.u32 7, %v5332_v29 }
  0xad   : > { %8076 = vst [vmem:[#allocation46_spill] sm:$0xff] %v5656_v33  ;;  %v1092_v54 = vsel %vm8078_vm4, %v8077_v44, %v5578_v23  ;;  %v8084_v20 = vmov 0  ;;  %v1064_v22 = vrot.slane %v5337_v34, 1  ;;  %v773_v62 = vsel %vm5491_vm14, %v5625_v7, 0.0 }
  0xae   : > { %vm5665_vm0 = vcmp.ne.s32.totalorder %v8079_v50, 7  ;;  %vm5671_vm13 = vcmp.ne.s32.totalorder %v8083_v21, 7  ;;  %v774_v24 = vsel %vm5605_vm11, %v5621_v4, 0.0  ;;  %v1065_v44 = vrot.slane %v5362_v45, 1 }
  0xaf   : > { %v8081_v30 = vsel %vm5665_vm0, 4294967295, %v8080_v30  ;;  %v8085_v20 = vsel %vm5671_vm13, 4294967295, %v8084_v20  ;;  %v744_v29 = vrot.slane %v5564_v14, 7  ;;  %v745_v21 = vrot.slane %v5566_v8, 7 }
  0xb0   : > { %8082 = vst [vmem:[#allocation47_spill] sm:$0xff] %v8081_v30  ;;  %8086 = vst [vmem:[#allocation48_spill] sm:$0xff] %v8085_v20  ;;  %v8087_v23 = vand.u32 7, %v5496_v36  ;;  %v8088_v34 = vmov 0  ;;  %v784_v31 = vpack.c.bf16 %v772_v52, %v771_v27  ;;  %v5694_v7 = vpack.c.bf16 %v5457_v18, %v5650_v39  ;;  %v5710_v52 = vld [vmem:[#allocation2 + $0x88] sm:$0xff] }
  0xb1   : > { %v1094_v50 = vsel %vm5523_vm15, %v1092_v54, 0.0  ;;  %v1095_v45 = vsel %vm5527_vm3, %v5656_v33, 0.0  ;;  %v785_v4 = vpack.c.bf16 %v774_v24, %v773_v62  ;;  %vm8092_vm4 = vcmp.lt.s32.totalorder %v5294_v63, 1  ;;  %8094 = vst [vmem:[#allocation51_spill] sm:$0xff] %v5710_v52 }
  0xb2   : > { %vm5688_vm9 = vcmp.ne.s32.totalorder %v8087_v23, 0  ;;  %8091 = vst [vmem:[#allocation50_spill] sm:$0xff] %v5694_v7  ;;  %v5704_v23 = vsel %vm8092_vm4, %v742_v17, %v743_v16  ;;  %vm8093_vm11 = vmmov %vm8092_vm4  ;;  %vm8095_vm15 = vcmp.lt.s32.totalorder %v5294_v63, 7  ;;  %v1066_v33 = vrot.slane %v5364_v46, 1 }
  0xb3   : > { %v8089_v34 = vsel %vm5688_vm9, 4294967295, %v8088_v34  ;;  %v5708_v27 = vsel %vm8093_vm11, %v741_v25, %v742_v17  ;;  %v5715_v54 = vsel %vm8095_vm15, %v5581_v37, %v1064_v22  ;;  %vm8097_vm3 = vcmask 97280   ;;  %vm8106_vm4 = vmmov %vm8095_vm15 }
  0xb4   : > { %8090 = vst [vmem:[#allocation49_spill] sm:$0xff] %v8089_v34  ;;  %8096 = vst [vmem:[#allocation52_spill] sm:$0xff] %v5715_v54  ;;  %4800 = vmatmul.mubr.msk.bf16.gmra.mxu1 %vm8097_vm3, %v784_v31  ;;  %v8098_v62 = vand.u32 7, %v5570_v55  ;;  %v8099_v24 = vmov 0  ;;  %v8102_v25 = vand.u32 7, %v5610_v13  ;;  %v8103_v17 = vmov 0 }
  0xb5   : > { %v5733_v10 = vsel %vm8106_vm4, %v1064_v22, %v1065_v44  ;;  %vm8108_vm15 = vmmov %vm8097_vm3  ;;  %v1110_v37 = vpack.c.bf16 %v1095_v45, %v1094_v50  ;;  %vm8109_vm3 = vcmp.lt.s32.totalorder %v5294_v63, 1  ;;  %v775_v22 = vsel %vm5635_vm10, %v5708_v27, 0.0 }
  0xb6   : > { %vm5721_vm14 = vcmp.ne.s32.totalorder %v8098_v62, 0  ;;  %vm5727_vm11 = vcmp.ne.s32.totalorder %v8102_v25, 0  ;;  %8107 = vst [vmem:[#allocation55_spill] sm:$0xff] %v5733_v10  ;;  %4803 = vmatprep.mubr.msk.bf16.mxu1 %vm8108_vm15, %v785_v4  ;;  %v5738_v31 = vsel %vm8109_vm3, %v744_v29, %v745_v21  ;;  %vm8110_vm12 = vmmov %vm8109_vm3  ;;  %v746_v25 = vrot.slane %v5650_v39, 7 }
  0xb7   : > { %v8100_v24 = vsel %vm5721_vm14, 4294967295, %v8099_v24  ;;  %v8104_v17 = vsel %vm5727_vm11, 4294967295, %v8103_v17  ;;  %v5742_v62 = vsel %vm8110_vm12, %v743_v16, %v744_v29  ;;  %vm8111_vm7 = vmmov %vm8108_vm15  ;;  %v776_v45 = vsel %vm5688_vm9, %v5704_v23, 0.0 }
  0xb8   : > { %8101 = vst [vmem:[#allocation53_spill] sm:$0xff] %v8100_v24  ;;  %8105 = vst [vmem:[#allocation54_spill] sm:$0xff] %v8104_v17  ;;  %4790 = vmatmul.mubr.msk.bf16.gmra.mxu0 %vm8111_vm7, %v5694_v7  ;;  %v8112_v4 = vand.u32 7, %v5340_v35  ;;  %v8113_v50 = vmov 0  ;;  %v8116_v16 = vand.u32 7, %v5350_v40  ;;  %v8117_v29 = vmov 0 }
  0xb9   : > { %v5765_v7 = vld [vmem:[#allocation2 + $0x80] sm:$0xff]  ;;  %v1096_v56 = vsel %vm5590_vm2, %v5715_v54, 0.0  ;;  %4813 = vmatprep.mubr.msk.bf16.mxu0 %vm8111_vm7, %v1110_v37  ;;  %v8121_v35 = vrot.slane %v5406_v0, 1  ;;  %vm8122_vm15 = vcmp.lt.s32.totalorder %v5294_v63, 7  ;;  %v8123_v40 = vand.u32 7, %v5499_v38 }
  0xba   : > { %vm5755_vm4 = vcmp.ne.s32.totalorder %v8112_v4, 7  ;;  %vm5761_vm12 = vcmp.ne.s32.totalorder %v8116_v16, 7  ;;  %8120 = vst [vmem:[#allocation58_spill] sm:$0xff] %v5765_v7  ;;  %v8124_v16 = vmov 0  ;;  %v8127_v46 = vand.u32 7, %v5401_v60  ;;  %vm8131_vm7 = vmmov %vm8122_vm15 }
  0xbb   : > { %v8114_v50 = vsel %vm5755_vm4, 4294967295, %v8113_v50  ;;  %v8118_v29 = vsel %vm5761_vm12, 4294967295, %v8117_v29  ;;  %v5776_v4 = vsel %vm8122_vm15, %v1066_v33, %v8121_v35  ;;  %vm5780_vm3 = vcmp.ne.s32.totalorder %v8123_v40, 0 }
  0xbc   : > { %8115 = vst [vmem:[#allocation56_spill] sm:$0xff] %v8114_v50  ;;  %8119 = vst [vmem:[#allocation57_spill] sm:$0xff] %v8118_v29  ;;  %v8125_v16 = vsel %vm5780_vm3, 4294967295, %v8124_v16  ;;  %vm5786_vm9 = vcmp.ne.s32.totalorder %v8127_v46, 0  ;;  %v8128_v58 = vmov 0  ;;  %v1097_v37 = vsel %vm5614_vm1, %v5733_v10, 0.0 }
  0xbd   : > { %8126 = vst [vmem:[#allocation59_spill] sm:$0xff] %v8125_v16  ;;  %v8129_v58 = vsel %vm5786_vm9, 4294967295, %v8128_v58  ;;  %v1069_v15 = vrot.slane %v5432_v9, 1  ;;  %v777_v35 = vsel %vm5721_vm14, %v5742_v62, 0.0  ;;  %v778_v40 = vsel %vm5727_vm11, %v5738_v31, 0.0 }
  0xbe   : > { %8130 = vst [vmem:[#allocation60_spill] sm:$0xff] %v8129_v58  ;;  %v1071_v54 = vrot.slane %v5541_v57, 1  ;;  %v786_v46 = vpack.c.bf16 %v776_v45, %v775_v22  ;;  %v5803_v34 = vsel %vm8131_vm7, %v1065_v44, %v1066_v33  ;;  %v5806_v32 = vrot.slane %v5765_v7, 7 }
  0xbf   : > { %v1098_v9 = vsel %vm5665_vm0, %v5803_v34, 0.0  ;;  %v1099_v10 = vsel %vm5671_vm13, %v5776_v4, 0.0  ;;  %vm8132_vm15 = vcmp.lt.s32.totalorder %v5294_v63, 1  ;;  %v787_v44 = vpack.c.bf16 %v778_v40, %v777_v35 }
  0xc0   : > { %v5817_v57 = vsel %vm8132_vm15, %v746_v25, %v5482_v28  ;;  %vm8133_vm1 = vmmov %vm8132_vm15  ;;  %vm8134_vm7 = vcmask 1045504   ;;  %v8135_v45 = vand.u32 7, %v5367_v47  ;;  %v8136_v7 = vmov 0 }
  0xc1   : > { %v5821_v33 = vsel %vm8133_vm1, %v745_v21, %v746_v25  ;;  %v1527_v22 = vsel %vm8134_vm7, %v5355_v41, 0  ;;  %v8139_v20 = vand.u32 7, %v5396_v59  ;;  %v8140_v30 = vmov 0  ;;  %v5849_v59 = vld [vmem:[%s7733_s2 + $0x30] sm:$0x3f]  }
  0xc2   : > { %vm5827_vm0 = vcmp.ne.s32.totalorder %v8135_v45, 7  ;;  %v1068_v28 = vrot.slane %v5408_v1, 1  ;;  %v1070_v21 = vrot.slane %v5434_v11, 1  ;;  %vm8143_vm1 = vcmask 97280  }
  0xc3   : > { %v8137_v7 = vsel %vm5827_vm0, 4294967295, %v8136_v7  ;;  %vm5833_vm13 = vcmp.ne.s32.totalorder %v8139_v20, 7  ;;  %4804 = vmatmul.mubr.msk.bf16.gmra.mxu1 %vm8143_vm1, %v786_v46  ;;  %v1111_v25 = vpack.c.bf16 %v1097_v37, %v1096_v56  ;;  %v8144_v41 = vand.u32 7, %v5478_v26  ;;  %vm8148_vm7 = vmmov %vm8143_vm1 }
  0xc4   : > { %8138 = vst [vmem:[#allocation61_spill] sm:$0xff] %v8137_v7  ;;  %v8141_v30 = vsel %vm5833_vm13, 4294967295, %v8140_v30  ;;  %v8145_v47 = vmov 0  ;;  %4807 = vmatprep.mubr.msk.bf16.mxu1 %vm8148_vm7, %v787_v44  ;;  %v1112_v20 = vpack.c.bf16 %v1099_v10, %v1098_v9  ;;  %v779_v35 = vsel %vm5780_vm3, %v5821_v33, 0.0  ;;  %vm8150_vm2 = vmmov %vm8148_vm7 }
  0xc5   : > { %8142 = vst [vmem:[#allocation62_spill] sm:$0xff] %v8141_v30  ;;  %vm5842_vm15 = vcmp.ne.s32.totalorder %v8144_v41, 7  ;;  %v780_v56 = vsel %vm5786_vm9, %v5817_v57, 0.0  ;;  %vm8149_vm1 = vcmp.lt.s32.totalorder %v5294_v63, 1  ;;  %v1072_v37 = vrot.slane %v5543_v6, 1  ;;  %4814 = vmatmul.mubr.msk.bf16.vlgmr.msra.gmra.mxu0 %vm8150_vm2, %v1111_v25 }
  0xc6   : > { %v8146_v47 = vsel %vm5842_vm15, 4294967295, %v8145_v47  ;;  %v1313_v26 = vsel %vm8149_vm1, %v5806_v32, %v5404_v61  ;;  %vm8151_vm7 = vcmp.lt.s32.totalorder %v5294_v63, 7  ;;  %v8153_v40 = vand.u32 7, %v5496_v36  ;;  %4848 = vmatpush3.bf16.msra.mxu0 %v1527_v22  ;;  %4817 = vmatprep.mubr.msk.bf16.mxu0 %vm8150_vm2, %v1112_v20 }
  0xc7   : > { %8147 = vst [vmem:[#allocation63_spill] sm:$0xff] %v8146_v47  ;;  %v5866_v9 = vsel %vm8151_vm7, %v1068_v28, %v1069_v15  ;;  %vm8152_vm11 = vmmov %vm8151_vm7  ;;  %v8154_v46 = vmov 0  ;;  %v1073_v61 = vrot.slane %v5564_v14, 1  ;;  %v1074_v44 = vrot.slane %v5566_v8, 1 }
  0xc8   : > { %v5870_v10 = vsel %vm8152_vm11, %v1070_v21, %v1071_v54  ;;  %vm5874_vm9 = vcmp.ne.s32.totalorder %v8153_v40, 7  ;;  %v1075_v45 = vrot.slane %v5650_v39, 1  ;;  %v8157_v25 = vand.u32 7, %v5570_v55  ;;  %vm8162_vm11 = vmmov %vm8151_vm7 }
  0xc9   : > { %v8155_v46 = vsel %vm5874_vm9, 4294967295, %v8154_v46  ;;  %v8158_v41 = vmov 0  ;;  %v788_v36 = vpack.c.bf16 %v780_v56, %v779_v35  ;;  %v8161_v40 = vrot.slane %v5406_v0, 1 }
  0xca   : > { %8156 = vst [vmem:[#allocation64_spill] sm:$0xff] %v8155_v46  ;;  %vm5884_vm1 = vcmp.ne.s32.totalorder %v8157_v25, 7  ;;  %v1314_v8 = vsel %vm5383_vm5, %v1313_v26, 0.0  ;;  %v5898_v22 = vsel %vm8151_vm7, %v1069_v15, %v1070_v21  ;;  %vm8163_vm2 = vcmask 1045504  }
  0xcb   : > { %v8159_v41 = vsel %vm5884_vm1, 4294967295, %v8158_v41  ;;  %v5892_v6 = vsel %vm8162_vm11, %v8161_v40, %v1068_v28  ;;  %5105 = vmatprep.subr.msk.bf16.mxu0 %vm8163_vm2, %v5849_v59  ;;  %v1101_v20 = vsel %vm5761_vm12, %v5866_v9, 0.0  ;;  %v1102_v28 = vsel %vm5827_vm0, %v5898_v22, 0.0  ;;  %vm8165_vm2 = vmmov %vm8151_vm7 }
  0xcc   : > { %8160 = vst [vmem:[#allocation65_spill] sm:$0xff] %v8159_v41  ;;  %v1100_v55 = vsel %vm5755_vm4, %v5892_v6, 0.0  ;;  %v1103_v15 = vsel %vm5833_vm13, %v5870_v10, 0.0  ;;  %v1315_v21 = vsel %vm5436_vm8, %v5507_v42, 0.0  ;;  %v1316_v35 = vsel %vm5412_vm6, %v5462_v19, 0.0 }
  0xcd   : > { %vm8164_vm11 = vnez %v8014_v3  ;;  %v5925_v26 = vsel %vm8151_vm7, %v1071_v54, %v1072_v37  ;;  %v1330_v25 = vpack.c.bf16 %v1315_v21, %v1314_v8  ;;  %v5929_v40 = vsel %vm8165_vm2, %v1072_v37, %v1073_v61  ;;  %vm8172_vm7 = vmmov %vm8165_vm2 }
  0xce   : > { %v1317_v56 = vsel %vm8164_vm11, %v5515_v49, 0.0  ;;  %v8166_v39 = vand.u32 7, %v5610_v13  ;;  %v8167_v42 = vmov 0  ;;  %vm8170_vm13 = vcmask 1045504  }
  0xcf   : > { %v1731_v14 = vsel %vm8170_vm13, %v5575_v51, 0  ;;  %v5940_v11 = vrot.slane %v5457_v18, 1  ;;  %vm8171_vm0 = vcmask 97280   ;;  %v1113_v54 = vpack.c.bf16 %v1101_v20, %v1100_v55 }
  0xd0   : > { %vm5933_vm3 = vcmp.ne.s32.totalorder %v8166_v39, 7  ;;  %4808 = vmatmul.mubr.msk.bf16.gmra.mxu1 %vm8171_vm0, %v788_v36  ;;  %v1114_v8 = vpack.c.bf16 %v1103_v15, %v1102_v28  ;;  %v5945_v37 = vsel %vm8172_vm7, %v1074_v44, %v1075_v45  ;;  %vm8173_vm2 = vmmov %vm8171_vm0  ;;  %v1331_v13 = vpack.c.bf16 %v1317_v56, %v1316_v35  ;;  %v8181_v28 = vld [vmem:[#allocation27_spill] sm:$0xff]  ;;  %v8182_v15 = vld [vmem:[#allocation21_spill] sm:$0xff] }
  0xd1   : > { %v8168_v42 = vsel %vm5933_vm3, 4294967295, %v8167_v42  ;;  %4831 = vmatprep.mubr.msk.bf16.mxu1 %vm8173_vm2, %v1330_v25  ;;  %v1104_v39 = vsel %vm5842_vm15, %v5925_v26, 0.0  ;;  %v8174_v51 = vand.u32 7, %v5499_v38  ;;  %v8175_v21 = vmov 0  ;;  %vm8180_vm7 = vmmov %vm8173_vm2 }
  0xd2   : > { %8169 = vst [vmem:[#allocation66_spill] sm:$0xff] %v8168_v42  ;;  %v8178_v36 = vrot.slane %v5710_v52, 7  ;;  %vm8179_vm0 = vcmp.lt.s32.totalorder %v5294_v63, 1  ;;  %v1895_v20 = vsel %vm5436_vm8, %v5462_v19, 0.0  ;;  %4818 = vmatmul.mubr.msk.bf16.gmra.mxu0 %vm8180_vm7, %v1113_v54  ;;  %v1105_v38 = vsel %vm5874_vm9, %v5929_v40, 0.0  ;;  %v8186_v19 = vld [vmem:[#allocation22_spill] sm:$0xff] }
  0xd3   : > { %vm5953_vm13 = vcmp.ne.s32.totalorder %v8174_v51, 7  ;;  %vm8183_vm2 = vnez %v8182_v15  ;;  %vm8184_vm15 = vcmp.lt.s32.totalorder %v5294_v63, 7  ;;  %v1107_v51 = vsel %vm5933_vm3, %v5945_v37, 0.0  ;;  %v8196_v42 = vld [vmem:[#allocation24_spill] sm:$0xff]  ;;  %v8200_v15 = vld [vmem:[#allocation42_spill] sm:$0xff] }
  0xd4   : > { %v8176_v21 = vsel %vm5953_vm13, 4294967295, %v8175_v21  ;;  %v1893_v55 = vsel %vm8179_vm0, %v8178_v36, %v5424_v5  ;;  %v1318_v35 = vsel %vm8183_vm2, %v8181_v28, 0.0  ;;  %v5974_v56 = vsel %vm8184_vm15, %v1073_v61, %v1074_v44  ;;  %vm8185_vm0 = vmmov %vm8180_vm7  ;;  %v8188_v61 = vld [vmem:[#allocation39_spill] sm:$0xff] }
  0xd5   : > { %8177 = vst [vmem:[#allocation67_spill] sm:$0xff] %v8176_v21  ;;  %v1894_v5 = vsel %vm5383_vm5, %v1893_v55, 0.0  ;;  %4821 = vmatprep.mubr.msk.bf16.mxu0 %vm8185_vm0, %v1114_v8  ;;  %vm8187_vm7 = vnez %v8186_v19  ;;  %v1106_v54 = vsel %vm5884_vm1, %v5974_v56, 0.0  ;;  %v8189_v44 = vld [vmem:[#allocation23_spill] sm:$0xff]  ;;  %v8191_v8 = vand.u32 7, %v5401_v60 }
  0xd6   : > { %v1319_v25 = vsel %vm8187_vm7, %v5601_v48, 0.0  ;;  %v5988_v36 = vpack.c.bf16 %v1895_v20, %v1894_v5  ;;  %vm8190_vm15 = vnez %v8189_v44  ;;  %v8192_v12 = vmov 0  ;;  %v8195_v5 = vld [vmem:[#allocation43_spill] sm:$0xff] }
  0xd7   : > { %v1320_v55 = vsel %vm8190_vm15, %v8188_v61, 0.0  ;;  %vm5995_vm0 = vcmp.ne.s32.totalorder %v8191_v8, 7  ;;  %v1896_v53 = vsel %vm5412_vm6, %v5515_v49, 0.0  ;;  %v1897_v52 = vsel %vm8164_vm11, %v8181_v28, 0.0  ;;  %v6022_v28 = vld [vmem:[%s7733_s2 + $0x38] sm:$0x3f]  }
  0xd8   : > { %v8193_v12 = vsel %vm5995_vm0, 4294967295, %v8192_v12  ;;  %v1898_v20 = vsel %vm8183_vm2, %v5601_v48, 0.0  ;;  %vm8197_vm8 = vnez %v8196_v42  ;;  %v6011_v8 = vpack.c.bf16 %v1897_v52, %v1896_v53  ;;  %v8201_v52 = vld [vmem:[#allocation26_spill] sm:$0xff] }
  0xd9   : > { %8194 = vst [vmem:[#allocation27_spill] sm:$0xff] %v8193_v12  ;;  %v1321_v60 = vsel %vm8197_vm8, %v8195_v5, 0.0  ;;  %v1899_v41 = vsel %vm8187_vm7, %v8188_v61, 0.0  ;;  %v1900_v49 = vsel %vm8190_vm15, %v8195_v5, 0.0  ;;  %v1901_v53 = vsel %vm8197_vm8, %v8200_v15, 0.0  ;;  %v8203_v61 = vld [vmem:[#allocation40_spill] sm:$0xff] }
  0xda   : > { %8198 = vst [vmem:[#allocation39_spill] sm:$0xff] %v6011_v8  ;;  %v6024_v48 = vpack.c.bf16 %v1899_v41, %v1898_v20  ;;  %vm8202_vm2 = vnez %v8201_v52  ;;  %vm8204_vm7 = vnez %v8203_v61  ;;  %v1332_v5 = vpack.c.bf16 %v1319_v25, %v1318_v35  ;;  %v8208_v8 = vld [vmem:[#allocation49_spill] sm:$0xff] }
  0xdb   : > { %v1902_v19 = vsel %vm8202_vm2, %v5708_v27, 0.0  ;;  %v1903_v44 = vsel %vm8204_vm7, %v5704_v23, 0.0  ;;  %vm8205_vm15 = vcmp.lt.s32.totalorder %v5294_v63, 7  ;;  %v6040_v41 = vpack.c.bf16 %v1901_v53, %v1900_v49  ;;  %v8222_v49 = vld [vmem:[#allocation55_spill] sm:$0xff] }
  0xdc   : > { %8199 = vst [vmem:[#allocation43_spill] sm:$0xff] %v6024_v48  ;;  %v6038_v3 = vsel %vm8205_vm15, %v1075_v45, %v5940_v11  ;;  %v6042_v20 = vpack.c.bf16 %v1903_v44, %v1902_v19  ;;  %vm8207_vm5 = vcmask 97280   ;;  %v1115_v42 = vpack.c.bf16 %v1105_v38, %v1104_v39  ;;  %v8214_v38 = vld [vmem:[#allocation4_spill] sm:$0xff] }
  0xdd   : > { %4832 = vmatmul.mubr.msk.bf16.vlgmr.msra.gmra.mxu1 %vm8207_vm5, %v1331_v13  ;;  %v1116_v2 = vpack.c.bf16 %v1107_v51, %v1106_v54  ;;  %v1904_v48 = vsel %vm5635_vm10, %v5742_v62, 0.0  ;;  %vm8209_vm8 = vnez %v8208_v8  ;;  %vm8210_vm11 = vmmov %vm8207_vm5  ;;  %v1333_v45 = vpack.c.bf16 %v1321_v60, %v1320_v55  ;;  %v8219_v44 = vld [vmem:[#allocation52_spill] sm:$0xff] }
  0xde   : > { %8206 = vst [vmem:[#allocation42_spill] sm:$0xff] %v6042_v20  ;;  %v1905_v35 = vsel %vm8209_vm8, %v5738_v31, 0.0  ;;  %4835 = vmatprep.mubr.msk.bf16.mxu1 %vm8210_vm11, %v1332_v5  ;;  %4866 = vmatpush3.bf16.msra.mxu1 %v1731_v14  ;;  %v1906_v13 = vsel %vm5721_vm14, %v5821_v33, 0.0  ;;  %vm8212_vm5 = vnez %v8104_v17  ;;  %vm8213_vm15 = vmmov %vm8210_vm11  ;;  %v8215_v19 = vrot.slane %v8214_v38, 1  ;;  %v8220_v55 = vld [vmem:[#allocation28_spill] sm:$0xff]  ;;  %v8225_v5 = vld [vmem:[#allocation38_spill] sm:$0xff] }
  0xdf   : > { %v6052_v25 = vpack.c.bf16 %v1905_v35, %v1904_v48  ;;  %v1907_v39 = vsel %vm8212_vm5, %v5817_v57, 0.0  ;;  %4822 = vmatmul.mubr.msk.bf16.gmra.mxu0 %vm8213_vm15, %v1115_v42  ;;  %vm8216_vm6 = vcmp.lt.s32.totalorder %v5294_v63, 7  ;;  %v1108_v14 = vsel %vm5953_vm13, %v6038_v3, 0.0  ;;  %v8223_v48 = vld [vmem:[#allocation29_spill] sm:$0xff] }
  0xe0   : > { %v1093_v54 = vsel %vm8216_vm6, %v5940_v11, %v8215_v19  ;;  %vm8217_vm11 = vcmask 1045504   ;;  %v6071_v51 = vpack.c.bf16 %v1907_v39, %v1906_v13  ;;  %vm8221_vm3 = vnez %v8220_v55  ;;  %4825 = vmatprep.mubr.msk.bf16.mxu0 %vm8213_vm15, %v1116_v2  ;;  %v8227_v13 = vld [vmem:[#allocation41_spill] sm:$0xff] }
  0xe1   : > { %8211 = vst [vmem:[#allocation68_spill] sm:$0xff] %v6052_v25  ;;  %5106 = vmatprep.subr.msk.bf16.mxu1 %vm8217_vm11, %v6022_v28  ;;  %v2254_v60 = vsel %vm8221_vm3, %v8219_v44, 0.0  ;;  %v1322_v42 = vsel %vm8202_vm2, %v8200_v15, 0.0  ;;  %vm8224_vm6 = vnez %v8223_v48  ;;  %vm8226_vm13 = vnez %v8225_v5  ;;  %v8231_v15 = vld [vmem:[#allocation47_spill] sm:$0xff]  ;;  %v8233_v25 = vld [vmem:[#allocation48_spill] sm:$0xff] }
  0xe2   : > { %8218 = vst [vmem:[#allocation4_spill] sm:$0xff] %v6071_v51  ;;  %v2255_v53 = vsel %vm8224_vm6, %v8222_v49, 0.0  ;;  %v2256_v35 = vsel %vm8226_vm13, %v5803_v34, 0.0  ;;  %vm8228_vm11 = vnez %v8227_v13  ;;  %v1323_v2 = vsel %vm8204_vm7, %v5708_v27, 0.0 }
  0xe3   : > { %v2257_v39 = vsel %vm8228_vm11, %v5776_v4, 0.0  ;;  %v6092_v38 = vpack.c.bf16 %v2255_v53, %v2254_v60  ;;  %vm8232_vm15 = vnez %v8231_v15  ;;  %v1109_v51 = vsel %vm5995_vm0, %v1093_v54, 0.0 }
  0xe4   : > { %v6094_v19 = vpack.c.bf16 %v2257_v39, %v2256_v35  ;;  %v2258_v52 = vsel %vm8232_vm15, %v5892_v6, 0.0  ;;  %vm8234_vm2 = vnez %v8233_v25  ;;  %v2260_v61 = vsel %vm5755_vm4, %v5898_v22, 0.0 }
  0xe5   : > { %8229 = vst [vmem:[#allocation52_spill] sm:$0xff] %v6092_v38  ;;  %v2259_v20 = vsel %vm8234_vm2, %v5866_v9, 0.0  ;;  %v2261_v27 = vsel %vm5761_vm12, %v5870_v10, 0.0  ;;  %vm8236_vm7 = vnez %v8137_v7  ;;  %vm8237_vm0 = vnez %v8141_v30 }
  0xe6   : > { %8230 = vst [vmem:[#allocation55_spill] sm:$0xff] %v6094_v19  ;;  %v6110_v60 = vpack.c.bf16 %v2259_v20, %v2258_v52  ;;  %v6112_v53 = vpack.c.bf16 %v2261_v27, %v2260_v61  ;;  %v2262_v54 = vsel %vm8236_vm7, %v5925_v26, 0.0  ;;  %v2263_v35 = vsel %vm8237_vm0, %v5929_v40, 0.0  ;;  %v8241_v27 = vld [vmem:[#allocation6_spill] sm:$0xff] }
  0xe7   : > { %v1334_v39 = vpack.c.bf16 %v1323_v2, %v1322_v42  ;;  %v6120_v19 = vpack.c.bf16 %v2263_v35, %v2262_v54  ;;  %vm8238_vm1 = vnez %v8146_v47  ;;  %v2265_v52 = vsel %vm5874_vm9, %v5945_v37, 0.0  ;;  %v8246_v54 = vld [vmem:[#allocation8_spill] sm:$0xff]  ;;  %v8247_v35 = vld [vmem:[#allocation10_spill] sm:$0xff] }
  0xe8   : > { %8235 = vst [vmem:[#allocation69_spill] sm:$0xff] %v6112_v53  ;;  %v2264_v38 = vsel %vm8238_vm1, %v5974_v56, 0.0  ;;  %vm8239_vm12 = vcmask 97280   ;;  %v1117_v61 = vpack.c.bf16 %v1109_v51, %v1108_v14  ;;  %v8242_v53 = vld [vmem:[#allocation7_spill] sm:$0xff]  ;;  %v1324_v2 = vsel %vm5635_vm10, %v5704_v23, 0.0 }
  0xe9   : > { %4836 = vmatmul.mubr.msk.bf16.gmra.mxu1 %vm8239_vm12, %v1333_v45  ;;  %v6129_v20 = vpack.c.bf16 %v2265_v52, %v2264_v38  ;;  %vm8240_vm7 = vmmov %vm8239_vm12  ;;  %v1486_v42 = vpack.c.bf16 %v8242_v53, %v8241_v27  ;;  %v1325_v45 = vsel %vm8209_vm8, %v5742_v62, 0.0  ;;  %v1326_v14 = vsel %vm5721_vm14, %v5738_v31, 0.0  ;;  %v8249_v62 = vld [vmem:[#allocation25_spill] sm:$0xff]  ;;  %v5161_v31 = vld [vmem:[%s7733_s2 + $0x40] sm:$0x3f]  }
  0xea   : > { %4839 = vmatprep.mubr.msk.bf16.mxu1 %vm8240_vm7, %v1334_v39  ;;  %vm8243_vm0 = vmmov %vm8240_vm7  ;;  %v1327_v51 = vsel %vm8212_vm5, %v5821_v33, 0.0  ;;  %v1335_v38 = vpack.c.bf16 %v1325_v45, %v1324_v2  ;;  %v1487_v39 = vpack.c.bf16 %v8247_v35, %v8246_v54  ;;  %vm8250_vm7 = vcmp.lt.s32.totalorder %v5294_v63, 1  ;;  %v8251_v33 = vld [vmem:[#allocation11_spill] sm:$0xff]  ;;  %v8257_v2 = vld [vmem:[#allocation46_spill] sm:$0xff] }
  0xeb   : > { %4826 = vmatmul.mubr.msk.bf16.gmra.mxu0 %vm8243_vm0, %v1117_v61  ;;  %vm8244_vm4 = vmmov %vm8243_vm0  ;;  %v1336_v53 = vpack.c.bf16 %v1327_v51, %v1326_v14  ;;  %v6157_v52 = vsel %vm8250_vm7, %v8249_v62, %v5806_v32  ;;  %v1488_v61 = vpack.c.bf16 %v5406_v0, %v8251_v33  ;;  %vm8255_vm7 = vnez %v8129_v58 }
  0xec   : > { %4849 = vmatprep.mubr.msk.bf16.mxu0 %vm8244_vm4, %v1486_v42  ;;  %vm8245_vm12 = vmmov %vm8243_vm0  ;;  %vm8248_vm4 = vcmask 1045504   ;;  %v1329_v27 = vsel %vm8255_vm7, %v6157_v52, 0.0  ;;  %v1675_v42 = vsel %vm8224_vm6, %v8219_v44, 0.0  ;;  %v1674_v45 = vsel %vm8221_vm3, %v8257_v2, 0.0 }
  0xed   : > { %v1951_v23 = vsel %vm8248_vm4, %v5849_v59, 0  ;;  %vm8253_vm14 = vmmov %vm8243_vm0  ;;  %vm8254_vm4 = vnez %v8125_v16  ;;  %v1690_v14 = vpack.c.bf16 %v1675_v42, %v1674_v45  ;;  %v1676_v44 = vsel %vm8226_vm13, %v8222_v49, 0.0  ;;  %v8265_v49 = vld [vmem:[#allocation31_spill] sm:$0xff] }
  0xee   : > { %v1328_v59 = vsel %vm8254_vm4, %v5817_v57, 0.0  ;;  %v8259_v57 = vld [vmem:[#allocation17_spill] sm:$0xff]  ;;  %v1677_v35 = vsel %vm8228_vm11, %v5803_v34, 0.0  ;;  %v8268_v34 = vld [vmem:[#allocation34_spill] sm:$0xff]  ;;  %vm8272_vm10 = vnez %v8114_v50 }
  0xef   : > { %v1337_v0 = vpack.c.bf16 %v1329_v27, %v1328_v59  ;;  %v1489_v51 = vpack.c.bf16 %v8259_v57, %v5408_v1  ;;  %v1678_v1 = vsel %vm8232_vm15, %v5776_v4, 0.0  ;;  %v8269_v27 = vld [vmem:[#allocation45_spill] sm:$0xff] }
  0xf0   : > { %v1492_v42 = vpack.c.bf16 %v8269_v27, %v8268_v34  ;;  %v8310_v27 = vld [vmem:[#allocation4_spill] sm:$0xff] }
  0xf1   : > { %4840 = vmatmul.mubr.msk.bf16.gmra.mxu1 %vm8245_vm12, %v1335_v38  ;;  %vm8252_vm12 = vmmov %vm8243_vm0  ;;  %v8260_v38 = vld [vmem:[#allocation18_spill] sm:$0xff] }
  0xf2   : > { %4843 = vmatprep.mubr.msk.bf16.mxu1 %vm8243_vm0, %v1336_v53  ;;  %vm8256_vm0 = vcmask 1045504   ;;  %v8261_v53 = vld [vmem:[#allocation30_spill] sm:$0xff]  ;;  %vm8262_vm5 = vmmov %vm8252_vm12 }
  0xf3   : > { %4850 = vmatmul.mubr.msk.bf16.vlgmr.msra.gmra.mxu0 %vm8252_vm12, %v1487_v39  ;;  %v1490_v54 = vpack.c.bf16 %v8261_v53, %v8260_v38  ;;  %vm8263_vm8 = vmmov %vm8262_vm5  ;;  %v1679_v39 = vsel %vm8234_vm2, %v5892_v6, 0.0  ;;  %v1680_v6 = vsel %vm8272_vm10, %v5866_v9, 0.0  ;;  %v1684_v9 = vsel %vm8238_vm1, %v5929_v40, 0.0 }
  0xf4   : > { %4884 = vmatpush3.bf16.msra.mxu0 %v1951_v23  ;;  %4853 = vmatprep.mubr.msk.bf16.mxu0 %vm8253_vm14, %v1488_v61  ;;  %vm8258_vm14 = vmmov %vm8252_vm12  ;;  %v1691_v23 = vpack.c.bf16 %v1677_v35, %v1676_v44  ;;  %v1692_v33 = vpack.c.bf16 %v1679_v39, %v1678_v1  ;;  %v8266_v61 = vld [vmem:[#allocation33_spill] sm:$0xff]  ;;  %vm8286_vm1 = vcmp.lt.s32.totalorder %v5294_v63, 7  ;;  %v8290_v44 = vld [vmem:[#allocation39_spill] sm:$0xff] }
  0xf5   : > { %5107 = vmatprep.subr.msk.bf16.mxu0 %vm8256_vm0, %v5161_v31  ;;  %v1491_v59 = vpack.c.bf16 %v8266_v61, %v8265_v49  ;;  %v8292_v35 = vld [vmem:[#allocation43_spill] sm:$0xff]  ;;  %v8297_v39 = vld [vmem:[#allocation9_spill] sm:$0xff]  ;;  %v8305_v49 = vld [vmem:[#allocation68_spill] sm:$0xff] }
  0xf6   : > { %v8307_v61 = vld [vmem:[#allocation51_spill] sm:$0xff] }
  0xf9   : > { %4844 = vmatmul.mubr.msk.bf16.gmra.mxu1 %vm8258_vm14, %v1337_v0 }
  0xfa   : > { %4867 = vmatprep.mubr.msk.bf16.mxu1 %vm8252_vm12, %v1690_v14  ;;  %v8277_v14 = vld [vmem:[#allocation58_spill] sm:$0xff] }
  0xfb   : > { %4854 = vmatmul.mubr.msk.bf16.gmra.mxu0 %vm8262_vm5, %v1489_v51  ;;  %vm8264_vm5 = vmmov %vm8256_vm0  ;;  %v1493_v57 = vpack.c.bf16 %v8277_v14, %v5457_v18  ;;  %v8282_v18 = vld [vmem:[#allocation66_spill] sm:$0xff]  ;;  %v1657_v38 = vrot.slane %v8277_v14, 1 }
  0xfc   : > { %4857 = vmatprep.mubr.msk.bf16.mxu0 %vm8263_vm8, %v1490_v54  ;;  %v2107_v62 = vsel %vm8264_vm5, %v6022_v28, 0  ;;  %vm8267_vm0 = vmmov %vm8263_vm8  ;;  %vm8273_vm5 = vnez %v8118_v29  ;;  %v8287_v54 = vld [vmem:[#allocation35_spill] sm:$0xff] }
  0xfd   : > { %vm8270_vm14 = vmmov %vm8267_vm0  ;;  %v1681_v4 = vsel %vm8273_vm5, %v5898_v22, 0.0  ;;  %v8280_v22 = vld [vmem:[#allocation65_spill] sm:$0xff] }
  0xfe   : > { %vm8271_vm12 = vmmov %vm8267_vm0  ;;  %v1693_v2 = vpack.c.bf16 %v1681_v4, %v1680_v6  ;;  %v8312_v6 = vld [vmem:[#allocation20_spill] sm:$0xff] }
  0xff   : > { %vm8278_vm10 = vmmov %vm8271_vm12 }
 0x100   : > { %vm8279_vm5 = vmmov %vm8278_vm10 }
 0x101   : > { %4868 = vmatmul.mubr.msk.bf16.vlgmr.msra.gmra.mxu1 %vm8263_vm8, %v1691_v23  ;;  %vm8274_vm8 = vnez %v8137_v7  ;;  %v8300_v23 = vld [vmem:[#allocation42_spill] sm:$0xff] }
 0x102   : > { %4871 = vmatprep.mubr.msk.bf16.mxu1 %vm8267_vm0, %v1692_v33  ;;  %4902 = vmatpush3.bf16.msra.mxu1 %v2107_v62  ;;  %v1682_v28 = vsel %vm8274_vm8, %v5870_v10, 0.0  ;;  %vm8275_vm0 = vnez %v8141_v30  ;;  %v1685_v10 = vsel %vm5874_vm9, %v5974_v56, 0.0  ;;  %v1658_v56 = vsel %vm8286_vm1, %v5940_v11, %v1657_v38  ;;  %vm8288_vm9 = vmmov %vm8286_vm1  ;;  %v8301_v62 = vld [vmem:[#allocation12_spill] sm:$0xff] }
 0x103   : > { %4858 = vmatmul.mubr.msk.bf16.gmra.mxu0 %vm8270_vm14, %v1491_v59  ;;  %v1683_v0 = vsel %vm8275_vm0, %v5925_v26, 0.0  ;;  %vm8276_vm14 = vmmov %vm8271_vm12  ;;  %v1695_v53 = vpack.c.bf16 %v1685_v10, %v1684_v9  ;;  %v8303_v33 = vld [vmem:[#allocation16_spill] sm:$0xff]  ;;  %v8308_v59 = vrot.slane %v8307_v61, 7 }
 0x104   : > { %4861 = vmatprep.mubr.msk.bf16.mxu0 %vm8271_vm12, %v1492_v42  ;;  %v1694_v45 = vpack.c.bf16 %v1683_v0, %v1682_v28  ;;  %v8314_v28 = vld [vmem:[#allocation32_spill] sm:$0xff]  ;;  %v8318_v0 = vld [vmem:[#allocation37_spill] sm:$0xff] }
 0x109   : > { %4872 = vmatmul.mubr.msk.bf16.gmra.mxu1 %vm8276_vm14, %v1693_v2  ;;  %vm8281_vm14 = vnez %v8280_v22  ;;  %v8320_v2 = vld [vmem:[#allocation50_spill] sm:$0xff] }
 0x10a   : > { %4875 = vmatprep.mubr.msk.bf16.mxu1 %vm8271_vm12, %v1694_v45  ;;  %v1686_v26 = vsel %vm8281_vm14, %v5945_v37, 0.0  ;;  %vm8283_vm12 = vnez %v8282_v18  ;;  %v1673_v37 = vsel %vm8288_vm9, %v1657_v38, %v8287_v54  ;;  %v2073_v45 = vpack.c.bf16 %v8307_v61, %v8277_v14 }
 0x10b   : > { %4862 = vmatmul.mubr.msk.bf16.gmra.mxu0 %vm8278_vm10, %v1493_v57  ;;  %v1687_v51 = vsel %vm8283_vm12, %v6038_v3, 0.0  ;;  %vm8284_vm10 = vmmov %vm8279_vm5  ;;  %v8326_v57 = vld [vmem:[#allocation69_spill] sm:$0xff]  ;;  %v2266_v9 = vsel %vm8281_vm14, %v6038_v3, 0.0  ;;  %v2267_v10 = vsel %vm8283_vm12, %v1658_v56, 0.0 }
 0x10c   : > { %4885 = vmatprep.mubr.msk.bf16.mxu0 %vm8279_vm5, %v5988_v36  ;;  %v1696_v36 = vpack.c.bf16 %v1687_v51, %v1686_v26  ;;  %vm8285_vm5 = vcmask 1045504   ;;  %vm8289_vm8 = vmmov %vm8284_vm10  ;;  %v2276_v26 = vpack.c.bf16 %v2267_v10, %v2266_v9  ;;  %v8331_v51 = vld [vmem:[#allocation36_spill] sm:$0xff] }
 0x10d   : > { %v2311_v40 = vsel %vm8285_vm5, %v5161_v31, 0  ;;  %vm8291_vm0 = vmmov %vm8289_vm8  ;;  %vm8295_vm5 = vnez %v8193_v12 }
 0x10e   : > { %vm8293_vm15 = vmmov %vm8291_vm0  ;;  %v1689_v1 = vsel %vm8295_vm5, %v1673_v37, 0.0 }
 0x10f   : > { %vm8296_vm1 = vmmov %vm8291_vm0 }
 0x110   : > { %vm8298_vm9 = vmmov %vm8291_vm0 }
 0x111   : > { %4876 = vmatmul.mubr.msk.bf16.gmra.mxu1 %vm8284_vm10, %v1695_v53  ;;  %vm8294_vm10 = vnez %v8176_v21  ;;  %vm8304_vm2 = vmmov %vm8291_vm0 }
 0x112   : > { %4879 = vmatprep.mubr.msk.bf16.mxu1 %vm8289_vm8, %v1696_v36  ;;  %v1688_v31 = vsel %vm8294_vm10, %v1658_v56, 0.0  ;;  %vm8299_vm8 = vmmov %vm8291_vm0 }
 0x113   : > { %4886 = vmatmul.mubr.msk.bf16.vlgmr.msra.gmra.mxu0 %vm8291_vm0, %v8290_v44  ;;  %v1697_v11 = vpack.c.bf16 %v1689_v1, %v1688_v31  ;;  %vm8306_vm13 = vmmov %vm8291_vm0 }
 0x114   : > { %4920 = vmatpush3.bf16.msra.mxu0 %v2311_v40  ;;  %4889 = vmatprep.mubr.msk.bf16.mxu0 %vm8293_vm15, %v8292_v35  ;;  %vm8302_vm15 = vmmov %vm8291_vm0 }
 0x119   : > { %4880 = vmatmul.mubr.msk.bf16.gmra.mxu1 %vm8296_vm1, %v1697_v11  ;;  %vm8309_vm1 = vcmp.lt.s32.totalorder %v5294_v63, 1 }
 0x11a   : > { %4903 = vmatprep.mubr.msk.bf16.mxu1 %vm8298_vm9, %v8297_v39  ;;  %v1878_v34 = vsel %vm8309_vm1, %v5806_v32, %v8308_v59  ;;  %vm8311_vm9 = vmmov %vm8291_vm0  ;;  %v8317_v32 = vld [vmem:[#allocation52_spill] sm:$0xff] }
 0x11b   : > { %4890 = vmatmul.mubr.msk.bf16.gmra.mxu0 %vm8299_vm8, %v6040_v41  ;;  %v1908_v41 = vsel %vm8254_vm4, %v6157_v52, 0.0  ;;  %v1909_v42 = vsel %vm8255_vm7, %v1878_v34, 0.0  ;;  %vm8316_vm8 = vmmov %vm8291_vm0  ;;  %v8322_v52 = vld [vmem:[#allocation55_spill] sm:$0xff] }
 0x11c   : > { %4893 = vmatprep.mubr.msk.bf16.mxu0 %vm8291_vm0, %v8300_v23  ;;  %v1917_v4 = vpack.c.bf16 %v1909_v42, %v1908_v41  ;;  %vm8321_vm1 = vmmov %vm8291_vm0 }
 0x121   : > { %4904 = vmatmul.mubr.msk.bf16.vlgmr.msra.gmra.mxu1 %vm8302_vm15, %v8301_v62  ;;  %vm8319_vm15 = vmmov %vm8291_vm0 }
 0x122   : > { %4907 = vmatprep.mubr.msk.bf16.mxu1 %vm8304_vm2, %v8303_v33  ;;  %vm8313_vm2 = vmmov %vm8291_vm0 }
 0x123   : > { %4894 = vmatmul.mubr.msk.bf16.gmra.mxu0 %vm8306_vm13, %v8305_v49  ;;  %vm8315_vm13 = vmmov %vm8291_vm0 }
 0x124   : > { %4897 = vmatprep.mubr.msk.bf16.mxu0 %vm8311_vm9, %v8310_v27  ;;  %vm8323_vm9 = vmmov %vm8291_vm0 }
 0x129   : > { %4908 = vmatmul.mubr.msk.bf16.gmra.mxu1 %vm8313_vm2, %v8312_v6  ;;  %vm8324_vm2 = vmmov %vm8291_vm0 }
 0x12a   : > { %4911 = vmatprep.mubr.msk.bf16.mxu1 %vm8315_vm13, %v8314_v28  ;;  %vm8325_vm13 = vmmov %vm8291_vm0 }
 0x12b   : > { %4898 = vmatmul.mubr.msk.bf16.gmra.mxu0 %vm8316_vm8, %v1917_v4  ;;  %vm8327_vm8 = vmmov %vm8291_vm0 }
 0x12c   : > { %4921 = vmatprep.mubr.msk.bf16.mxu0 %vm8291_vm0, %v8317_v32 }
 0x131   : > { %4912 = vmatmul.mubr.msk.bf16.gmra.mxu1 %vm8319_vm15, %v8318_v0  ;;  %vm8328_vm15 = vmmov %vm8291_vm0 }
 0x132   : > { %4915 = vmatprep.mubr.msk.bf16.mxu1 %vm8321_vm1, %v8320_v2  ;;  %vm8329_vm1 = vcmp.lt.s32.totalorder %v5294_v63, 7 }
 0x133   : > { %4922 = vmatmul.mubr.msk.bf16.vlgmr.msra.gmra.mxu0 %vm8323_vm9, %v8322_v52  ;;  %vm8330_vm9 = vmmov %vm8291_vm0 }
 0x134   : > { %4925 = vmatprep.mubr.msk.bf16.mxu0 %vm8324_vm2, %v6110_v60  ;;  %v2237_v60 = vrot.slane %v8307_v61, 1  ;;  %vm8332_vm2 = vmmov %vm8329_vm1 }
 0x136   : > { %v2238_v14 = vsel %vm8329_vm1, %v1657_v38, %v2237_v60 }
 0x137   : > { %v2268_v3 = vsel %vm8294_vm10, %v2238_v14, 0.0  ;;  %v5163_v14 = vld [vmem:[%s7736_s5] sm:$0xff]  }
 0x138   : > { %4955 = vmatprep.subr.bf16.mxu0 %v5163_v14 }
 0x139   : > { %4916 = vmatmul.mubr.msk.bf16.gmra.mxu1 %vm8325_vm13, %v2073_v45  ;;  %vm8333_vm13 = vmmov %vm8291_vm0  ;;  %4956 = vmatpush3.bf16.msra.mxu0 %v5163_v14 }
 0x13b   : > { %4926 = vmatmul.mubr.msk.bf16.gmra.mxu0 %vm8327_vm8, %v8326_v57  ;;  %vm8384_vm8 = vcmask 130048  }
 0x13c   : > { %4929 = vmatprep.mubr.msk.bf16.mxu0 %vm8291_vm0, %v6120_v19  ;;  %v2253_v19 = vsel %vm8332_vm2, %v2237_v60, %v8331_v51  ;;  %vm8388_vm0 = vmmov %vm8384_vm8 }
 0x13d   : > { %v2269_v53 = vsel %vm8295_vm5, %v2253_v19, 0.0  ;;  %vm8396_vm1 = vmmov %vm8388_vm0 }
 0x13e   : > { %v2277_v36 = vpack.c.bf16 %v2269_v53, %v2268_v3  ;;  %v6348_v3 = vld [vmem:[%s7736_s5 + $0x10] sm:$0xff]   ;;  %vm8404_vm2 = vmmov %vm8388_vm0 }
 0x13f   : > { %8334 = vst [vmem:[#allocation6_spill] sm:$0xff] %v6348_v3 }
 0x143   : > { %4930 = vmatmul.mubr.msk.bf16.gmra.mxu0 %vm8328_vm15, %v6129_v20  ;;  %v5162_v20 = vld [vmem:[%s7736_s5 + $0x8] sm:$0xff]   ;;  %vm8392_vm15 = vmmov %vm8388_vm0 }
 0x144   : > { %4933 = vmatprep.mubr.msk.bf16.mxu0 %vm8330_vm9, %v2276_v26  ;;  %4937 = vmatprep.subr.bf16.mxu1 %v5162_v20  ;;  %vm8400_vm9 = vmmov %vm8388_vm0 }
 0x145   : > { %4938 = vmatpush3.bf16.msra.mxu1 %v5162_v20 }
 0x146   : > { %4973 = vmatprep.subr.bf16.mxu1 %v6348_v3 }
 0x14b   : > { %4934 = vmatmul.mubr.msk.bf16.gmra.mxu0 %vm8333_vm13, %v2277_v36  ;;  %vm8407_vm13 = vmmov %vm8388_vm0 }
 0x158   : > { %v4779_v38 = vpop.f32.mrf.mxu0 }
 0x15a   : > { %v869_v40 = vpop.f32.mrf.mxu0 }
 0x15c   : > { %v4780_v56 = vpop.f32.mrf.mxu0 }
 0x15e   : > { %v6328_v54 = vpop.f32.mrf.mxu0 }
 0x160   : > { %v4783_v37 = vpop.f32.mrf.mxu0 }
 0x162   : > { %v885_v44 = vpop.f32.mrf.mxu0 }
 0x164   : > { %v4784_v35 = vpop.f32.mrf.mxu0 }
 0x166   : > { %v6330_v31 = vpop.f32.mrf.mxu0  ;;  %v4797_v1 = vpop.f32.mrf.mxu1 }
 0x167   : > { %v1007_v11 = vadd.f32 %v4797_v1, %v4779_v38 }
 0x168   : > { %v4787_v39 = vpop.f32.mrf.mxu0  ;;  %v998_v23 = vpop.f32.mrf.mxu1 }
 0x169   : > { %v999_v62 = vadd.f32 %v998_v23, %v869_v40 }
 0x16a   : > { %v901_v33 = vpop.f32.mrf.mxu0  ;;  %v4798_v49 = vpop.f32.mrf.mxu1 }
 0x16b   : > { %v1010_v61 = vadd.f32 %v4798_v49, %v4780_v56 }
 0x16c   : > { %v4788_v59 = vpop.f32.mrf.mxu0  ;;  %v6332_v34 = vpop.f32.mrf.mxu1 }
 0x16e   : > { %v6334_v27 = vpop.f32.mrf.mxu0 }
 0x174   : > { %v4801_v41 = vpop.f32.mrf.mxu1 }
 0x175   : > { %v1023_v42 = vadd.f32 %v4801_v41, %v4783_v37 }
 0x176   : > { %v1014_v4 = vpop.f32.mrf.mxu1 }
 0x177   : > { %v1015_v28 = vadd.f32 %v1014_v4, %v885_v44 }
 0x178   : > { %v4791_v6 = vpop.f32.mrf.mxu0  ;;  %v4802_v0 = vpop.f32.mrf.mxu1 }
 0x179   : > { %v1026_v2 = vadd.f32 %v4802_v0, %v4784_v35 }
 0x17a   : > { %v917_v32 = vpop.f32.mrf.mxu0  ;;  %v6336_v45 = vpop.f32.mrf.mxu1 }
 0x17c   : > { %v4792_v52 = vpop.f32.mrf.mxu0 }
 0x17e   : > { %v6338_v57 = vpop.f32.mrf.mxu0 }
 0x183   : > { %v4805_v9 = vpop.f32.mrf.mxu1 }
 0x184   : > { %v1039_v10 = vadd.f32 %v4805_v9, %v4787_v39 }
 0x185   : > { %v4815_v60 = vpop.f32.mrf.mxu0  ;;  %v1030_v26 = vpop.f32.mrf.mxu1 }
 0x186   : > { %v6343_v51 = vadd.f32 %v4815_v60, %v1007_v11  ;;  %v1031_v19 = vadd.f32 %v1030_v26, %v901_v33 }
 0x187   : > { %v1187_v53 = vpop.f32.mrf.mxu0  ;;  %v4806_v36 = vpop.f32.mrf.mxu1 }
 0x188   : > { %v6350_v20 = vadd.f32 %v1187_v53, %v999_v62  ;;  %v1042_v38 = vadd.f32 %v4806_v36, %v4788_v59 }
 0x189   : > { %v4816_v40 = vpop.f32.mrf.mxu0  ;;  %v6353_v56 = vpop.f32.mrf.mxu1 }
 0x18a   : > { %v6355_v37 = vadd.f32 %v4816_v40, %v1010_v61 }
 0x18b   : > { %v6357_v44 = vpop.f32.mrf.mxu0 }
 0x190   : > { %v4809_v35 = vpop.f32.mrf.mxu1 }
 0x191   : > { %v1055_v1 = vadd.f32 %v4809_v35, %v4791_v6 }
 0x192   : > { %v4819_v11 = vpop.f32.mrf.mxu0  ;;  %v1046_v39 = vpop.f32.mrf.mxu1 }
 0x193   : > { %v6359_v23 = vadd.f32 %v4819_v11, %v1023_v42  ;;  %v1047_v33 = vadd.f32 %v1046_v39, %v917_v32 }
 0x194   : > { %v1203_v62 = vpop.f32.mrf.mxu0  ;;  %v4810_v49 = vpop.f32.mrf.mxu1 }
 0x195   : > { %v6361_v59 = vadd.f32 %v1203_v62, %v1015_v28  ;;  %v1058_v41 = vadd.f32 %v4810_v49, %v4792_v52  ;;  %v6382_v52 = vld [vmem:[%s7736_s5 + $0x18] sm:$0xff]  }
 0x196   : > { %v4820_v4 = vpop.f32.mrf.mxu0  ;;  %v6363_v0 = vpop.f32.mrf.mxu1  ;;  %8335 = vst [vmem:[#allocation7_spill] sm:$0xff] %v6382_v52  ;;  %4991 = vmatprep.subr.bf16.mxu0 %v6382_v52 }
 0x197   : > { %v6365_v9 = vadd.f32 %v4820_v4, %v1026_v2 }
 0x198   : > { %v6367_v61 = vpop.f32.mrf.mxu0 }
 0x19d   : > { %v6369_v60 = vpop.f32.mrf.mxu1 }
 0x19f   : > { %v4823_v6 = vpop.f32.mrf.mxu0  ;;  %v6371_v26 = vpop.f32.mrf.mxu1 }
 0x1a0   : > { %v6373_v42 = vadd.f32 %v4823_v6, %v1039_v10 }
 0x1a1   : > { %v1219_v32 = vpop.f32.mrf.mxu0  ;;  %v6375_v14 = vpop.f32.mrf.mxu1 }
 0x1a2   : > { %v6377_v28 = vadd.f32 %v1219_v32, %v1031_v19 }
 0x1a3   : > { %v4824_v2 = vpop.f32.mrf.mxu0  ;;  %v6384_v53 = vpop.f32.mrf.mxu1 }
 0x1a4   : > { %v6386_v36 = vadd.f32 %v4824_v2, %v1042_v38 }
 0x1a5   : > { %v6389_v40 = vpop.f32.mrf.mxu0 }
 0x1a9   : > { %v6391_v10 = vpop.f32.mrf.mxu1 }
 0x1ab   : > { %v4827_v35 = vpop.f32.mrf.mxu0  ;;  %v6393_v11 = vpop.f32.mrf.mxu1 }
 0x1ac   : > { %v6395_v19 = vadd.f32 %v4827_v35, %v1055_v1 }
 0x1ad   : > { %v1235_v39 = vpop.f32.mrf.mxu0  ;;  %v6397_v62 = vpop.f32.mrf.mxu1 }
 0x1ae   : > { %v6399_v49 = vadd.f32 %v1235_v39, %v1047_v33 }
 0x1af   : > { %v4828_v4 = vpop.f32.mrf.mxu0  ;;  %v6401_v6 = vpop.f32.mrf.mxu1 }
 0x1b0   : > { %v6403_v38 = vadd.f32 %v4828_v4, %v1058_v41 }
 0x1b1   : > { %v6405_v32 = vpop.f32.mrf.mxu0  ;;  %v6407_v2 = vpop.f32.mrf.mxu1 }
 0x1b3   : > { %v4851_v12 = vpop.f32.mrf.mxu0  ;;  %v6409_v21 = vpop.f32.mrf.mxu1 }
 0x1b5   : > { %v6411_v22 = vpop.f32.mrf.mxu0  ;;  %v6413_v1 = vpop.f32.mrf.mxu1 }
 0x1b7   : > { %v6415_v35 = vpop.f32.mrf.mxu0  ;;  %v6417_v33 = vpop.f32.mrf.mxu1 }
 0x1b9   : > { %v6419_v39 = vpop.f32.mrf.mxu0  ;;  %v6421_v18 = vpop.f32.mrf.mxu1 }
 0x1bb   : > { %v6423_v41 = vpop.f32.mrf.mxu0  ;;  %v6425_v4 = vpop.f32.mrf.mxu1 }
 0x1bd   : > { %v6427_v46 = vpop.f32.mrf.mxu0  ;;  %v6429_v47 = vpop.f32.mrf.mxu1 }
 0x1bf   : > { %v6431_v7 = vpop.f32.mrf.mxu0  ;;  %v6433_v58 = vpop.f32.mrf.mxu1 }
 0x1c0   : > { %8336 = vst [vmem:[#allocation8_spill] sm:$0xff] %v6431_v7  ;;  %8337 = vst [vmem:[#allocation10_spill] sm:$0xff] %v6433_v58 }
 0x1c1   : > { %v6435_v16 = vpop.f32.mrf.mxu0  ;;  %v4869_v29 = vpop.f32.mrf.mxu1 }
 0x1c2   : > { %8338 = vst [vmem:[#allocation25_spill] sm:$0xff] %v6435_v16 }
 0x1c3   : > { %v6437_v30 = vpop.f32.mrf.mxu0  ;;  %v6439_v24 = vpop.f32.mrf.mxu1 }
 0x1c4   : > { %8339 = vst [vmem:[#allocation11_spill] sm:$0xff] %v6437_v30 }
 0x1c5   : > { %v6441_v50 = vpop.f32.mrf.mxu0  ;;  %v6443_v17 = vpop.f32.mrf.mxu1 }
 0x1c6   : > { %8340 = vst [vmem:[#allocation46_spill] sm:$0xff] %v6441_v50 }
 0x1c7   : > { %v6445_v8 = vpop.f32.mrf.mxu0  ;;  %v6447_v43 = vpop.f32.mrf.mxu1 }
 0x1c8   : > { %8341 = vst [vmem:[#allocation17_spill] sm:$0xff] %v6445_v8 }
 0x1c9   : > { %v6449_v15 = vpop.f32.mrf.mxu0  ;;  %v6451_v25 = vpop.f32.mrf.mxu1 }
 0x1ca   : > { %8342 = vst [vmem:[#allocation18_spill] sm:$0xff] %v6449_v15  ;;  %8343 = vst [vmem:[#allocation30_spill] sm:$0xff] %v6451_v25 }
 0x1cb   : > { %v6453_v5 = vpop.f32.mrf.mxu0  ;;  %v6455_v13 = vpop.f32.mrf.mxu1 }
 0x1cc   : > { %8344 = vst [vmem:[#allocation31_spill] sm:$0xff] %v6453_v5  ;;  %8345 = vst [vmem:[#allocation33_spill] sm:$0xff] %v6455_v13 }
 0x1cd   : > { %v6457_v52 = vpop.f32.mrf.mxu0  ;;  %v6459_v55 = vpop.f32.mrf.mxu1 }
 0x1ce   : > { %8346 = vst [vmem:[#allocation34_spill] sm:$0xff] %v6457_v52  ;;  %8347 = vst [vmem:[#allocation45_spill] sm:$0xff] %v6459_v55 }
 0x1cf   : > { %v6461_v48 = vpop.f32.mrf.mxu0  ;;  %v6463_v63 = vpop.f32.mrf.mxu1 }
 0x1d0   : > { %8348 = vst [vmem:[#allocation58_spill] sm:$0xff] %v6461_v48  ;;  %8349 = vst [vmem:[#allocation35_spill] sm:$0xff] %v6463_v63 }
 0x1d1   : > { %v6465_v3 = vpop.f32.mrf.mxu0  ;;  %v6467_v8 = vpop.f32.mrf.mxu1 }
 0x1d2   : > { %8350 = vst [vmem:[#allocation39_spill] sm:$0xff] %v6465_v3  ;;  %8351 = vst [vmem:[#allocation43_spill] sm:$0xff] %v6467_v8 }
 0x1d3   : > { %v4887_v50 = vpop.f32.mrf.mxu0  ;;  %v6469_v15 = vpop.f32.mrf.mxu1 }
 0x1d4   : > { %8352 = vst [vmem:[#allocation9_spill] sm:$0xff] %v6469_v15 }
 0x1d5   : > { %v1987_v30 = vpop.f32.mrf.mxu0  ;;  %v6471_v16 = vpop.f32.mrf.mxu1 }
 0x1d6   : > { %8353 = vst [vmem:[#allocation42_spill] sm:$0xff] %v6471_v16 }
 0x1d7   : > { %v6473_v5 = vpop.f32.mrf.mxu0  ;;  %v6475_v13 = vpop.f32.mrf.mxu1 }
 0x1d8   : > { %8354 = vst [vmem:[#allocation12_spill] sm:$0xff] %v6475_v13 }
 0x1d9   : > { %v6477_v52 = vpop.f32.mrf.mxu0  ;;  %v6479_v55 = vpop.f32.mrf.mxu1 }
 0x1da   : > { %8355 = vst [vmem:[#allocation16_spill] sm:$0xff] %v6477_v52  ;;  %8356 = vst [vmem:[#allocation68_spill] sm:$0xff] %v6479_v55 }
 0x1db   : > { %v6481_v48 = vpop.f32.mrf.mxu0  ;;  %v6483_v63 = vpop.f32.mrf.mxu1 }
 0x1dc   : > { %8357 = vst [vmem:[#allocation51_spill] sm:$0xff] %v6481_v48  ;;  %8358 = vst [vmem:[#allocation4_spill] sm:$0xff] %v6483_v63 }
 0x1dd   : > { %v6485_v3 = vpop.f32.mrf.mxu0  ;;  %v6487_v8 = vpop.f32.mrf.mxu1 }
 0x1de   : > { %8359 = vst [vmem:[#allocation20_spill] sm:$0xff] %v6485_v3  ;;  %8360 = vst [vmem:[#allocation32_spill] sm:$0xff] %v6487_v8 }
 0x1df   : > { %v6489_v15 = vpop.f32.mrf.mxu0  ;;  %v6491_v58 = vpop.f32.mrf.mxu1 }
 0x1e0   : > { %8361 = vst [vmem:[#allocation52_spill] sm:$0xff] %v6489_v15  ;;  %8362 = vst [vmem:[#allocation37_spill] sm:$0xff] %v6491_v58  ;;  %v1472_v58 = vadd.f32 %v6369_v60, %v6343_v51  ;;  %v1050_v51 = vadd.f32 %v6363_v0, %v6338_v57  ;;  %v1474_v57 = vadd.f32 %v6393_v11, %v6361_v59 }
 0x1e1   : > { %v6493_v16 = vpop.f32.mrf.mxu0  ;;  %v4905_v7 = vpop.f32.mrf.mxu1  ;;  %v8371_v11 = vld [vmem:[#allocation16_spill] sm:$0xff] }
 0x1e2   : > { %8363 = vst [vmem:[#allocation50_spill] sm:$0xff] %v6493_v16  ;;  %v1002_v16 = vadd.f32 %v6332_v34, %v6328_v54 }
 0x1e3   : > { %v6495_v13 = vpop.f32.mrf.mxu0  ;;  %v2143_v52 = vpop.f32.mrf.mxu1 }
 0x1e4   : > { %8364 = vst [vmem:[#allocation55_spill] sm:$0xff] %v6495_v13 }
 0x1e5   : > { %v6497_v25 = vpop.f32.mrf.mxu0  ;;  %v4906_v55 = vpop.f32.mrf.mxu1 }
 0x1e6   : > { %8365 = vst [vmem:[#allocation69_spill] sm:$0xff] %v6497_v25  ;;  %v1018_v25 = vadd.f32 %v6336_v45, %v6330_v31  ;;  %v1473_v31 = vadd.f32 %v6375_v14, %v6355_v37  ;;  %v1478_v37 = vadd.f32 %v6409_v21, %v6377_v28  ;;  %v6571_v14 = vld [vmem:[%s7734_s3] ss:$0 sm:$0xff] }
 0x1e7   : > { %v6499_v48 = vpop.f32.mrf.mxu0  ;;  %v6501_v63 = vpop.f32.mrf.mxu1 }
 0x1e8   : > { %8366 = vst [vmem:[#allocation36_spill] sm:$0xff] %v6499_v48  ;;  %8367 = vst [vmem:[#allocation70_spill] sm:$0xff] %v6501_v63  ;;  %v1470_v48 = vadd.f32 %v6371_v26, %v6350_v20  ;;  %v1628_v63 = vadd.f32 %v4851_v12, %v1472_v58  ;;  %v1255_v60 = vadd.f32 %v6367_v61, %v1018_v25 }
 0x1e9   : > { %v6503_v3 = vpop.f32.mrf.mxu0  ;;  %v6505_v8 = vpop.f32.mrf.mxu1  ;;  %v1477_v25 = vadd.f32 %v6397_v62, %v6365_v9  ;;  %v1481_v9 = vadd.f32 %v6413_v1, %v6386_v36  ;;  %v6565_v26 = vadd.f32 %v6421_v18, %v6395_v19  ;;  %v1630_v18 = vadd.f32 %v6427_v46, %v1474_v57 }
 0x1ea   : > { %8368 = vst [vmem:[#allocation71_spill] sm:$0xff] %v6503_v3  ;;  %8369 = vst [vmem:[#allocation72_spill] sm:$0xff] %v6505_v8  ;;  %v1034_v3 = vadd.f32 %v6353_v56, %v6334_v27  ;;  %v1251_v8 = vadd.f32 %v6357_v44, %v1002_v16  ;;  %v1626_v45 = vadd.f32 %v6411_v22, %v1470_v48 }
 0x1eb   : > { %v6511_v15 = vpop.f32.mrf.mxu0  ;;  %v6513_v13 = vpop.f32.mrf.mxu1  ;;  %v1832_v58 = vadd.f32 %v4869_v29, %v1628_v63  ;;  %v1476_v16 = vadd.f32 %v6391_v10, %v6359_v23  ;;  %v1629_v48 = vadd.f32 %v6415_v35, %v1473_v31  ;;  %v1263_v22 = vadd.f32 %v6405_v32, %v1050_v51  ;;  %v8375_v35 = vld [vmem:[#allocation51_spill] sm:$0xff]  ;;  %v8377_v31 = vld [vmem:[#allocation25_spill] sm:$0xff] }
 0x1ec   : > { %v1471_v12 = vadd.f32 %v6384_v53, %v1251_v8  ;;  %v1259_v27 = vadd.f32 %v6389_v40, %v1034_v3  ;;  %v1830_v63 = vadd.f32 %v6439_v24, %v1626_v45  ;;  %v1475_v8 = vadd.f32 %v6401_v6, %v1255_v60  ;;  %v8370_v40 = vld [vmem:[#allocation30_spill] sm:$0xff]  ;;  %v8372_v6 = vld [vmem:[#allocation8_spill] sm:$0xff] }
 0x1ed   : > { %v6524_v54 = vpop.f32.mrf.mxu0  ;;  %v6526_v34 = vpop.f32.mrf.mxu1  ;;  %v2052_v29 = vadd.f32 %v4887_v50, %v1832_v58  ;;  %v1480_v3 = vadd.f32 %v6407_v2, %v6373_v42  ;;  %v1833_v0 = vadd.f32 %v6443_v17, %v1629_v48  ;;  %v1632_v21 = vadd.f32 %v6423_v41, %v1476_v16  ;;  %v8374_v2 = vld [vmem:[#allocation33_spill] sm:$0xff] }
 0x1ee   : > { %v1627_v59 = vadd.f32 %v6419_v39, %v1471_v12  ;;  %v2050_v24 = vadd.f32 %v1987_v30, %v1830_v63  ;;  %v6561_v61 = vadd.f32 %v6417_v33, %v1259_v27  ;;  %v6577_v53 = vadd.f32 %v6425_v4, %v6399_v49  ;;  %v8378_v58 = vld [vmem:[#allocation45_spill] sm:$0xff]  ;;  %v8379_v27 = vld [vmem:[#allocation20_spill] sm:$0xff] }
 0x1ef   : > { %v6538_v20 = vpop.f32.mrf.mxu0  ;;  %v6540_v56 = vpop.f32.mrf.mxu1  ;;  %v2208_v50 = vadd.f32 %v4905_v7, %v2052_v29  ;;  %v2053_v7 = vadd.f32 %v6473_v5, %v1833_v0  ;;  %v6582_v36 = vadd.f32 %v6429_v47, %v6403_v38  ;;  %v1836_v10 = vadd.f32 %v8370_v40, %v1632_v21  ;;  %v8373_v47 = vld [vmem:[#allocation10_spill] sm:$0xff]  ;;  %v8382_v21 = vld [vmem:[#allocation35_spill] sm:$0xff] }
 0x1f0   : > { %v1831_v30 = vadd.f32 %v6447_v43, %v1627_v59  ;;  %v2206_v17 = vadd.f32 %v2143_v52, %v2050_v24  ;;  %v6588_v43 = vld [vmem:[%s7735_s4] ss:$0 sm:$0xff]  ;;  %v1633_v32 = vadd.f32 %v8372_v6, %v1477_v25  ;;  %v6596_v38 = vadd.f32 %v8373_v47, %v1263_v22  ;;  %v8376_v41 = vld [vmem:[#allocation70_spill] sm:$0xff]  ;;  %v8381_v24 = vld [vmem:[#allocation11_spill] sm:$0xff] }
 0x1f1   : > { %v6552_v44 = vpop.f32.mrf.mxu0  ;;  %v6554_v23 = vpop.f32.mrf.mxu1  ;;  %v2209_v62 = vadd.f32 %v4906_v55, %v2053_v7  ;;  %v1834_v1 = vadd.f32 %v8374_v2, %v1630_v18  ;;  %v2056_v33 = vadd.f32 %v8375_v35, %v1836_v10  ;;  %v1631_v45 = vadd.f32 %v8377_v31, %v1475_v8  ;;  %v8380_v57 = vld [vmem:[#allocation72_spill] sm:$0xff]  ;;  %v8389_v35 = vld [vmem:[#allocation17_spill] sm:$0xff] }
 0x1f2   : > { %v2051_v19 = vadd.f32 %v8371_v11, %v1831_v30  ;;  %v1837_v12 = vadd.f32 %v8378_v58, %v1633_v32  ;;  %v8383_v30 = vld [vmem:[#allocation52_spill] sm:$0xff]  ;;  %v8393_v58 = vld [vmem:[#allocation18_spill] sm:$0xff] }
 0x1f3   : > { %v4923_v42 = vpop.f32.mrf.mxu0  ;;  %v6590_v5 = vpop.f32.mrf.mxu1  ;;  %v2054_v16 = vadd.f32 %v8379_v27, %v1834_v1  ;;  %v2212_v25 = vadd.f32 %v8380_v57, %v2056_v33  ;;  %v1637_v33 = vadd.f32 %v8389_v35, %v1481_v9  ;;  %v8394_v27 = vld [vmem:[#allocation42_spill] sm:$0xff] }
 0x1f4   : > { %v2412_v28 = vadd.f32 %v4923_v42, %v2208_v50  ;;  %v2207_v4 = vadd.f32 %v8376_v41, %v2051_v19  ;;  %v1636_v50 = vadd.f32 %v8381_v24, %v1480_v3  ;;  %v1835_v42 = vadd.f32 %v8382_v21, %v1631_v45  ;;  %v8386_v19 = vld [vmem:[#allocation43_spill] sm:$0xff]  ;;  %v8387_v3 = vld [vmem:[#allocation50_spill] sm:$0xff] }
 0x1f5   : > { %v2347_v52 = vpop.f32.mrf.mxu0  ;;  %v4914_v48 = vpop.f32.mrf.mxu1  ;;  %v2057_v8 = vadd.f32 %v8383_v30, %v1837_v12  ;;  %v2210_v7 = vadd.f32 %v6513_v13, %v2054_v16  ;;  %v8391_v41 = vld [vmem:[#allocation55_spill] sm:$0xff]  ;;  %v1635_v12 = vadd.f32 %v8393_v58, %v6561_v61  ;;  %v1841_v9 = vadd.f32 %v8394_v27, %v1637_v33  ;;  %v8395_v16 = vld [vmem:[#allocation69_spill] sm:$0xff]  ;;  %v8398_v61 = vld [vmem:[#allocation34_spill] sm:$0xff] }
 0x1f6   : > { %v2435_v49 = vmul.f32 %v6571_v14, %v2412_v28  ;;  %v2410_v46 = vadd.f32 %v2347_v52, %v2206_v17  ;;  %v8385_v52 = vld [vmem:[#allocation46_spill] sm:$0xff]  ;;  %v8397_v24 = vld [vmem:[#allocation31_spill] sm:$0xff]  ;;  %v1638_v21 = vadd.f32 %v8398_v61, %v6577_v53 }
 0x1f7   : > { %v4924_v39 = vpop.f32.mrf.mxu0  ;;  %v1634_v11 = vadd.f32 %v8385_v52, %v1478_v37  ;;  %v6620_v6 = vpop.f32.mrf.mxu1  ;;  %v8390_v37 = vld [vmem:[#allocation9_spill] sm:$0xff]  ;;  %v8402_v52 = vld [vmem:[#allocation12_spill] sm:$0xff] }
 0x1f8   : > { %v2458_v51 = vadd.f32 %v6588_v43, %v2435_v49  ;;  %v2433_v60 = vmul.f32 %v6571_v14, %v2410_v46  ;;  %v2413_v55 = vadd.f32 %v4924_v39, %v2209_v62  ;;  %v1840_v62 = vadd.f32 %v8386_v19, %v1636_v50 }
 0x1f9   : > { %v2350_v63 = vpop.f32.mrf.mxu0  ;;  %v2055_v49 = vadd.f32 %v8387_v3, %v1835_v42  ;;  %v2213_v46 = vadd.f32 %v6526_v34, %v2057_v8  ;;  %v1838_v39 = vadd.f32 %v8390_v37, %v1634_v11  ;;  %v1640_v50 = vadd.f32 %v8397_v24, %v6565_v26  ;;  %v8399_v42 = vld [vmem:[#allocation36_spill] sm:$0xff]  ;;  %v8401_v26 = vld [vmem:[#allocation58_spill] sm:$0xff] }
 0x1fa   : > { %v2474_v29 = vmax.f32 %v2458_v51, 0.0  ;;  %v2456_v22 = vadd.f32 %v6588_v43, %v2433_v60  ;;  %v2436_v59 = vmul.f32 %v6571_v14, %v2413_v55  ;;  %v2411_v0 = vadd.f32 %v2350_v63, %v2207_v4  ;;  %v4917_v63 = vpop.f32.mrf.mxu1  ;;  %v8403_v11 = vld [vmem:[#allocation68_spill] sm:$0xff] }
 0x1fb   : > { %v4927_v17 = vpop.f32.mrf.mxu0  ;;  %v2060_v4 = vadd.f32 %v8391_v41, %v1840_v62  ;;  %v2211_v51 = vadd.f32 %v6540_v56, %v2055_v49  ;;  %v2058_v57 = vadd.f32 %v8395_v16, %v1838_v39  ;;  %v2061_v30 = vadd.f32 %v8399_v42, %v1841_v9 }
 0x1fc   : > { %2493 = vst.msk [vmem:[#allocation3 + $0x18] sm:$0xff] %vm8384_vm8, %v2474_v29  ;;  %v2472_v28 = vmax.f32 %v2456_v22, 0.0  ;;  %v2459_v18 = vadd.f32 %v6588_v43, %v2436_v59  ;;  %v2434_v40 = vmul.f32 %v6571_v14, %v2411_v0  ;;  %v2416_v10 = vadd.f32 %v4927_v17, %v2212_v25  ;;  %vm8410_vm8 = vmmov %vm8388_vm0 }
 0x1fd   : > { %v2363_v13 = vpop.f32.mrf.mxu0  ;;  %v2216_v25 = vadd.f32 %v6554_v23, %v2060_v4  ;;  %v2214_v23 = vadd.f32 %v6590_v5, %v2058_v57  ;;  %v1839_v53 = vadd.f32 %v8402_v52, %v1635_v12  ;;  %v1844_v19 = vadd.f32 %v8403_v11, %v1640_v50  ;;  %v2191_v5 = vpop.f32.mrf.mxu1 }
 0x1fe   : > { %2491 = vst.msk [vmem:[#allocation3 + $0x8] sm:$0xff] %vm8388_vm0, %v2472_v28  ;;  %v2475_v32 = vmax.f32 %v2459_v18, 0.0  ;;  %v2457_v47 = vadd.f32 %v6588_v43, %v2434_v40  ;;  %v2439_v2 = vmul.f32 %v6571_v14, %v2416_v10  ;;  %v2414_v1 = vadd.f32 %v2363_v13, %v2210_v7  ;;  %v6649_v40 = vld [vmem:[#allocation3] sm:$0xff] }
 0x1ff   : > { %v4928_v34 = vpop.f32.mrf.mxu0  ;;  %v1641_v10 = vadd.f32 %v8401_v26, %v6582_v36  ;;  %v2217_v62 = vadd.f32 %v4914_v48, %v2061_v30  ;;  %v8406_v36 = vld [vmem:[#allocation71_spill] sm:$0xff]  ;;  %v2064_v33 = vadd.f32 %v6511_v15, %v1844_v19  ;;  %v4918_v58 = vpop.f32.mrf.mxu1 }
 0x200   : > { %2494 = vst.msk [vmem:[#allocation3 + $0x20] sm:$0xff] %vm8392_vm15, %v2475_v32  ;;  %v2473_v60 = vmax.f32 %v2457_v47, 0.0  ;;  %v2462_v55 = vadd.f32 %v6588_v43, %v2439_v2  ;;  %v2437_v31 = vmul.f32 %v6571_v14, %v2414_v1  ;;  %v2417_v45 = vadd.f32 %v4928_v34, %v2213_v46  ;;  %v8405_v2 = vld [vmem:[#allocation4_spill] sm:$0xff]  ;;  %v8408_v34 = vld [vmem:[#allocation39_spill] sm:$0xff]  ;;  %vm8414_vm15 = vmmov %vm8388_vm0 }
 0x201   : > { %v2366_v56 = vpop.f32.mrf.mxu0  ;;  %v1842_v1 = vadd.f32 %v8405_v2, %v1638_v21  ;;  %v2059_v35 = vadd.f32 %v8406_v36, %v1839_v53  ;;  %v2220_v9 = vadd.f32 %v4917_v63, %v2064_v33  ;;  %v6690_v63 = vld [vmem:[%s7736_s5 + $0x20] sm:$0xff]   ;;  %v2194_v21 = vpop.f32.mrf.mxu1 }
 0x202   : > { %2492 = vst.msk [vmem:[#allocation3 + $0x10] sm:$0xff] %vm8396_vm1, %v2473_v60  ;;  %v2478_v29 = vmax.f32 %v2462_v55, 0.0  ;;  %v2460_v22 = vadd.f32 %v6588_v43, %v2437_v31  ;;  %v2440_v59 = vmul.f32 %v6571_v14, %v2417_v45  ;;  %v2415_v0 = vadd.f32 %v2366_v56, %v2211_v51  ;;  %v8409_v55 = vld [vmem:[#allocation32_spill] sm:$0xff]  ;;  %v8412_v56 = vld [vmem:[#allocation37_spill] sm:$0xff]  ;;  %vm8415_vm1 = vmmov %vm8388_vm0 }
 0x203   : > { %v4931_v8 = vpop.f32.mrf.mxu0  ;;  %v1639_v60 = vadd.f32 %v8408_v34, %v6596_v38  ;;  %v1845_v31 = vadd.f32 %v8409_v55, %v1641_v10  ;;  %v2062_v45 = vadd.f32 %v6524_v54, %v1842_v1  ;;  %v2215_v15 = vadd.f32 %v6620_v6, %v2059_v35 }
 0x204   : > { %2497 = vst.msk [vmem:[#allocation3 + $0x38] sm:$0xff] %vm8400_vm9, %v2478_v29  ;;  %v2476_v7 = vmax.f32 %v2460_v22, 0.0  ;;  %v2463_v17 = vadd.f32 %v6588_v43, %v2440_v59  ;;  %v2438_v28 = vmul.f32 %v6571_v14, %v2415_v0  ;;  %v2420_v18 = vadd.f32 %v4931_v8, %v2216_v25  ;;  %v6679_v25 = vld [vmem:[#allocation3 + $0x18] sm:$0xff]  ;;  %vm8417_vm9 = vmmov %vm8388_vm0 }
 0x205   : > { %v2379_v3 = vpop.f32.mrf.mxu0  ;;  %v6655_v49 = vld [vmem:[#allocation3 + $0x8] sm:$0xff]  ;;  %8411 = vst [vmem:[#allocation30_spill] sm:$0xff] %v6679_v25  ;;  %v1843_v54 = vadd.f32 %v8412_v56, %v1639_v60  ;;  %v2065_v6 = vadd.f32 %v6538_v20, %v1845_v31  ;;  %v2218_v0 = vadd.f32 %v2191_v5, %v2062_v45  ;;  %v2526_v55 = vrot.slane %v6679_v25, 7 }
 0x206   : > { %2495 = vst.msk [vmem:[#allocation3 + $0x28] sm:$0xff] %vm8404_vm2, %v2476_v7  ;;  %v2479_v46 = vmax.f32 %v2463_v17, 0.0  ;;  %v2461_v13 = vadd.f32 %v6588_v43, %v2438_v28  ;;  %v2443_v32 = vmul.f32 %v6571_v14, %v2420_v18  ;;  %v2418_v47 = vadd.f32 %v2379_v3, %v2214_v23  ;;  %v8418_v28 = vld [vmem:[#allocation6_spill] sm:$0xff]  ;;  %vm8421_vm2 = vmmov %vm8388_vm0 }
 0x207   : > { %v4932_v37 = vpop.f32.mrf.mxu0  ;;  %v2581_v48 = vpack.c.bf16 %v6655_v49, %v6649_v40  ;;  %v2063_v20 = vadd.f32 %v6552_v44, %v1843_v54  ;;  %v2221_v8 = vadd.f32 %v4918_v58, %v2065_v6  ;;  %v6703_v26 = vld [vmem:[#allocation3 + $0x20] sm:$0xff]  ;;  %v6747_v60 = vrot.slane %v6655_v49, 7 }
 0x208   : > { %2498 = vst.msk [vmem:[#allocation3 + $0x40] sm:$0xff] %vm8407_vm13, %v2479_v46  ;;  %v2477_v39 = vmax.f32 %v2461_v13, 0.0  ;;  %v2466_v41 = vadd.f32 %v6588_v43, %v2443_v32  ;;  %v2441_v4 = vmul.f32 %v6571_v14, %v2418_v47  ;;  %v2421_v51 = vadd.f32 %v4932_v37, %v2217_v62  ;;  %8419 = vst [vmem:[#allocation10_spill] sm:$0xff] %v6703_v26 }
 0x209   : > { %v6673_v12 = vld [vmem:[#allocation3 + $0x10] sm:$0xff]  ;;  %4939 = vmatprep.mubr.msk.bf16.mxu1 %vm8410_vm8, %v2581_v48  ;;  %v2382_v27 = vpop.f32.mrf.mxu0  ;;  %v2219_v53 = vadd.f32 %v2194_v21, %v2063_v20  ;;  %vm8422_vm13 = vmmov %vm8388_vm0  ;;  %v2527_v58 = vrot.slane %v6703_v26, 7  ;;  %v6782_v6 = vrot.slane %v6655_v49, 1 }
 0x20a   : > { %2496 = vst.msk [vmem:[#allocation3 + $0x30] sm:$0xff] %vm8388_vm0, %v2477_v39  ;;  %v2482_v16 = vmax.f32 %v2466_v41, 0.0  ;;  %v2464_v57 = vadd.f32 %v6588_v43, %v2441_v4  ;;  %v2444_v38 = vmul.f32 %v6571_v14, %v2421_v51  ;;  %v2419_v29 = vadd.f32 %v2382_v27, %v2215_v15  ;;  %vm8425_vm8 = vmmov %vm8388_vm0 }
 0x20b   : > { %v4935_v22 = vpop.f32.mrf.mxu0  ;;  %v6685_v59 = vpack.c.bf16 %v6679_v25, %v6673_v12  ;;  %v6720_v1 = vld [vmem:[#allocation3 + $0x38] sm:$0xff]  ;;  %v6737_v41 = vrot.slane %v6673_v12, 7  ;;  %8442 = vst [vmem:[#allocation43_spill] sm:$0xff] %v6782_v6 }
 0x20c   : > { %2501 = vst.msk [vmem:[#allocation3 + $0x58] sm:$0xff] %vm8414_vm15, %v2482_v16  ;;  %v2480_v24 = vmax.f32 %v2464_v57, 0.0  ;;  %v2467_v50 = vadd.f32 %v6588_v43, %v2444_v38  ;;  %v2424_v61 = vadd.f32 %v4935_v22, %v2220_v9  ;;  %v2442_v42 = vmul.f32 %v6571_v14, %v2419_v29  ;;  %8424 = vst [vmem:[#allocation70_spill] sm:$0xff] %v6720_v1 }
 0x20d   : > { %8413 = vst [vmem:[#allocation16_spill] sm:$0xff] %v6685_v59  ;;  %4940 = vmatmul.mubr.msk.bf16.vlgmr.msra.gmra.mxu1 %vm8415_vm1, %v6685_v59  ;;  %v2395_v30 = vpop.f32.mrf.mxu0  ;;  %v6698_v23 = vld [vmem:[#allocation3 + $0x28] sm:$0xff]  ;;  %vm8427_vm15 = vmmov %vm8388_vm0  ;;  %v6772_v57 = vrot.slane %v6673_v12, 1  ;;  %v7955_v38 = vrot.slane %v6649_v40, 1 }
 0x20e   : > { %8416 = vst [vmem:[#allocation8_spill] sm:$0xff] %v6698_v23  ;;  %2499 = vst.msk [vmem:[#allocation3 + $0x48] sm:$0xff] %vm8417_vm9, %v2480_v24  ;;  %v2483_v7 = vmax.f32 %v2467_v50, 0.0  ;;  %v2447_v17 = vmul.f32 %v6571_v14, %v2424_v61  ;;  %4974 = vmatpush3.bf16.msra.mxu1 %v8418_v28  ;;  %v2422_v18 = vadd.f32 %v2395_v30, %v2218_v0  ;;  %v2528_v31 = vrot.slane %v6698_v23, 7  ;;  %v8446_v24 = vld [vmem:[#allocation14_spill] sm:$0xff] }
 0x20f   : > { %v2465_v44 = vadd.f32 %v6588_v43, %v2442_v42  ;;  %v4936_v10 = vpop.f32.mrf.mxu0  ;;  %v6708_v52 = vpack.c.bf16 %v6698_v23, %v6703_v26  ;;  %5009 = vmatprep.subr.bf16.mxu1 %v6690_v63  ;;  %v6732_v48 = vld [vmem:[#allocation3 + $0x40] sm:$0xff]  ;;  %vm8430_vm1 = vmmov %vm8388_vm0  ;;  %8440 = vst [vmem:[#allocation52_spill] sm:$0xff] %v6772_v57  ;;  %v2850_v61 = vrot.slane %v6703_v26, 1  ;;  %v8450_v42 = vld [vmem:[#allocation15_spill] sm:$0xff] }
 0x210   : > { %2502 = vst.msk [vmem:[#allocation3 + $0x60] sm:$0xff] %vm8421_vm2, %v2483_v7  ;;  %v2470_v11 = vadd.f32 %v6588_v43, %v2447_v17  ;;  %v2445_v19 = vmul.f32 %v6571_v14, %v2422_v18  ;;  %v2425_v62 = vadd.f32 %v4936_v10, %v2221_v8  ;;  %8428 = vst [vmem:[#allocation45_spill] sm:$0xff] %v6732_v48 }
 0x211   : > { %8420 = vst [vmem:[#allocation33_spill] sm:$0xff] %v6708_v52  ;;  %v2481_v5 = vmax.f32 %v2465_v44, 0.0  ;;  %4943 = vmatprep.mubr.msk.bf16.mxu1 %vm8422_vm13, %v6708_v52  ;;  %v2398_v3 = vpop.f32.mrf.mxu0  ;;  %v6716_v46 = vld [vmem:[#allocation3 + $0x30] sm:$0xff]  ;;  %vm8432_vm9 = vmmov %vm8388_vm0  ;;  %v8456_v44 = vld [vmem:[#allocation13_spill] sm:$0xff] }
 0x212   : > { %8423 = vst [vmem:[#allocation51_spill] sm:$0xff] %v6716_v46  ;;  %v2486_v13 = vmax.f32 %v2470_v11, 0.0  ;;  %v2468_v32 = vadd.f32 %v6588_v43, %v2445_v19  ;;  %v2448_v47 = vmul.f32 %v6571_v14, %v2425_v62  ;;  %v2423_v2 = vadd.f32 %v2398_v3, %v2219_v53  ;;  %vm8433_vm2 = vmmov %vm8388_vm0  ;;  %v8458_v53 = vld [vmem:[#allocation19_spill] sm:$0xff]  ;;  %v8460_v19 = vld [vmem:[#allocation22_spill] sm:$0xff] }
 0x213   : > { %2500 = vst.msk [vmem:[#allocation3 + $0x50] sm:$0xff] %vm8425_vm8, %v2481_v5  ;;  %v6725_v36 = vpack.c.bf16 %v6720_v1, %v6716_v46  ;;  %vm8436_vm8 = vmmov %vm8388_vm0  ;;  %v6764_v9 = vld [vmem:[#allocation3 + $0x58] sm:$0xff]  ;;  %v2529_v18 = vrot.slane %v6716_v46, 7  ;;  %v2849_v5 = vrot.slane %v6679_v25, 1 }
 0x214   : > { %2505 = vst.msk [vmem:[#allocation3 + $0x78] sm:$0xff] %vm8388_vm0, %v2486_v13  ;;  %v2484_v35 = vmax.f32 %v2468_v32, 0.0  ;;  %v2471_v33 = vadd.f32 %v6588_v43, %v2448_v47  ;;  %v2446_v37 = vmul.f32 %v6571_v14, %v2423_v2  ;;  %v2523_v14 = vrot.slane %v6649_v40, 7  ;;  %8438 = vst [vmem:[#allocation35_spill] sm:$0xff] %v6764_v9 }
 0x215   : > { %8426 = vst [vmem:[#allocation25_spill] sm:$0xff] %v6725_v36  ;;  %4944 = vmatmul.mubr.msk.bf16.gmra.mxu1 %vm8427_vm15, %v6725_v36  ;;  %v6734_v39 = vld [vmem:[#allocation3 + $0x48] sm:$0xff]  ;;  %v2530_v47 = vrot.slane %v6720_v1, 7  ;;  %v2534_v52 = vrot.slane %v6764_v9, 7 }
 0x216   : > { %8429 = vst [vmem:[#allocation20_spill] sm:$0xff] %v6734_v39  ;;  %2503 = vst.msk [vmem:[#allocation3 + $0x68] sm:$0xff] %vm8430_vm1, %v2484_v35  ;;  %v2487_v4 = vmax.f32 %v2471_v33, 0.0  ;;  %v2469_v51 = vadd.f32 %v6588_v43, %v2446_v37  ;;  %v6743_v34 = vpack.c.bf16 %v6734_v39, %v6732_v48  ;;  %v8434_v43 = vld [vmem:[#allocation5_spill] sm:$0xff]  ;;  %v2532_v3 = vrot.slane %v6734_v39, 7 }
 0x217   : > { %vm8435_vm13 = vcmp.lt.s32.totalorder %v8434_v43, 1  ;;  %v6800_v20 = vld [vmem:[#allocation3 + $0x60] sm:$0xff]  ;;  %v8464_v33 = vld [vmem:[#allocation21_spill] sm:$0xff]  ;;  %vm8471_vm10 = vcmp.lt.s32.totalorder %v8434_v43, 1 }
 0x218   : > { %8431 = vst [vmem:[#allocation72_spill] sm:$0xff] %v6743_v34  ;;  %2506 = vst.msk [vmem:[#allocation3 + $0x80] sm:$0xff] %vm8432_vm9, %v2487_v4  ;;  %v2485_v45 = vmax.f32 %v2469_v51, 0.0  ;;  %4947 = vmatprep.mubr.msk.bf16.mxu1 %vm8433_vm2, %v6743_v34  ;;  %v6758_v15 = vsel %vm8435_vm13, %v6747_v60, %v6737_v41  ;;  %vm8447_vm9 = vnez %v8446_v24  ;;  %vm8465_vm5 = vnez %v8464_v33  ;;  %v8466_v4 = vld [vmem:[#allocation29_spill] sm:$0xff] }
 0x219   : > { %vm8439_vm0 = vmmov %vm8435_vm13  ;;  %v2557_v50 = vsel %vm8447_vm9, %v6758_v15, 0.0  ;;  %8448 = vst [vmem:[#allocation17_spill] sm:$0xff] %v6800_v20  ;;  %vm8451_vm13 = vnez %v8450_v42 }
 0x21a   : > { %2504 = vst.msk [vmem:[#allocation3 + $0x70] sm:$0xff] %vm8436_vm8, %v2485_v45  ;;  %v6762_v27 = vld [vmem:[#allocation3 + $0x50] sm:$0xff]  ;;  %v6769_v16 = vsel %vm8439_vm0, %v6737_v41, %v2526_v55  ;;  %vm8444_vm15 = vmmov %vm8439_vm0  ;;  %v6816_v17 = vsel %vm8439_vm0, %v2526_v55, %v2527_v58  ;;  %v2852_v55 = vrot.slane %v6716_v46, 1  ;;  %v2531_v45 = vrot.slane %v6732_v48, 7 }
 0x21b   : > { %8437 = vst [vmem:[#allocation11_spill] sm:$0xff] %v6762_v27  ;;  %v6777_v56 = vpack.c.bf16 %v6764_v9, %v6762_v27  ;;  %v6779_v54 = vld [vmem:[#allocation3 + $0x78] sm:$0xff]  ;;  %v2553_v22 = vsel %vm8444_vm15, %v2523_v14, %v6747_v60  ;;  %vm8445_vm1 = vmmov %vm8439_vm0  ;;  %v2558_v30 = vsel %vm8451_vm13, %v6769_v16, 0.0  ;;  %vm8454_vm15 = vcmp.lt.s32.totalorder %v8434_v43, 7  ;;  %v8494_v46 = vld [vmem:[#allocation48_spill] sm:$0xff] }
 0x21c   : > { %v6785_v29 = vrot.slane %v6779_v54, 7  ;;  %v6792_v0 = vsel %vm8445_vm1, %v2527_v58, %v2528_v31  ;;  %vm8453_vm8 = vmmov %vm8439_vm0  ;;  %v6822_v28 = vsel %vm8454_vm15, %v6782_v6, %v6772_v57  ;;  %vm8457_vm1 = vnez %v8456_v44 }
 0x21d   : > { %8441 = vst [vmem:[#allocation46_spill] sm:$0xff] %v6777_v56  ;;  %4948 = vmatmul.mubr.msk.bf16.gmra.mxu1 %vm8433_vm2, %v6777_v56  ;;  %v6802_v21 = vld [vmem:[#allocation3 + $0x68] sm:$0xff]  ;;  %8455 = vst [vmem:[#allocation18_spill] sm:$0xff] %v6822_v28  ;;  %vm8459_vm2 = vnez %v8458_v53  ;;  %vm8462_vm0 = vcmask 130048   ;;  %v2876_v32 = vsel %vm8454_vm15, %v7955_v38, %v6782_v6  ;;  %v2572_v2 = vpack.c.bf16 %v2558_v30, %v2557_v50  ;;  %v8470_v30 = vld [vmem:[#allocation28_spill] sm:$0xff] }
 0x21e   : > { %8443 = vst [vmem:[#allocation50_spill] sm:$0xff] %v6785_v29  ;;  %8449 = vst [vmem:[#allocation9_spill] sm:$0xff] %v6802_v21  ;;  %v6809_v8 = vpack.c.bf16 %v6802_v21, %v6800_v20  ;;  %v2554_v7 = vsel %vm8453_vm8, %v6785_v29, %v2523_v14  ;;  %v2556_v11 = vsel %vm8459_vm2, %v2553_v22, 0.0  ;;  %vm8461_vm8 = vnez %v8460_v19  ;;  %v6853_v14 = vld [vmem:[%s7736_s5 + $0x28] sm:$0xff]   ;;  %v8492_v6 = vld [vmem:[#allocation26_spill] sm:$0xff] }
 0x21f   : > { %v2555_v10 = vsel %vm8457_vm1, %v2554_v7, 0.0  ;;  %v2560_v62 = vsel %vm8461_vm8, %v6792_v0, 0.0  ;;  %v2559_v37 = vsel %vm8465_vm5, %v6816_v17, 0.0  ;;  %v2879_v51 = vsel %vm8224_vm6, %v6822_v28, 0.0  ;;  %8467 = vst [vmem:[#allocation69_spill] sm:$0xff] %v6853_v14  ;;  %vm8469_vm6 = vmmov %vm8462_vm0 }
 0x220   : > { %8452 = vst [vmem:[#allocation55_spill] sm:$0xff] %v6809_v8  ;;  %4951 = vmatprep.mubr.msk.bf16.mxu1 %vm8462_vm0, %v6809_v8  ;;  %v2571_v13 = vpack.c.bf16 %v2556_v11, %v2555_v10  ;;  %v2573_v22 = vpack.c.bf16 %v2560_v62, %v2559_v37  ;;  %v6864_v50 = vsel %vm8454_vm15, %v2849_v5, %v2850_v61  ;;  %v2878_v7 = vsel %vm8221_vm3, %v2876_v32, 0.0  ;;  %vm8473_vm8 = vmmov %vm8469_vm6  ;;  %v8474_v37 = vld [vmem:[#allocation7_spill] sm:$0xff]  ;;  %v8488_v8 = vld [vmem:[#allocation38_spill] sm:$0xff] }
 0x221   : > { %v6842_v35 = vld [vmem:[#allocation3 + $0x70] sm:$0xff]  ;;  %v6871_v10 = vsel %vm8471_vm10, %v2529_v18, %v2530_v47  ;;  %v6882_v62 = vsel %vm8454_vm15, %v6772_v57, %v2849_v5  ;;  %v2533_v38 = vrot.slane %v6762_v27, 7  ;;  %v2536_v34 = vrot.slane %v6802_v21, 7 }
 0x222   : > { %8463 = vst [vmem:[#allocation42_spill] sm:$0xff] %v6842_v35  ;;  %4957 = vmatprep.mubr.msk.bf16.mxu0 %vm8462_vm0, %v2571_v13  ;;  %v6860_v58 = vpack.c.bf16 %v6779_v54, %v6842_v35  ;;  %vm8472_vm0 = vmmov %vm8471_vm10  ;;  %v2851_v13 = vrot.slane %v6698_v23, 1  ;;  %v8480_v5 = vld [vmem:[#allocation24_spill] sm:$0xff] }
 0x223   : > { %4958 = vmatmul.mubr.msk.bf16.vlgmr.msra.gmra.mxu0 %vm8469_vm6, %v2572_v2  ;;  %v6875_v11 = vsel %vm8472_vm0, %v2528_v31, %v2529_v18  ;;  %v2894_v2 = vpack.c.bf16 %v2879_v51, %v2878_v7  ;;  %vm8475_vm6 = vmmov %vm8472_vm0  ;;  %v8478_v31 = vld [vmem:[#allocation23_spill] sm:$0xff]  ;;  %vm8481_vm15 = vnez %v8480_v5  ;;  %v8486_v57 = vld [vmem:[#allocation40_spill] sm:$0xff] }
 0x224   : > { %8468 = vst [vmem:[#allocation31_spill] sm:$0xff] %v6860_v58  ;;  %4961 = vmatprep.mubr.msk.bf16.mxu0 %vm8473_vm8, %v2573_v22  ;;  %4992 = vmatpush3.bf16.msra.mxu0 %v8474_v37  ;;  %v6887_v32 = vsel %vm8475_vm6, %v2531_v45, %v2532_v3  ;;  %vm8476_vm10 = vmmov %vm8473_vm8  ;;  %v2562_v51 = vsel %vm8481_vm15, %v6871_v10, 0.0 }
 0x225   : > { %4952 = vmatmul.mubr.msk.bf16.gmra.mxu1 %vm8476_vm10, %v6860_v58  ;;  %5027 = vmatprep.subr.bf16.mxu0 %v6853_v14  ;;  %vm8477_vm0 = vmmov %vm8473_vm8  ;;  %vm8479_vm8 = vnez %v8478_v31  ;;  %vm8487_vm10 = vnez %v8486_v57  ;;  %v6933_v14 = vld [vmem:[#allocation3 + $0x88] sm:$0xff] }
 0x226   : > { %4975 = vmatprep.mubr.msk.bf16.mxu1 %vm8477_vm0, %v2894_v2  ;;  %v2561_v18 = vsel %vm8479_vm8, %v6875_v11, 0.0  ;;  %vm8482_vm3 = vmmov %vm8475_vm6  ;;  %vm8483_vm6 = vcmp.lt.s32.totalorder %v8434_v43, 7  ;;  %v2881_v2 = vsel %vm8228_vm11, %v6864_v50, 0.0  ;;  %v2564_v58 = vsel %vm8487_vm10, %v6887_v32, 0.0  ;;  %8496 = vst [vmem:[#allocation58_spill] sm:$0xff] %v6933_v14 }
 0x227   : > { %v6901_v22 = vsel %vm8482_vm3, %v2530_v47, %v2531_v45  ;;  %v6905_v7 = vsel %vm8483_vm6, %v2851_v13, %v2852_v55  ;;  %vm8489_vm0 = vnez %v8488_v8  ;;  %v2853_v47 = vrot.slane %v6720_v1, 1  ;;  %vm8490_vm3 = vmmov %vm8483_vm6 }
 0x228   : > { %8484 = vst [vmem:[#allocation34_spill] sm:$0xff] %v6905_v7  ;;  %v2880_v56 = vsel %vm8489_vm0, %v6882_v62, 0.0  ;;  %v2854_v45 = vrot.slane %v6732_v48, 1  ;;  %v6922_v36 = vsel %vm8490_vm3, %v2850_v61, %v2851_v13  ;;  %v2574_v59 = vpack.c.bf16 %v2562_v51, %v2561_v18  ;;  %v8498_v13 = vld [vmem:[#allocation47_spill] sm:$0xff] }
 0x229   : > { %8491 = vst [vmem:[#allocation36_spill] sm:$0xff] %v6922_v36  ;;  %vm8493_vm6 = vnez %v8492_v6  ;;  %vm8495_vm11 = vnez %v8494_v46  ;;  %v2856_v1 = vrot.slane %v6762_v27, 1  ;;  %v2535_v48 = vrot.slane %v6800_v20, 7 }
 0x22a   : > { %v2563_v28 = vsel %vm8493_vm6, %v6901_v22, 0.0  ;;  %v2883_v23 = vsel %vm8495_vm11, %v6905_v7, 0.0  ;;  %v2895_v25 = vpack.c.bf16 %v2881_v2, %v2880_v56  ;;  %v2537_v61 = vrot.slane %v6842_v35, 7  ;;  %v6951_v56 = vld [vmem:[%s7736_s5 + $0x30] sm:$0xff]  }
 0x22b   : > { %v2575_v26 = vpack.c.bf16 %v2564_v58, %v2563_v28  ;;  %vm8497_vm3 = vcmask 130048   ;;  %vm8499_vm0 = vnez %v8498_v13  ;;  %vm8500_vm10 = vcmp.lt.s32.totalorder %v8434_v43, 1  ;;  %8502 = vst [vmem:[#allocation12_spill] sm:$0xff] %v6951_v56  ;;  %v8518_v13 = vld [vmem:[#allocation56_spill] sm:$0xff] }
 0x22c   : > { %4962 = vmatmul.mubr.msk.bf16.gmra.mxu0 %vm8497_vm3, %v2574_v59  ;;  %v2882_v18 = vsel %vm8499_vm0, %v6922_v36, 0.0  ;;  %v6942_v51 = vsel %vm8500_vm10, %v2533_v38, %v2534_v52  ;;  %vm8501_vm11 = vmmov %vm8500_vm10  ;;  %v2855_v28 = vrot.slane %v6734_v39, 1  ;;  %v2857_v2 = vrot.slane %v6764_v9, 1  ;;  %v8530_v36 = vld [vmem:[#allocation61_spill] sm:$0xff] }
 0x22d   : > { %v6946_v27 = vsel %vm8501_vm11, %v2532_v3, %v2533_v38  ;;  %4965 = vmatprep.mubr.msk.bf16.mxu0 %vm8497_vm3, %v2575_v26  ;;  %v2896_v59 = vpack.c.bf16 %v2883_v23, %v2882_v18  ;;  %vm8503_vm0 = vmmov %vm8500_vm10  ;;  %v2858_v46 = vrot.slane %v6800_v20, 1  ;;  %vm8505_vm10 = vcmp.lt.s32.totalorder %v8434_v43, 7  ;;  %v6966_v3 = vld [vmem:[#allocation3 + $0x80] sm:$0xff]  ;;  %v8508_v23 = vld [vmem:[#allocation44_spill] sm:$0xff] }
 0x22e   : > { %v6957_v58 = vsel %vm8503_vm0, %v2535_v48, %v2536_v34  ;;  %vm8504_vm11 = vmmov %vm8497_vm3  ;;  %v6964_v38 = vsel %vm8505_vm10, %v2852_v55, %v2853_v47  ;;  %8507 = vst [vmem:[#allocation4_spill] sm:$0xff] %v6966_v3  ;;  %vm8509_vm0 = vnez %v8508_v23  ;;  %v8510_v18 = vld [vmem:[#allocation49_spill] sm:$0xff]  ;;  %v6983_v20 = vsel %vm8505_vm10, %v2855_v28, %v2856_v1 }
 0x22f   : > { %4976 = vmatmul.mubr.msk.bf16.vlgmr.msra.gmra.mxu1 %vm8504_vm11, %v2895_v25  ;;  %8506 = vst [vmem:[#allocation68_spill] sm:$0xff] %v6964_v38  ;;  %v2565_v26 = vsel %vm8509_vm0, %v6946_v27, 0.0  ;;  %vm8511_vm6 = vnez %v8510_v18  ;;  %vm8512_vm11 = vcmp.lt.s32.totalorder %v8434_v43, 1  ;;  %v7011_v7 = vrot.slane %v6966_v3, 7 }
 0x230   : > { %5010 = vmatpush3.bf16.msra.mxu1 %v6690_v63  ;;  %4979 = vmatprep.mubr.msk.bf16.mxu1 %vm8497_vm3, %v2896_v59  ;;  %v2566_v25 = vsel %vm8511_vm6, %v6942_v51, 0.0  ;;  %v6979_v55 = vsel %vm8512_vm11, %v2534_v52, %v2535_v48  ;;  %v8513_v63 = vld [vmem:[#allocation54_spill] sm:$0xff]  ;;  %vm8515_vm3 = vmmov %vm8505_vm10  ;;  %v2859_v48 = vrot.slane %v6802_v21, 1  ;;  %vm8519_vm10 = vnez %v8518_v13 }
 0x231   : > { %vm8514_vm15 = vnez %v8513_v63  ;;  %v6990_v39 = vsel %vm8515_vm3, %v2853_v47, %v2854_v45  ;;  %vm8516_vm0 = vmmov %vm8512_vm11  ;;  %5045 = vmatprep.subr.bf16.mxu1 %v6951_v56  ;;  %v2884_v37 = vsel %vm8519_vm10, %v6964_v38, 0.0  ;;  %v7008_v47 = vsel %vm8515_vm3, %v2854_v45, %v2855_v28  ;;  %8520 = vst [vmem:[#allocation71_spill] sm:$0xff] %v7011_v7  ;;  %v8523_v21 = vld [vmem:[#allocation62_spill] sm:$0xff]  ;;  %v8525_v38 = vld [vmem:[#allocation57_spill] sm:$0xff] }
 0x232   : > { %v2568_v59 = vsel %vm8514_vm15, %v6957_v58, 0.0  ;;  %v6995_v9 = vsel %vm8516_vm0, %v2537_v61, %v6785_v29  ;;  %vm8517_vm11 = vmmov %vm8516_vm0  ;;  %v2860_v29 = vrot.slane %v6842_v35, 1  ;;  %v2576_v8 = vpack.c.bf16 %v2566_v25, %v2565_v26 }
 0x233   : > { %v6999_v52 = vsel %vm8517_vm11, %v2536_v34, %v2537_v61  ;;  %v8521_v34 = vld [vmem:[#allocation53_spill] sm:$0xff]  ;;  %vm8524_vm11 = vnez %v8523_v21  ;;  %vm8526_vm10 = vnez %v8525_v38  ;;  %v2570_v26 = vsel %vm8255_vm7, %v6995_v9, 0.0 }
 0x234   : > { %vm8522_vm0 = vnez %v8521_v34  ;;  %v2887_v56 = vsel %vm8524_vm11, %v6983_v20, 0.0  ;;  %v2885_v45 = vsel %vm8526_vm10, %v6990_v39, 0.0  ;;  %v2569_v3 = vsel %vm8254_vm4, %v6999_v52, 0.0 }
 0x235   : > { %v2567_v61 = vsel %vm8522_vm0, %v6979_v55, 0.0  ;;  %vm8529_vm3 = vcmask 130048   ;;  %v2897_v25 = vpack.c.bf16 %v2885_v45, %v2884_v37  ;;  %vm8531_vm15 = vnez %v8530_v36 }
 0x236   : > { %v2577_v13 = vpack.c.bf16 %v2568_v59, %v2567_v61  ;;  %4966 = vmatmul.mubr.msk.bf16.gmra.mxu0 %vm8529_vm3, %v2576_v8  ;;  %v2886_v21 = vsel %vm8531_vm15, %v7008_v47, 0.0  ;;  %vm8532_vm11 = vcmp.lt.s32.totalorder %v8434_v43, 7  ;;  %vm8533_vm10 = vmmov %vm8529_vm3  ;;  %vm8534_vm4 = vcmp.lt.s32.totalorder %v8434_v43, 1 }
 0x237   : > { %v7035_v59 = vsel %vm8532_vm11, %v2856_v1, %v2857_v2  ;;  %v2898_v61 = vpack.c.bf16 %v2887_v56, %v2886_v21  ;;  %v3095_v35 = vsel %vm8534_vm4, %v7011_v7, %v6747_v60  ;;  %vm8535_vm7 = vmmov %vm8529_vm3  ;;  %v2578_v8 = vpack.c.bf16 %v2570_v26, %v2569_v3  ;;  %v8539_v1 = vld [vmem:[#allocation63_spill] sm:$0xff] }
 0x238   : > { %4969 = vmatprep.mubr.msk.bf16.mxu0 %vm8533_vm10, %v2577_v13  ;;  %4980 = vmatmul.mubr.msk.bf16.gmra.mxu1 %vm8535_vm7, %v2897_v25  ;;  %vm8536_vm3 = vmmov %vm8532_vm11  ;;  %vm8540_vm10 = vnez %v8539_v1  ;;  %v8542_v13 = vrot.slane %v6933_v14, 7  ;;  %v3096_v3 = vsel %vm8457_vm1, %v3095_v35, 0.0  ;;  %v3097_v14 = vsel %vm8459_vm2, %v6758_v15, 0.0  ;;  %v8611_v18 = vld [vmem:[#allocation71_spill] sm:$0xff] }
 0x239   : > { %v7045_v37 = vsel %vm8536_vm3, %v2857_v2, %v2858_v46  ;;  %vm8537_vm15 = vmmov %vm8536_vm3  ;;  %v2888_v21 = vsel %vm8540_vm10, %v7035_v59, 0.0  ;;  %v3671_v2 = vsel %vm8459_vm2, %v6769_v16, 0.0  ;;  %v7091_v28 = vrot.slane %v6779_v54, 1  ;;  %v8651_v1 = vld [vmem:[#allocation27_spill] sm:$0xff] }
 0x23a   : > { %v7049_v45 = vsel %vm8537_vm15, %v2859_v48, %v2860_v29  ;;  %vm8538_vm11 = vmmov %vm8535_vm7  ;;  %v3669_v56 = vsel %vm8534_vm4, %v8542_v13, %v6737_v41  ;;  %v8543_v41 = vld [vmem:[#allocation64_spill] sm:$0xff]  ;;  %v3674_v7 = vsel %vm8465_vm5, %v6875_v11, 0.0  ;;  %v3676_v24 = vsel %vm8479_vm8, %v6901_v22, 0.0 }
 0x23b   : > { %4983 = vmatprep.mubr.msk.bf16.mxu1 %vm8538_vm11, %v2898_v61  ;;  %vm8541_vm0 = vmmov %vm8536_vm3  ;;  %v3670_v26 = vsel %vm8457_vm1, %v3669_v56, 0.0  ;;  %vm8544_vm7 = vnez %v8543_v41  ;;  %v2891_v13 = vsel %vm8283_vm12, %v7049_v45, 0.0  ;;  %v3112_v41 = vpack.c.bf16 %v3097_v14, %v3096_v3  ;;  %v8546_v61 = vld [vmem:[#allocation65_spill] sm:$0xff] }
 0x23c   : > { %v7057_v60 = vsel %vm8541_vm0, %v2858_v46, %v2859_v48  ;;  %v3672_v46 = vsel %vm8447_vm9, %v6816_v17, 0.0  ;;  %v3673_v48 = vsel %vm8451_vm13, %v6792_v0, 0.0  ;;  %v2889_v25 = vsel %vm8544_vm7, %v7045_v37, 0.0  ;;  %vm8548_vm2 = vmmov %vm8538_vm11 }
 0x23d   : > { %v7083_v35 = vpack.c.bf16 %v3671_v2, %v3670_v26  ;;  %v7085_v44 = vpack.c.bf16 %v3673_v48, %v3672_v46  ;;  %v2899_v56 = vpack.c.bf16 %v2889_v25, %v2888_v21  ;;  %v2890_v2 = vsel %vm8281_vm14, %v7057_v60, 0.0  ;;  %vm8549_vm15 = vmmov %vm8548_vm2  ;;  %v8560_v25 = vld [vmem:[#allocation67_spill] sm:$0xff] }
 0x23e   : > { %v3098_v21 = vsel %vm8447_vm9, %v6769_v16, 0.0  ;;  %vm8547_vm1 = vnez %v8460_v19  ;;  %4970 = vmatmul.mubr.msk.bf16.gmra.mxu0 %vm8548_vm2, %v2578_v8  ;;  %v2900_v53 = vpack.c.bf16 %v2891_v13, %v2890_v2  ;;  %v3099_v26 = vsel %vm8451_vm13, %v6816_v17, 0.0  ;;  %vm8550_vm9 = vmmov %vm8541_vm0 }
 0x23f   : > { %v3675_v15 = vsel %vm8547_vm1, %v6871_v10, 0.0  ;;  %v3101_v14 = vsel %vm8547_vm1, %v6875_v11, 0.0  ;;  %4993 = vmatprep.mubr.msk.bf16.mxu0 %vm8549_vm15, %v3112_v41  ;;  %v7118_v16 = vsel %vm8550_vm9, %v2860_v29, %v7091_v28  ;;  %vm8551_vm13 = vnez %v8480_v5  ;;  %vm8553_vm3 = vmmov %vm8548_vm2  ;;  %v8600_v5 = vld [vmem:[#allocation51_spill] sm:$0xff] }
 0x240   : > { %v7112_v3 = vpack.c.bf16 %v3675_v15, %v3674_v7  ;;  %v3677_v42 = vsel %vm8551_vm13, %v6887_v32, 0.0  ;;  %vm8552_vm0 = vnez %v8492_v6  ;;  %4984 = vmatmul.mubr.msk.bf16.gmra.mxu1 %vm8553_vm3, %v2899_v56  ;;  %v8554_v19 = vrot.slane %v6649_v40, 1  ;;  %vm8555_vm11 = vmmov %vm8550_vm9 }
 0x241   : > { %v3678_v17 = vsel %vm8552_vm0, %v6946_v27, 0.0  ;;  %v7135_v11 = vpack.c.bf16 %v3677_v42, %v3676_v24  ;;  %vm8556_vm4 = vnez %v8486_v57  ;;  %vm8557_vm1 = vnez %v8508_v23  ;;  %4987 = vmatprep.mubr.msk.bf16.mxu1 %vm8548_vm2, %v2900_v53  ;;  %v8564_v42 = vld [vmem:[#allocation27_spill] sm:$0xff]  ;;  %v8599_v57 = vld [vmem:[#allocation8_spill] sm:$0xff]  ;;  %v8606_v23 = vld [vmem:[#allocation45_spill] sm:$0xff] }
 0x242   : > { %v2877_v29 = vsel %vm8555_vm11, %v7091_v28, %v8554_v19  ;;  %v3679_v7 = vsel %vm8556_vm4, %v6942_v51, 0.0  ;;  %v3680_v8 = vsel %vm8557_vm1, %v6979_v55, 0.0  ;;  %v3681_v40 = vsel %vm8511_vm6, %v6957_v58, 0.0 }
 0x243   : > { %v7144_v46 = vpack.c.bf16 %v3679_v7, %v3678_v17  ;;  %vm8558_vm15 = vnez %v8521_v34  ;;  %vm8559_vm9 = vnez %v8513_v63  ;;  %vm8561_vm3 = vnez %v8560_v25  ;;  %v7172_v7 = vld [vmem:[%s7736_s5 + $0x38] sm:$0xff]   ;;  %v8608_v63 = vld [vmem:[#allocation20_spill] sm:$0xff] }
 0x244   : > { %v3682_v48 = vsel %vm8558_vm15, %v6999_v52, 0.0  ;;  %v3683_v41 = vsel %vm8559_vm9, %v6995_v9, 0.0  ;;  %v2892_v13 = vsel %vm8561_vm3, %v7118_v16, 0.0  ;;  %v3100_v56 = vsel %vm8465_vm5, %v6792_v0, 0.0 }
 0x245   : > { %v7161_v2 = vpack.c.bf16 %v3681_v40, %v3680_v8  ;;  %v7163_v15 = vpack.c.bf16 %v3683_v41, %v3682_v48  ;;  %v3113_v53 = vpack.c.bf16 %v3099_v26, %v3098_v21  ;;  %v3114_v24 = vpack.c.bf16 %v3101_v14, %v3100_v56  ;;  %v8568_v26 = vld [vmem:[#allocation36_spill] sm:$0xff]  ;;  %v8569_v14 = vld [vmem:[#allocation38_spill] sm:$0xff]  ;;  %v8577_v56 = vld [vmem:[#allocation47_spill] sm:$0xff] }
 0x246   : > { %vm8565_vm11 = vnez %v8564_v42  ;;  %v3266_v19 = vpack.c.bf16 %v6673_v12, %v6655_v49  ;;  %vm8566_vm5 = vnez %v8470_v30  ;;  %vm8567_vm2 = vnez %v8466_v4  ;;  %v8571_v8 = vld [vmem:[#allocation34_spill] sm:$0xff]  ;;  %v8572_v49 = vld [vmem:[#allocation41_spill] sm:$0xff]  ;;  %v8576_v41 = vld [vmem:[#allocation68_spill] sm:$0xff] }
 0x247   : > { %8562 = vst [vmem:[#allocation39_spill] sm:$0xff] %v7161_v2  ;;  %8563 = vst [vmem:[#allocation32_spill] sm:$0xff] %v7163_v15  ;;  %v2893_v17 = vsel %vm8565_vm11, %v2877_v29, 0.0  ;;  %v4026_v0 = vsel %vm8566_vm5, %v6882_v62, 0.0  ;;  %v4027_v33 = vsel %vm8567_vm2, %v6864_v50, 0.0  ;;  %vm8570_vm11 = vnez %v8569_v14  ;;  %v8581_v2 = vld [vmem:[#allocation56_spill] sm:$0xff] }
 0x248   : > { %v2901_v21 = vpack.c.bf16 %v2893_v17, %v2892_v13  ;;  %v4028_v29 = vsel %vm8570_vm11, %v8568_v26, 0.0  ;;  %vm8573_vm3 = vnez %v8572_v49  ;;  %v7186_v40 = vpack.c.bf16 %v4027_v33, %v4026_v0  ;;  %v8579_v13 = vld [vmem:[#allocation48_spill] sm:$0xff]  ;;  %v8584_v0 = vld [vmem:[#allocation69_spill] sm:$0xff] }
 0x249   : > { %v4029_v12 = vsel %vm8573_vm3, %v8571_v8, 0.0  ;;  %vm8574_vm12 = vcmask 130048   ;;  %vm8578_vm14 = vnez %v8577_v56  ;;  %vm8580_vm2 = vnez %v8579_v13 }
 0x24a   : > { %4994 = vmatmul.mubr.msk.bf16.vlgmr.msra.gmra.mxu0 %vm8574_vm12, %v3113_v53  ;;  %v7189_v48 = vpack.c.bf16 %v4029_v12, %v4028_v29  ;;  %v4030_v15 = vsel %vm8578_vm14, %v8576_v41, 0.0  ;;  %v4031_v17 = vsel %vm8580_vm2, %v6990_v39, 0.0  ;;  %vm8582_vm11 = vnez %v8581_v2  ;;  %vm8583_vm5 = vmmov %vm8574_vm12  ;;  %v8588_v12 = vld [vmem:[#allocation62_spill] sm:$0xff] }
 0x24b   : > { %v4032_v42 = vsel %vm8582_vm11, %v7008_v47, 0.0  ;;  %4997 = vmatprep.mubr.msk.bf16.mxu0 %vm8583_vm5, %v3114_v24  ;;  %5028 = vmatpush3.bf16.msra.mxu0 %v8584_v0  ;;  %v7202_v33 = vpack.c.bf16 %v4031_v17, %v4030_v15  ;;  %vm8586_vm12 = vnez %v8525_v38  ;;  %vm8587_vm14 = vnez %v8530_v36  ;;  %vm8590_vm3 = vmmov %vm8583_vm5 }
 0x24c   : > { %8575 = vst [vmem:[#allocation37_spill] sm:$0xff] %v7189_v48  ;;  %v4033_v53 = vsel %vm8586_vm12, %v6983_v20, 0.0  ;;  %v4034_v29 = vsel %vm8587_vm14, %v7035_v59, 0.0  ;;  %vm8589_vm2 = vnez %v8588_v12  ;;  %4988 = vmatmul.mubr.msk.bf16.gmra.mxu1 %vm8590_vm3, %v2901_v21  ;;  %5063 = vmatprep.subr.bf16.mxu0 %v7172_v7  ;;  %vm8593_vm5 = vmmov %vm8590_vm3  ;;  %v3102_v17 = vsel %vm8479_vm8, %v6871_v10, 0.0 }
 0x24d   : > { %8585 = vst [vmem:[#allocation6_spill] sm:$0xff] %v7202_v33  ;;  %v4035_v48 = vsel %vm8589_vm2, %v7045_v37, 0.0  ;;  %v7215_v24 = vpack.c.bf16 %v4033_v53, %v4032_v42  ;;  %5011 = vmatprep.mubr.msk.bf16.mxu1 %vm8593_vm5, %v3266_v19  ;;  %v4036_v0 = vsel %vm8540_vm10, %v7057_v60, 0.0  ;;  %v4037_v21 = vsel %vm8544_vm7, %v7049_v45, 0.0  ;;  %vm8595_vm8 = vmmov %vm8590_vm3  ;;  %v8658_v33 = vld [vmem:[#allocation58_spill] sm:$0xff] }
 0x24e   : > { %v7217_v15 = vpack.c.bf16 %v4035_v48, %v4034_v29  ;;  %v3105_v42 = vsel %vm8556_vm4, %v6946_v27, 0.0  ;;  %v7232_v48 = vpack.c.bf16 %v4037_v21, %v4036_v0  ;;  %v3103_v19 = vsel %vm8551_vm13, %v6901_v22, 0.0  ;;  %v8596_v29 = vld [vmem:[#allocation30_spill] sm:$0xff]  ;;  %v5170_v27 = vld [vmem:[%s7736_s5 + $0x40] sm:$0xff]   ;;  %vm8598_vm4 = vmmov %vm8590_vm3 }
 0x24f   : > { %8591 = vst [vmem:[#allocation5_spill] sm:$0xff] %v7215_v24  ;;  %v3115_v31 = vpack.c.bf16 %v3103_v19, %v3102_v17  ;;  %v3104_v10 = vsel %vm8552_vm0, %v6887_v32, 0.0  ;;  %v3268_v22 = vpack.c.bf16 %v8600_v5, %v8599_v57  ;;  %vm8601_vm13 = vmmov %vm8590_vm3  ;;  %v8602_v17 = vld [vmem:[#allocation12_spill] sm:$0xff]  ;;  %v3106_v6 = vsel %vm8557_vm1, %v6942_v51, 0.0 }
 0x250   : > { %8592 = vst [vmem:[#allocation14_spill] sm:$0xff] %v7217_v15  ;;  %v3116_v53 = vpack.c.bf16 %v3105_v42, %v3104_v10  ;;  %v8597_v15 = vld [vmem:[#allocation10_spill] sm:$0xff]  ;;  %vm8603_vm0 = vmmov %vm8590_vm3  ;;  %v3109_v32 = vsel %vm8559_vm9, %v6999_v52, 0.0  ;;  %v8609_v52 = vld [vmem:[#allocation11_spill] sm:$0xff]  ;;  %v3463_v36 = vsel %vm8544_vm7, %v7057_v60, 0.0  ;;  %vm8645_vm7 = vcmp.lt.s32.totalorder %v8434_v43, 7 }
 0x251   : > { %v3267_v24 = vpack.c.bf16 %v8597_v15, %v8596_v29  ;;  %v3107_v15 = vsel %vm8511_vm6, %v6979_v55, 0.0  ;;  %vm8604_vm3 = vmmov %vm8603_vm0  ;;  %v8605_v42 = vld [vmem:[#allocation70_spill] sm:$0xff]  ;;  %v3270_v19 = vpack.c.bf16 %v8609_v52, %v8608_v63  ;;  %vm8613_vm6 = vcmp.lt.s32.totalorder %v8434_v43, 1  ;;  %v8620_v57 = vld [vmem:[#allocation60_spill] sm:$0xff] }
 0x252   : > { %4998 = vmatmul.mubr.msk.bf16.gmra.mxu0 %vm8595_vm8, %v3115_v31  ;;  %v3117_v0 = vpack.c.bf16 %v3107_v15, %v3106_v6  ;;  %v3269_v51 = vpack.c.bf16 %v8606_v23, %v8605_v42  ;;  %vm8607_vm1 = vmmov %vm8603_vm0  ;;  %v8612_v55 = vld [vmem:[#allocation50_spill] sm:$0xff]  ;;  %vm8618_vm8 = vnez %v8470_v30  ;;  %v8622_v6 = vld [vmem:[#allocation35_spill] sm:$0xff] }
 0x253   : > { %5001 = vmatprep.mubr.msk.bf16.mxu0 %vm8598_vm4, %v3116_v53  ;;  %vm8610_vm9 = vmmov %vm8603_vm0  ;;  %v3080_v31 = vsel %vm8613_vm6, %v8612_v55, %v8611_v18  ;;  %v8617_v10 = vld [vmem:[#allocation18_spill] sm:$0xff]  ;;  %vm8619_vm4 = vnez %v8466_v4  ;;  %v8661_v12 = vld [vmem:[#allocation32_spill] sm:$0xff] }
 0x254   : > { %5012 = vmatmul.mubr.msk.bf16.vlgmr.msra.gmra.mxu1 %vm8601_vm13, %v3267_v24  ;;  %v3108_v24 = vsel %vm8558_vm15, %v6957_v58, 0.0  ;;  %vm8614_vm5 = vmmov %vm8603_vm0  ;;  %v8615_v58 = vld [vmem:[#allocation59_spill] sm:$0xff]  ;;  %v3452_v53 = vsel %vm8618_vm8, %v8617_v10, 0.0  ;;  %v3453_v29 = vsel %vm8619_vm4, %v6882_v62, 0.0  ;;  %vm8621_vm13 = vnez %v8620_v57  ;;  %v8663_v63 = vld [vmem:[#allocation33_spill] sm:$0xff] }
 0x255   : > { %5046 = vmatpush3.bf16.msra.mxu1 %v8602_v17  ;;  %5015 = vmatprep.mubr.msk.bf16.mxu1 %vm8603_vm0, %v3268_v22  ;;  %v3118_v21 = vpack.c.bf16 %v3109_v32, %v3108_v24  ;;  %vm8616_vm15 = vnez %v8615_v58  ;;  %v3111_v5 = vsel %vm8621_vm13, %v3080_v31, 0.0  ;;  %v3468_v17 = vpack.c.bf16 %v3453_v29, %v3452_v53  ;;  %v8623_v32 = vld [vmem:[#allocation17_spill] sm:$0xff]  ;;  %vm8629_vm6 = vmmov %vm8603_vm0  ;;  %v8670_v55 = vld [vmem:[#allocation46_spill] sm:$0xff] }
 0x256   : > { %5081 = vmatprep.subr.bf16.mxu1 %v5170_v27  ;;  %v3110_v34 = vsel %vm8616_vm15, %v6995_v9, 0.0  ;;  %v3271_v15 = vpack.c.bf16 %v8623_v32, %v8622_v6  ;;  %v8625_v9 = vld [vmem:[#allocation9_spill] sm:$0xff]  ;;  %vm8631_vm8 = vnez %v8579_v13  ;;  %vm8632_vm4 = vnez %v8569_v14  ;;  %v8656_v13 = vld [vmem:[#allocation39_spill] sm:$0xff]  ;;  %v8674_v58 = vld [vmem:[#allocation6_spill] sm:$0xff] }
 0x257   : > { %v3119_v22 = vpack.c.bf16 %v3111_v5, %v3110_v34  ;;  %v3457_v24 = vsel %vm8631_vm8, %v8576_v41, 0.0  ;;  %v3460_v14 = vsel %vm8587_vm14, %v6983_v20, 0.0  ;;  %vm8640_vm14 = vmmov %vm8603_vm0  ;;  %v8642_v20 = vld [vmem:[#allocation66_spill] sm:$0xff]  ;;  %v8676_v34 = vld [vmem:[#allocation55_spill] sm:$0xff] }
 0x258   : > { %vm8644_vm8 = vmmov %vm8603_vm0  ;;  %v8678_v10 = vld [vmem:[#allocation31_spill] sm:$0xff]  ;;  %v8680_v53 = vld [vmem:[#allocation5_spill] sm:$0xff] }
 0x259   : > { %v8688_v32 = vld [vmem:[#allocation52_spill] sm:$0xff] }
 0x25a   : > { %5002 = vmatmul.mubr.msk.bf16.gmra.mxu0 %vm8604_vm3, %v3117_v0  ;;  %vm8624_vm3 = vmmov %vm8603_vm0  ;;  %v8626_v0 = vld [vmem:[#allocation42_spill] sm:$0xff] }
 0x25b   : > { %5005 = vmatprep.mubr.msk.bf16.mxu0 %vm8607_vm1, %v3118_v21  ;;  %v3272_v30 = vpack.c.bf16 %v8626_v0, %v8625_v9  ;;  %vm8627_vm1 = vmmov %vm8603_vm0  ;;  %v3454_v21 = vsel %vm8632_vm4, %v6864_v50, 0.0  ;;  %v3459_v50 = vsel %vm8586_vm12, %v7008_v47, 0.0 }
 0x25c   : > { %5016 = vmatmul.mubr.msk.bf16.gmra.mxu1 %vm8610_vm9, %v3269_v51  ;;  %vm8628_vm9 = vnez %v8572_v49  ;;  %vm8639_vm12 = vmmov %vm8603_vm0 }
 0x25d   : > { %5019 = vmatprep.mubr.msk.bf16.mxu1 %vm8614_vm5, %v3270_v19  ;;  %v3455_v4 = vsel %vm8628_vm9, %v8568_v26, 0.0  ;;  %vm8630_vm5 = vnez %v8577_v56  ;;  %v8633_v26 = vld [vmem:[#allocation4_spill] sm:$0xff]  ;;  %vm8636_vm9 = vmmov %vm8603_vm0  ;;  %v8665_v19 = vld [vmem:[#allocation25_spill] sm:$0xff] }
 0x25e   : > { %v3456_v62 = vsel %vm8630_vm5, %v8571_v8, 0.0  ;;  %v3469_v42 = vpack.c.bf16 %v3455_v4, %v3454_v21  ;;  %v3273_v49 = vpack.c.bf16 %v8633_v26, %v6779_v54  ;;  %v3461_v54 = vsel %vm8589_vm2, %v7035_v59, 0.0  ;;  %vm8638_vm5 = vmmov %vm8603_vm0 }
 0x25f   : > { %v3470_v23 = vpack.c.bf16 %v3457_v24, %v3456_v62  ;;  %v3472_v41 = vpack.c.bf16 %v3461_v54, %v3460_v14  ;;  %vm8643_vm2 = vnez %v8642_v20  ;;  %v3435_v47 = vrot.slane %v8633_v26, 1  ;;  %vm8647_vm4 = vmmov %vm8645_vm7 }
 0x260   : > { %v3465_v38 = vsel %vm8643_vm2, %v7118_v16, 0.0  ;;  %v3462_v59 = vsel %vm8540_vm10, %v7045_v37, 0.0  ;;  %vm8650_vm10 = vnez %v8560_v25  ;;  %v3847_v29 = vpack.c.bf16 %v8658_v33, %v8633_v26 }
 0x261   : > { %v3436_v60 = vsel %vm8645_vm7, %v7091_v28, %v3435_v47  ;;  %v8654_v28 = vld [vmem:[#allocation16_spill] sm:$0xff]  ;;  %vm8664_vm7 = vmmov %vm8603_vm0 }
 0x262   : > { %5006 = vmatmul.mubr.msk.bf16.gmra.mxu0 %vm8603_vm0, %v3119_v22  ;;  %v3466_v37 = vsel %vm8650_vm10, %v3436_v60, 0.0  ;;  %v4039_v5 = vsel %vm8643_vm2, %v3436_v60, 0.0  ;;  %v4009_v22 = vrot.slane %v8658_v33, 1 }
 0x263   : > { %5029 = vmatprep.mubr.msk.bf16.mxu0 %vm8624_vm3, %v3468_v17  ;;  %vm8634_vm3 = vmmov %vm8603_vm0 }
 0x264   : > { %5020 = vmatmul.mubr.msk.bf16.gmra.mxu1 %vm8627_vm1, %v3271_v15  ;;  %vm8635_vm1 = vmmov %vm8603_vm0 }
 0x265   : > { %5023 = vmatprep.mubr.msk.bf16.mxu1 %vm8629_vm6, %v3272_v30  ;;  %vm8637_vm6 = vmmov %vm8603_vm0 }
 0x26a   : > { %5030 = vmatmul.mubr.msk.bf16.vlgmr.msra.gmra.mxu0 %vm8603_vm0, %v3469_v42 }
 0x26b   : > { %5033 = vmatprep.mubr.msk.bf16.mxu0 %vm8634_vm3, %v3470_v23  ;;  %5064 = vmatpush3.bf16.msra.mxu0 %v7172_v7  ;;  %v3458_v7 = vsel %vm8582_vm11, %v6990_v39, 0.0  ;;  %vm8641_vm11 = vnez %v8546_v61  ;;  %vm8648_vm3 = vmmov %vm8603_vm0 }
 0x26c   : > { %5024 = vmatmul.mubr.msk.bf16.gmra.mxu1 %vm8635_vm1, %v3273_v49  ;;  %v3471_v8 = vpack.c.bf16 %v3459_v50, %v3458_v7  ;;  %v3464_v39 = vsel %vm8641_vm11, %v7049_v45, 0.0  ;;  %vm8649_vm1 = vmmov %vm8603_vm0  ;;  %v4038_v57 = vsel %vm8641_vm11, %v7118_v16, 0.0 }
 0x26d   : > { %5047 = vmatprep.mubr.msk.bf16.mxu1 %vm8636_vm9, %v7083_v35  ;;  %v3473_v35 = vpack.c.bf16 %v3463_v36, %v3462_v59  ;;  %vm8652_vm9 = vnez %v8651_v1  ;;  %v4048_v17 = vpack.c.bf16 %v4039_v5, %v4038_v57 }
 0x272   : > { %5034 = vmatmul.mubr.msk.bf16.gmra.mxu0 %vm8637_vm6, %v3471_v8  ;;  %vm8653_vm6 = vmmov %vm8603_vm0 }
 0x273   : > { %5037 = vmatprep.mubr.msk.bf16.mxu0 %vm8638_vm5, %v3472_v41  ;;  %vm8655_vm5 = vmmov %vm8603_vm0 }
 0x274   : > { %5048 = vmatmul.mubr.msk.bf16.vlgmr.msra.gmra.mxu1 %vm8639_vm12, %v7085_v44  ;;  %v3474_v44 = vpack.c.bf16 %v3465_v38, %v3464_v39  ;;  %vm8657_vm12 = vmmov %vm8603_vm0 }
 0x275   : > { %5082 = vmatpush3.bf16.msra.mxu1 %v5170_v27  ;;  %5051 = vmatprep.mubr.msk.bf16.mxu1 %vm8640_vm14, %v7112_v3  ;;  %v8646_v3 = vld [vmem:[#allocation43_spill] sm:$0xff]  ;;  %vm8660_vm14 = vcmp.lt.s32.totalorder %v8434_v43, 1  ;;  %v3684_v27 = vsel %vm8616_vm15, %v3080_v31, 0.0  ;;  %vm8671_vm15 = vmmov %vm8603_vm0  ;;  %v8672_v31 = vld [vmem:[#allocation37_spill] sm:$0xff] }
 0x276   : > { %v3451_v45 = vsel %vm8647_vm4, %v3435_v47, %v8646_v3  ;;  %vm8666_vm4 = vmmov %vm8603_vm0 }
 0x277   : > { %v3467_v2 = vsel %vm8652_vm9, %v3451_v45, 0.0 }
 0x278   : > { %v3475_v56 = vpack.c.bf16 %v3467_v2, %v3466_v37 }
 0x27a   : > { %5038 = vmatmul.mubr.msk.bf16.gmra.mxu0 %vm8644_vm8, %v3473_v35  ;;  %vm8662_vm8 = vmmov %vm8603_vm0 }
 0x27b   : > { %5041 = vmatprep.mubr.msk.bf16.mxu0 %vm8603_vm0, %v3474_v44 }
 0x27c   : > { %5052 = vmatmul.mubr.msk.bf16.gmra.mxu1 %vm8648_vm3, %v7135_v11  ;;  %v8659_v11 = vrot.slane %v8658_v33, 7  ;;  %vm8667_vm3 = vmmov %vm8603_vm0 }
 0x27d   : > { %5055 = vmatprep.mubr.msk.bf16.mxu1 %vm8649_vm1, %v7144_v46  ;;  %vm8669_vm1 = vmmov %vm8603_vm0 }
 0x27e   : > { %v3654_v46 = vsel %vm8660_vm14, %v8611_v18, %v8659_v11  ;;  %v8668_v18 = vld [vmem:[#allocation72_spill] sm:$0xff]  ;;  %vm8681_vm14 = vmmov %vm8603_vm0 }
 0x27f   : > { %v3685_v51 = vsel %vm8621_vm13, %v3654_v46, 0.0  ;;  %vm8673_vm13 = vmmov %vm8603_vm0 }
 0x280   : > { %v3693_v52 = vpack.c.bf16 %v3685_v51, %v3684_v27 }
 0x282   : > { %5042 = vmatmul.mubr.msk.bf16.gmra.mxu0 %vm8653_vm6, %v3475_v56  ;;  %vm8675_vm6 = vmmov %vm8603_vm0 }
 0x283   : > { %5065 = vmatprep.mubr.msk.bf16.mxu0 %vm8655_vm5, %v8654_v28  ;;  %vm8677_vm5 = vmmov %vm8603_vm0 }
 0x284   : > { %5056 = vmatmul.mubr.msk.bf16.gmra.mxu1 %vm8657_vm12, %v8656_v13  ;;  %vm8679_vm12 = vmmov %vm8603_vm0 }
 0x285   : > { %5059 = vmatprep.mubr.msk.bf16.mxu1 %vm8662_vm8, %v8661_v12  ;;  %vm8683_vm8 = vmmov %vm8603_vm0 }
 0x28a   : > { %5066 = vmatmul.mubr.msk.bf16.vlgmr.msra.gmra.mxu0 %vm8664_vm7, %v8663_v63  ;;  %vm8684_vm7 = vmmov %vm8603_vm0 }
 0x28b   : > { %5069 = vmatprep.mubr.msk.bf16.mxu0 %vm8666_vm4, %v8665_v19  ;;  %vm8685_vm4 = vmmov %vm8603_vm0 }
 0x28c   : > { %5060 = vmatmul.mubr.msk.bf16.gmra.mxu1 %vm8603_vm0, %v3693_v52  ;;  %vm8686_vm0 = vcmp.lt.s32.totalorder %v8434_v43, 7 }
 0x28d   : > { %5083 = vmatprep.mubr.msk.bf16.mxu1 %vm8667_vm3, %v7186_v40  ;;  %v8682_v40 = vld [vmem:[#allocation14_spill] sm:$0xff]  ;;  %v4010_v6 = vsel %vm8686_vm0, %v3435_v47, %v4009_v22  ;;  %vm8687_vm3 = vmmov %vm8669_vm1 }
 0x28e   : > { %v4040_v16 = vsel %vm8650_vm10, %v4010_v6, 0.0  ;;  %vm8690_vm11 = vmmov %vm8687_vm3 }
 0x28f   : > { %vm8719_vm2 = vmmov %vm8687_vm3 }
 0x290   : > { %vm8723_vm10 = vmmov %vm8719_vm2 }
 0x292   : > { %5070 = vmatmul.mubr.msk.bf16.gmra.mxu0 %vm8669_vm1, %v8668_v18  ;;  %vm8689_vm1 = vmmov %vm8686_vm0 }
 0x293   : > { %5073 = vmatprep.mubr.msk.bf16.mxu0 %vm8671_vm15, %v8670_v55  ;;  %v4025_v61 = vsel %vm8689_vm1, %v4009_v22, %v8688_v32  ;;  %vm8732_vm15 = vmmov %vm8719_vm2 }
 0x294   : > { %5084 = vmatmul.mubr.msk.bf16.vlgmr.msra.gmra.mxu1 %vm8673_vm13, %v8672_v31  ;;  %v4041_v15 = vsel %vm8652_vm9, %v4025_v61, 0.0  ;;  %vm8728_vm9 = vmmov %vm8719_vm2 }
 0x295   : > { %5087 = vmatprep.mubr.msk.bf16.mxu1 %vm8675_vm6, %v8674_v58  ;;  %v4049_v9 = vpack.c.bf16 %v4041_v15, %v4040_v16  ;;  %vm8736_vm13 = vmmov %vm8719_vm2 }
 0x296   : > { %vm8740_vm6 = vmmov %vm8719_vm2 }
 0x297   : > { %vm8753_vm0 = vmmov %vm8719_vm2 }
 0x298   : > { %vm8755_vm1 = vmmov %vm8753_vm0 }
 0x29a   : > { %5074 = vmatmul.mubr.msk.bf16.gmra.mxu0 %vm8677_vm5, %v8676_v34  ;;  %vm8744_vm5 = vmmov %vm8719_vm2 }
 0x29b   : > { %5077 = vmatprep.mubr.msk.bf16.mxu0 %vm8679_vm12, %v8678_v10  ;;  %vm8747_vm12 = vmmov %vm8719_vm2 }
 0x29c   : > { %5088 = vmatmul.mubr.msk.bf16.gmra.mxu1 %vm8681_vm14, %v8680_v53  ;;  %vm8749_vm14 = vmmov %vm8719_vm2 }
 0x29d   : > { %5091 = vmatprep.mubr.msk.bf16.mxu1 %vm8683_vm8, %v8682_v40  ;;  %vm8750_vm8 = vmmov %vm8719_vm2 }
 0x2a2   : > { %5078 = vmatmul.mubr.msk.bf16.gmra.mxu0 %vm8684_vm7, %v3847_v29  ;;  %vm8751_vm7 = vmmov %vm8719_vm2 }
 0x2a4   : > { %5092 = vmatmul.mubr.msk.bf16.gmra.mxu1 %vm8685_vm4, %v7232_v48  ;;  %vm8752_vm4 = vmmov %vm8719_vm2 }
 0x2a5   : > { %5095 = vmatprep.mubr.msk.bf16.mxu1 %vm8687_vm3, %v4048_v17  ;;  %vm8754_vm3 = vmmov %vm8753_vm0 }
 0x2ac   : > { %5096 = vmatmul.mubr.msk.bf16.gmra.mxu1 %vm8690_vm11, %v4049_v9  ;;  %vm8756_vm11 = vmmov %vm8753_vm0 }
 0x2cd   : > { %v4941_v0 = vpop.f32.mrf.mxu1 }
 0x2cf   : > { %v2656_v48 = vpop.f32.mrf.mxu1 }
 0x2d1   : > { %v4942_v30 = vpop.f32.mrf.mxu1 }
 0x2d3   : > { %v2659_v4 = vpop.f32.mrf.mxu1 }
 0x2d5   : > { %v4945_v62 = vpop.f32.mrf.mxu1 }
 0x2d7   : > { %v2672_v24 = vpop.f32.mrf.mxu1 }
 0x2d9   : > { %v4946_v21 = vpop.f32.mrf.mxu1 }
 0x2db   : > { %v2675_v42 = vpop.f32.mrf.mxu1 }
 0x2dd   : > { %v4949_v23 = vpop.f32.mrf.mxu1 }
 0x2df   : > { %v2688_v43 = vpop.f32.mrf.mxu1 }
 0x2e1   : > { %v4950_v26 = vpop.f32.mrf.mxu1 }
 0x2e3   : > { %v2691_v49 = vpop.f32.mrf.mxu1  ;;  %v4959_v25 = vpop.f32.mrf.mxu0 }
 0x2e4   : > { %v2792_v50 = vadd.f32 %v4959_v25, %v4941_v0 }
 0x2e5   : > { %v4953_v14 = vpop.f32.mrf.mxu1  ;;  %v2783_v54 = vpop.f32.mrf.mxu0 }
 0x2e6   : > { %v2784_v7 = vadd.f32 %v2783_v54, %v2656_v48 }
 0x2e7   : > { %v2704_v8 = vpop.f32.mrf.mxu1  ;;  %v4960_v41 = vpop.f32.mrf.mxu0 }
 0x2e8   : > { %v2795_v36 = vadd.f32 %v4960_v41, %v4942_v30 }
 0x2e9   : > { %v4954_v39 = vpop.f32.mrf.mxu1  ;;  %v2786_v20 = vpop.f32.mrf.mxu0 }
 0x2ea   : > { %v2787_v38 = vadd.f32 %v2786_v20, %v2659_v4 }
 0x2eb   : > { %v2707_v47 = vpop.f32.mrf.mxu1 }
 0x2ec   : > { %v4963_v59 = vpop.f32.mrf.mxu0 }
 0x2ed   : > { %v2808_v35 = vadd.f32 %v4963_v59, %v4945_v62 }
 0x2ee   : > { %v2799_v60 = vpop.f32.mrf.mxu0 }
 0x2ef   : > { %v4977_v44 = vpop.f32.mrf.mxu1  ;;  %v2800_v45 = vadd.f32 %v2799_v60, %v2672_v24 }
 0x2f0   : > { %v7423_v3 = vadd.f32 %v4977_v44, %v2792_v50  ;;  %v4964_v1 = vpop.f32.mrf.mxu0 }
 0x2f1   : > { %v2969_v37 = vpop.f32.mrf.mxu1  ;;  %v2811_v56 = vadd.f32 %v4964_v1, %v4946_v21 }
 0x2f2   : > { %v7425_v2 = vadd.f32 %v2969_v37, %v2784_v7  ;;  %v2802_v13 = vpop.f32.mrf.mxu0 }
 0x2f3   : > { %v4978_v28 = vpop.f32.mrf.mxu1  ;;  %v2803_v11 = vadd.f32 %v2802_v13, %v2675_v42 }
 0x2f4   : > { %v7427_v33 = vadd.f32 %v4978_v28, %v2795_v36 }
 0x2f5   : > { %v2972_v46 = vpop.f32.mrf.mxu1 }
 0x2f6   : > { %v4967_v12 = vpop.f32.mrf.mxu0  ;;  %v7429_v27 = vadd.f32 %v2972_v46, %v2787_v38 }
 0x2f7   : > { %v2824_v51 = vadd.f32 %v4967_v12, %v4949_v23 }
 0x2f8   : > { %v4981_v63 = vpop.f32.mrf.mxu1  ;;  %v2815_v52 = vpop.f32.mrf.mxu0 }
 0x2f9   : > { %v7431_v19 = vadd.f32 %v4981_v63, %v2808_v35  ;;  %v2816_v18 = vadd.f32 %v2815_v52, %v2688_v43 }
 0x2fa   : > { %v2985_v55 = vpop.f32.mrf.mxu1  ;;  %v4968_v31 = vpop.f32.mrf.mxu0 }
 0x2fb   : > { %v7433_v58 = vadd.f32 %v2985_v55, %v2800_v45  ;;  %v2827_v34 = vadd.f32 %v4968_v31, %v4950_v26 }
 0x2fc   : > { %v4982_v10 = vpop.f32.mrf.mxu1  ;;  %v2818_v53 = vpop.f32.mrf.mxu0 }
 0x2fd   : > { %v7435_v40 = vadd.f32 %v4982_v10, %v2811_v56  ;;  %v2819_v29 = vadd.f32 %v2818_v53, %v2691_v49 }
 0x2fe   : > { %v2988_v57 = vpop.f32.mrf.mxu1  ;;  %v4971_v5 = vpop.f32.mrf.mxu0 }
 0x2ff   : > { %v7437_v22 = vadd.f32 %v2988_v57, %v2803_v11  ;;  %v2840_v17 = vadd.f32 %v4971_v5, %v4953_v14 }
 0x300   : > { %v4985_v6 = vpop.f32.mrf.mxu1  ;;  %v2831_v32 = vpop.f32.mrf.mxu0 }
 0x301   : > { %v7439_v61 = vadd.f32 %v4985_v6, %v2824_v51  ;;  %v2832_v16 = vadd.f32 %v2831_v32, %v2704_v8 }
 0x302   : > { %v3001_v15 = vpop.f32.mrf.mxu1  ;;  %v4972_v9 = vpop.f32.mrf.mxu0 }
 0x303   : > { %v7441_v0 = vadd.f32 %v3001_v15, %v2816_v18  ;;  %v2843_v48 = vadd.f32 %v4972_v9, %v4954_v39 }
 0x304   : > { %v4986_v30 = vpop.f32.mrf.mxu1  ;;  %v2834_v4 = vpop.f32.mrf.mxu0 }
 0x305   : > { %v7443_v62 = vadd.f32 %v4986_v30, %v2827_v34  ;;  %v2835_v24 = vadd.f32 %v2834_v4, %v2707_v47 }
 0x306   : > { %v3004_v21 = vpop.f32.mrf.mxu1 }
 0x307   : > { %v7447_v23 = vadd.f32 %v3004_v21, %v2819_v29 }
 0x30a   : > { %v7445_v42 = vpop.f32.mrf.mxu0 }
 0x30c   : > { %v4989_v43 = vpop.f32.mrf.mxu1  ;;  %v7449_v26 = vpop.f32.mrf.mxu0 }
 0x30d   : > { %v7451_v49 = vadd.f32 %v4989_v43, %v2840_v17 }
 0x30e   : > { %v3017_v25 = vpop.f32.mrf.mxu1  ;;  %v7453_v50 = vpop.f32.mrf.mxu0 }
 0x30f   : > { %v7455_v14 = vadd.f32 %v3017_v25, %v2832_v16 }
 0x310   : > { %v4990_v54 = vpop.f32.mrf.mxu1  ;;  %v7457_v7 = vpop.f32.mrf.mxu0 }
 0x311   : > { %v7459_v8 = vadd.f32 %v4990_v54, %v2843_v48 }
 0x312   : > { %v3020_v41 = vpop.f32.mrf.mxu1  ;;  %v7461_v36 = vpop.f32.mrf.mxu0 }
 0x313   : > { %v7463_v39 = vadd.f32 %v3020_v41, %v2835_v24 }
 0x314   : > { %v5013_v20 = vpop.f32.mrf.mxu1  ;;  %v7465_v38 = vpop.f32.mrf.mxu0 }
 0x315   : > { %8691 = vst [vmem:[#allocation15_spill] sm:$0xff] %v7463_v39 }
 0x316   : > { %v3341_v47 = vpop.f32.mrf.mxu1  ;;  %v7467_v59 = vpop.f32.mrf.mxu0 }
 0x318   : > { %v7469_v35 = vpop.f32.mrf.mxu1  ;;  %v7471_v44 = vpop.f32.mrf.mxu0 }
 0x31a   : > { %v7473_v60 = vpop.f32.mrf.mxu1  ;;  %v7475_v45 = vpop.f32.mrf.mxu0 }
 0x31c   : > { %v7477_v37 = vpop.f32.mrf.mxu1  ;;  %v7479_v1 = vpop.f32.mrf.mxu0 }
 0x31e   : > { %v7481_v56 = vpop.f32.mrf.mxu1  ;;  %v7483_v28 = vpop.f32.mrf.mxu0 }
 0x320   : > { %v7485_v13 = vpop.f32.mrf.mxu1  ;;  %v7487_v11 = vpop.f32.mrf.mxu0 }
 0x322   : > { %v7489_v46 = vpop.f32.mrf.mxu1  ;;  %v7491_v12 = vpop.f32.mrf.mxu0 }
 0x324   : > { %v7493_v51 = vpop.f32.mrf.mxu1  ;;  %v7495_v63 = vpop.f32.mrf.mxu0 }
 0x326   : > { %v7497_v52 = vpop.f32.mrf.mxu1  ;;  %v7499_v18 = vpop.f32.mrf.mxu0 }
 0x327   : > { %8692 = vst [vmem:[#allocation13_spill] sm:$0xff] %v7499_v18 }
 0x328   : > { %v7501_v55 = vpop.f32.mrf.mxu1  ;;  %v7503_v31 = vpop.f32.mrf.mxu0 }
 0x329   : > { %8693 = vst [vmem:[#allocation19_spill] sm:$0xff] %v7501_v55  ;;  %8694 = vst [vmem:[#allocation22_spill] sm:$0xff] %v7503_v31 }
 0x32a   : > { %v7505_v34 = vpop.f32.mrf.mxu1  ;;  %v5031_v10 = vpop.f32.mrf.mxu0 }
 0x32b   : > { %8695 = vst [vmem:[#allocation21_spill] sm:$0xff] %v7505_v34 }
 0x32c   : > { %v7507_v53 = vpop.f32.mrf.mxu1  ;;  %v3543_v29 = vpop.f32.mrf.mxu0 }
 0x32d   : > { %8696 = vst [vmem:[#allocation29_spill] sm:$0xff] %v7507_v53 }
 0x32e   : > { %v7509_v57 = vpop.f32.mrf.mxu1  ;;  %v5032_v5 = vpop.f32.mrf.mxu0 }
 0x32f   : > { %8697 = vst [vmem:[#allocation28_spill] sm:$0xff] %v7509_v57 }
 0x330   : > { %v7511_v17 = vpop.f32.mrf.mxu1  ;;  %v3546_v6 = vpop.f32.mrf.mxu0 }
 0x331   : > { %8698 = vst [vmem:[#allocation7_spill] sm:$0xff] %v7511_v17 }
 0x332   : > { %v7513_v32 = vpop.f32.mrf.mxu1  ;;  %v7515_v16 = vpop.f32.mrf.mxu0 }
 0x333   : > { %8699 = vst [vmem:[#allocation23_spill] sm:$0xff] %v7513_v32 }
 0x334   : > { %v5049_v15 = vpop.f32.mrf.mxu1  ;;  %v7517_v9 = vpop.f32.mrf.mxu0 }
 0x336   : > { %v3761_v48 = vpop.f32.mrf.mxu1  ;;  %v7519_v30 = vpop.f32.mrf.mxu0 }
 0x338   : > { %v5050_v4 = vpop.f32.mrf.mxu1  ;;  %v7521_v24 = vpop.f32.mrf.mxu0 }
 0x339   : > { %8700 = vst [vmem:[#allocation24_spill] sm:$0xff] %v7521_v24 }
 0x33a   : > { %v7523_v21 = vpop.f32.mrf.mxu1  ;;  %v7525_v43 = vpop.f32.mrf.mxu0 }
 0x33b   : > { %8701 = vst [vmem:[#allocation40_spill] sm:$0xff] %v7525_v43 }
 0x33c   : > { %v7527_v25 = vpop.f32.mrf.mxu1  ;;  %v7529_v54 = vpop.f32.mrf.mxu0 }
 0x33d   : > { %8702 = vst [vmem:[#allocation26_spill] sm:$0xff] %v7529_v54 }
 0x33e   : > { %v7531_v41 = vpop.f32.mrf.mxu1  ;;  %v7533_v32 = vpop.f32.mrf.mxu0 }
 0x33f   : > { %8703 = vst [vmem:[#allocation44_spill] sm:$0xff] %v7533_v32 }
 0x340   : > { %v7535_v17 = vpop.f32.mrf.mxu1  ;;  %v7537_v57 = vpop.f32.mrf.mxu0 }
 0x341   : > { %8704 = vst [vmem:[#allocation49_spill] sm:$0xff] %v7535_v17  ;;  %8705 = vst [vmem:[#allocation54_spill] sm:$0xff] %v7537_v57  ;;  %v3252_v57 = vadd.f32 %v7445_v42, %v7423_v3  ;;  %v3256_v3 = vadd.f32 %v7461_v36, %v7431_v19  ;;  %v3260_v19 = vadd.f32 %v7475_v45, %v7439_v61 }
 0x342   : > { %v7539_v53 = vpop.f32.mrf.mxu1  ;;  %v7541_v34 = vpop.f32.mrf.mxu0 }
 0x343   : > { %8706 = vst [vmem:[#allocation53_spill] sm:$0xff] %v7539_v53  ;;  %8707 = vst [vmem:[#allocation57_spill] sm:$0xff] %v7541_v34 }
 0x344   : > { %v7543_v31 = vpop.f32.mrf.mxu1  ;;  %v7545_v39 = vpop.f32.mrf.mxu0 }
 0x345   : > { %8708 = vst [vmem:[#allocation61_spill] sm:$0xff] %v7543_v31  ;;  %8709 = vst [vmem:[#allocation63_spill] sm:$0xff] %v7545_v39  ;;  %v3250_v39 = vadd.f32 %v7449_v26, %v7425_v2  ;;  %v3406_v31 = vadd.f32 %v5013_v20, %v3252_v57  ;;  %v3254_v2 = vadd.f32 %v7465_v38, %v7433_v58 }
 0x346   : > { %v7547_v43 = vpop.f32.mrf.mxu1  ;;  %v7549_v55 = vpop.f32.mrf.mxu0  ;;  %v3410_v58 = vadd.f32 %v7477_v37, %v3256_v3 }
 0x347   : > { %8710 = vst [vmem:[#allocation65_spill] sm:$0xff] %v7547_v43  ;;  %8711 = vst [vmem:[#allocation67_spill] sm:$0xff] %v7549_v55  ;;  %v3608_v18 = vadd.f32 %v5031_v10, %v3406_v31 }
 0x348   : > { %v7551_v54 = vpop.f32.mrf.mxu1  ;;  %v7553_v24 = vpop.f32.mrf.mxu0 }
 0x349   : > { %8712 = vst [vmem:[#allocation36_spill] sm:$0xff] %v7551_v54  ;;  %8713 = vst [vmem:[#allocation38_spill] sm:$0xff] %v7553_v24  ;;  %v3253_v54 = vadd.f32 %v7453_v50, %v7427_v33  ;;  %v3404_v24 = vadd.f32 %v3341_v47, %v3250_v39  ;;  %v3826_v57 = vadd.f32 %v5049_v15, %v3608_v18 }
 0x34a   : > { %v7555_v32 = vpop.f32.mrf.mxu1  ;;  %v5067_v17 = vpop.f32.mrf.mxu0  ;;  %v3257_v33 = vadd.f32 %v7467_v59, %v7435_v40  ;;  %v3255_v50 = vadd.f32 %v7471_v44, %v7437_v22  ;;  %v3408_v40 = vadd.f32 %v7481_v56, %v3254_v2  ;;  %v3261_v22 = vadd.f32 %v7483_v28, %v7443_v62  ;;  %v7595_v44 = vld [vmem:[%s7737_s6] ss:$0 sm:$0xff] }
 0x34b   : > { %8714 = vst [vmem:[#allocation34_spill] sm:$0xff] %v7555_v32  ;;  %v3251_v32 = vadd.f32 %v7457_v7, %v7429_v27  ;;  %v3407_v26 = vadd.f32 %v7469_v35, %v3253_v54  ;;  %v3606_v20 = vadd.f32 %v3543_v29, %v3404_v24  ;;  %v3980_v47 = vadd.f32 %v5067_v17, %v3826_v57  ;;  %v7610_v28 = vld [vmem:[%s7738_s7] ss:$0 sm:$0xff]  ;;  %v8716_v54 = vld [vmem:[#allocation13_spill] sm:$0xff] }
 0x34c   : > { %v7559_v53 = vpop.f32.mrf.mxu1  ;;  %v3915_v34 = vpop.f32.mrf.mxu0  ;;  %v3258_v35 = vadd.f32 %v7479_v1, %v7441_v0  ;;  %v3411_v59 = vadd.f32 %v7485_v13, %v3257_v33  ;;  %v7599_v0 = vadd.f32 %v7487_v11, %v7447_v23  ;;  %v3409_v62 = vadd.f32 %v7489_v46, %v3255_v50  ;;  %v8717_v2 = vld [vmem:[#allocation24_spill] sm:$0xff] }
 0x34d   : > { %8715 = vst [vmem:[#allocation41_spill] sm:$0xff] %v7559_v53  ;;  %v3405_v27 = vadd.f32 %v7473_v60, %v3251_v32  ;;  %v3609_v39 = vadd.f32 %v5032_v5, %v3407_v26  ;;  %v3824_v38 = vadd.f32 %v3761_v48, %v3606_v20  ;;  %v7604_v1 = vadd.f32 %v7491_v12, %v7451_v49  ;;  %v8718_v26 = vld [vmem:[#allocation49_spill] sm:$0xff] }
 0x34e   : > { %v7563_v43 = vpop.f32.mrf.mxu1  ;;  %v5068_v55 = vpop.f32.mrf.mxu0  ;;  %v3612_v56 = vadd.f32 %v7515_v16, %v3410_v58  ;;  %v3414_v29 = vadd.f32 %v7493_v51, %v3260_v19  ;;  %v7618_v49 = vadd.f32 %v7495_v63, %v7455_v14  ;;  %v3610_v12 = vadd.f32 %v7517_v9, %v3408_v40 }
 0x34f   : > { %v3607_v45 = vadd.f32 %v3546_v6, %v3405_v27  ;;  %v3827_v37 = vadd.f32 %v5050_v4, %v3609_v39  ;;  %v3978_v18 = vadd.f32 %v3915_v34, %v3824_v38  ;;  %v3412_v14 = vadd.f32 %v7497_v52, %v3258_v35  ;;  %v8722_v38 = vld [vmem:[#allocation53_spill] sm:$0xff] }
 0x350   : > { %v7571_v42 = vpop.f32.mrf.mxu1  ;;  %v3918_v53 = vpop.f32.mrf.mxu0  ;;  %v3830_v5 = vadd.f32 %v7527_v25, %v3612_v56  ;;  %v3613_v51 = vadd.f32 %v7519_v30, %v3411_v59  ;;  %v3828_v63 = vadd.f32 %v7531_v41, %v3610_v12  ;;  %v7636_v3 = vadd.f32 %v8716_v54, %v7459_v8  ;;  %v8721_v8 = vld [vmem:[#allocation40_spill] sm:$0xff] }
 0x351   : > { %v3825_v10 = vadd.f32 %v7523_v21, %v3607_v45  ;;  %v3981_v23 = vadd.f32 %v5068_v55, %v3827_v37  ;;  %v3611_v52 = vadd.f32 %v8717_v2, %v3409_v62  ;;  %v3616_v39 = vadd.f32 %v8721_v8, %v3414_v29  ;;  %v8735_v2 = vld [vmem:[#allocation36_spill] sm:$0xff] }
 0x352   : > { %v7583_v7 = vpop.f32.mrf.mxu1  ;;  %v5071_v36 = vpop.f32.mrf.mxu0  ;;  %v3831_v30 = vadd.f32 %v8718_v26, %v3613_v51 }
 0x353   : > { %v3979_v32 = vadd.f32 %v3918_v53, %v3825_v10  ;;  %v3984_v9 = vadd.f32 %v5071_v36, %v3830_v5  ;;  %v8720_v36 = vld [vmem:[#allocation19_spill] sm:$0xff] }
 0x354   : > { %v5085_v61 = vpop.f32.mrf.mxu1  ;;  %v3931_v60 = vpop.f32.mrf.mxu0  ;;  %v3415_v58 = vadd.f32 %v8720_v36, %v3261_v22  ;;  %v8726_v22 = vld [vmem:[#allocation26_spill] sm:$0xff] }
 0x355   : > { %v4182_v31 = vadd.f32 %v5085_v61, %v3980_v47  ;;  %v3982_v20 = vadd.f32 %v3931_v60, %v3828_v63  ;;  %v3829_v47 = vadd.f32 %v8722_v38, %v3611_v52  ;;  %v3614_v56 = vadd.f32 %v8726_v22, %v3412_v14 }
 0x356   : > { %v4117_v13 = vpop.f32.mrf.mxu1  ;;  %v5072_v34 = vpop.f32.mrf.mxu0 }
 0x357   : > { %v4205_v11 = vmul.f32 %v7595_v44, %v4182_v31  ;;  %v4180_v46 = vadd.f32 %v4117_v13, %v3978_v18  ;;  %v3985_v35 = vadd.f32 %v5072_v34, %v3831_v30  ;;  %v8724_v18 = vld [vmem:[#allocation15_spill] sm:$0xff]  ;;  %v8725_v31 = vld [vmem:[#allocation22_spill] sm:$0xff]  ;;  %v8727_v13 = vld [vmem:[#allocation61_spill] sm:$0xff] }
 0x358   : > { %v5086_v17 = vpop.f32.mrf.mxu1  ;;  %v3934_v6 = vpop.f32.mrf.mxu0  ;;  %v3263_v62 = vadd.f32 %v8725_v31, %v8724_v18  ;;  %v3834_v10 = vadd.f32 %v8727_v13, %v3616_v39 }
 0x359   : > { %v4228_v16 = vadd.f32 %v7610_v28, %v4205_v11  ;;  %v4203_v55 = vmul.f32 %v7595_v44, %v4180_v46  ;;  %v4183_v15 = vadd.f32 %v5086_v17, %v3981_v23  ;;  %v3983_v23 = vadd.f32 %v3934_v6, %v3829_v47  ;;  %v8729_v17 = vld [vmem:[#allocation21_spill] sm:$0xff] }
 0x35a   : > { %v4120_v48 = vpop.f32.mrf.mxu1  ;;  %v5075_v53 = vpop.f32.mrf.mxu0 }
 0x35b   : > { %v4244_v4 = vmax.f32 %v4228_v16, 0.0  ;;  %v4226_v24 = vadd.f32 %v7610_v28, %v4203_v55  ;;  %v4206_v21 = vmul.f32 %v7595_v44, %v4183_v15  ;;  %v4181_v25 = vadd.f32 %v4120_v48, %v3979_v32  ;;  %v8730_v16 = vld [vmem:[#allocation44_spill] sm:$0xff]  ;;  %v8731_v15 = vld [vmem:[#allocation65_spill] sm:$0xff] }
 0x35c   : > { %v5089_v41 = vpop.f32.mrf.mxu1  ;;  %v3947_v57 = vpop.f32.mrf.mxu0  ;;  %v3413_v32 = vadd.f32 %v8729_v17, %v7599_v0  ;;  %v3617_v55 = vadd.f32 %v8730_v16, %v3415_v58  ;;  %v3832_v14 = vadd.f32 %v8731_v15, %v3614_v56  ;;  %v3988_v51 = vadd.f32 %v5075_v53, %v3834_v10  ;;  %v8734_v0 = vld [vmem:[#allocation54_spill] sm:$0xff] }
 0x35d   : > { %4260 = vst.msk [vmem:[%s7627_s22 + $0x10] sm:$0xff] %vm8719_vm2, %v4244_v4  ;;  %v4242_v33 = vmax.f32 %v4226_v24, 0.0  ;;  %v4229_v50 = vadd.f32 %v7610_v28, %v4206_v21  ;;  %v4204_v27 = vmul.f32 %v7595_v44, %v4181_v25  ;;  %v4186_v19 = vadd.f32 %v5089_v41, %v3984_v9  ;;  %v8733_v21 = vld [vmem:[#allocation29_spill] sm:$0xff]  ;;  %v8739_v58 = vld [vmem:[#allocation34_spill] sm:$0xff] }
 0x35e   : > { %v4133_v40 = vpop.f32.mrf.mxu1  ;;  %v5076_v59 = vpop.f32.mrf.mxu0  ;;  %v3418_v25 = vadd.f32 %v8733_v21, %v7604_v1  ;;  %v3615_v54 = vadd.f32 %v8734_v0, %v3413_v32  ;;  %v3835_v52 = vadd.f32 %v8735_v2, %v3617_v55  ;;  %v3986_v26 = vadd.f32 %v3947_v57, %v3832_v14  ;;  %v8748_v15 = vld [vmem:[#allocation38_spill] sm:$0xff] }
 0x35f   : > { %4258 = vst.msk [vmem:[%s7627_s22] sm:$0xff] %vm8723_vm10, %v4242_v33  ;;  %v4245_v61 = vmax.f32 %v4229_v50, 0.0  ;;  %v4227_v60 = vadd.f32 %v7610_v28, %v4204_v27  ;;  %v4209_v45 = vmul.f32 %v7595_v44, %v4186_v19  ;;  %v4184_v37 = vadd.f32 %v4133_v40, %v3982_v20  ;;  %v8737_v27 = vld [vmem:[#allocation28_spill] sm:$0xff]  ;;  %v8738_v19 = vld [vmem:[#allocation57_spill] sm:$0xff] }
 0x360   : > { %v5090_v34 = vpop.f32.mrf.mxu1  ;;  %v3950_v11 = vpop.f32.mrf.mxu0  ;;  %v3416_v1 = vadd.f32 %v8737_v27, %v7618_v49  ;;  %v3620_v36 = vadd.f32 %v8738_v19, %v3418_v25  ;;  %v3833_v8 = vadd.f32 %v8739_v58, %v3615_v54  ;;  %v3989_v39 = vadd.f32 %v5076_v59, %v3835_v52 }
 0x361   : > { %4261 = vst.msk [vmem:[%s7627_s22 + $0x18] sm:$0xff] %vm8728_vm9, %v4245_v61  ;;  %v4243_v46 = vmax.f32 %v4227_v60, 0.0  ;;  %v4232_v29 = vadd.f32 %v7610_v28, %v4209_v45  ;;  %v4207_v12 = vmul.f32 %v7595_v44, %v4184_v37  ;;  %v4187_v5 = vadd.f32 %v5090_v34, %v3985_v35  ;;  %v8741_v61 = vld [vmem:[#allocation7_spill] sm:$0xff]  ;;  %v8743_v37 = vld [vmem:[#allocation41_spill] sm:$0xff] }
 0x362   : > { %v4136_v6 = vpop.f32.mrf.mxu1  ;;  %v5079_v63 = vpop.f32.mrf.mxu0  ;;  %v3419_v60 = vadd.f32 %v8741_v61, %v7636_v3  ;;  %v8742_v45 = vld [vmem:[#allocation63_spill] sm:$0xff]  ;;  %v3838_v18 = vadd.f32 %v8743_v37, %v3620_v36  ;;  %v3987_v31 = vadd.f32 %v3950_v11, %v3833_v8 }
 0x363   : > { %4259 = vst.msk [vmem:[%s7627_s22 + $0x8] sm:$0xff] %vm8732_vm15, %v4243_v46  ;;  %v4248_v9 = vmax.f32 %v4232_v29, 0.0  ;;  %v4230_v48 = vadd.f32 %v7610_v28, %v4207_v12  ;;  %v4210_v4 = vmul.f32 %v7595_v44, %v4187_v5  ;;  %v4185_v24 = vadd.f32 %v4136_v6, %v3983_v23  ;;  %v8745_v34 = vld [vmem:[#allocation23_spill] sm:$0xff] }
 0x364   : > { %v5093_v53 = vpop.f32.mrf.mxu1  ;;  %v3963_v50 = vpop.f32.mrf.mxu0  ;;  %v3618_v49 = vadd.f32 %v8742_v45, %v3416_v1  ;;  %v3417_v46 = vadd.f32 %v8745_v34, %v3263_v62  ;;  %v8746_v3 = vld [vmem:[#allocation67_spill] sm:$0xff]  ;;  %v3992_v5 = vadd.f32 %v5079_v63, %v3838_v18 }
 0x365   : > { %4264 = vst.msk [vmem:[%s7627_s22 + $0x30] sm:$0xff] %vm8736_vm13, %v4248_v9  ;;  %v4246_v30 = vmax.f32 %v4230_v48, 0.0  ;;  %v4233_v20 = vadd.f32 %v7610_v28, %v4210_v4  ;;  %v4208_v41 = vmul.f32 %v7595_v44, %v4185_v24  ;;  %v4190_v33 = vadd.f32 %v5093_v53, %v3988_v51 }
 0x366   : > { %v4149_v57 = vpop.f32.mrf.mxu1  ;;  %v5080_v10 = vpop.f32.mrf.mxu0  ;;  %v3621_v29 = vadd.f32 %v8746_v3, %v3419_v60  ;;  %v3836_v12 = vadd.f32 %v7563_v43, %v3618_v49  ;;  %v3619_v14 = vadd.f32 %v8748_v15, %v3417_v46 }
 0x367   : > { %4262 = vst.msk [vmem:[%s7627_s22 + $0x20] sm:$0xff] %vm8740_vm6, %v4246_v30  ;;  %v4249_v38 = vmax.f32 %v4233_v20, 0.0  ;;  %v4231_v47 = vadd.f32 %v7610_v28, %v4208_v41  ;;  %v4213_v35 = vmul.f32 %v7595_v44, %v4190_v33  ;;  %v4188_v40 = vadd.f32 %v4149_v57, %v3986_v26 }
 0x368   : > { %v5094_v22 = vpop.f32.mrf.mxu1  ;;  %v3839_v51 = vadd.f32 %v7571_v42, %v3621_v29  ;;  %v3990_v62 = vadd.f32 %v3963_v50, %v3836_v12  ;;  %v3966_v9 = vpop.f32.mrf.mxu0  ;;  %v3837_v24 = vadd.f32 %v7583_v7, %v3619_v14 }
 0x369   : > { %4265 = vst.msk [vmem:[%s7627_s22 + $0x38] sm:$0xff] %vm8744_vm5, %v4249_v38  ;;  %v4247_v59 = vmax.f32 %v4231_v47, 0.0  ;;  %v4236_v56 = vadd.f32 %v7610_v28, %v4213_v35  ;;  %v4211_v13 = vmul.f32 %v7595_v44, %v4188_v40  ;;  %v4191_v23 = vadd.f32 %v5094_v22, %v3989_v39 }
 0x36a   : > { %v4152_v17 = vpop.f32.mrf.mxu1  ;;  %v3993_v21 = vadd.f32 %v5080_v10, %v3839_v51  ;;  %v3991_v52 = vadd.f32 %v3966_v9, %v3837_v24 }
 0x36b   : > { %4263 = vst.msk [vmem:[%s7627_s22 + $0x28] sm:$0xff] %vm8747_vm12, %v4247_v59  ;;  %v4252_v11 = vmax.f32 %v4236_v56, 0.0  ;;  %v4234_v32 = vadd.f32 %v7610_v28, %v4211_v13  ;;  %v4214_v16 = vmul.f32 %v7595_v44, %v4191_v23  ;;  %v4189_v55 = vadd.f32 %v4152_v17, %v3987_v31 }
 0x36c   : > { %v5097_v6 = vpop.f32.mrf.mxu1 }
 0x36d   : > { %4268 = vst.msk [vmem:[%s7627_s22 + $0x50] sm:$0xff] %vm8749_vm14, %v4252_v11  ;;  %v4250_v43 = vmax.f32 %v4234_v32, 0.0  ;;  %v4237_v63 = vadd.f32 %v7610_v28, %v4214_v16  ;;  %v4212_v48 = vmul.f32 %v7595_v44, %v4189_v55  ;;  %v4194_v4 = vadd.f32 %v5097_v6, %v3992_v5 }
 0x36e   : > { %v4165_v25 = vpop.f32.mrf.mxu1 }
 0x36f   : > { %4266 = vst.msk [vmem:[%s7627_s22 + $0x40] sm:$0xff] %vm8750_vm8, %v4250_v43  ;;  %v4253_v42 = vmax.f32 %v4237_v63, 0.0  ;;  %v4235_v0 = vadd.f32 %v7610_v28, %v4212_v48  ;;  %v4217_v54 = vmul.f32 %v7595_v44, %v4194_v4  ;;  %v4192_v2 = vadd.f32 %v4165_v25, %v3990_v62 }
 0x370   : > { %v5098_v26 = vpop.f32.mrf.mxu1 }
 0x371   : > { %4269 = vst.msk [vmem:[%s7627_s22 + $0x58] sm:$0xff] %vm8751_vm7, %v4253_v42  ;;  %v4251_v53 = vmax.f32 %v4235_v0, 0.0  ;;  %v4240_v7 = vadd.f32 %v7610_v28, %v4217_v54  ;;  %v4215_v30 = vmul.f32 %v7595_v44, %v4192_v2  ;;  %v4195_v20 = vadd.f32 %v5098_v26, %v3993_v21 }
 0x372   : > { %v4168_v41 = vpop.f32.mrf.mxu1 }
 0x373   : > { %4267 = vst.msk [vmem:[%s7627_s22 + $0x48] sm:$0xff] %vm8752_vm4, %v4251_v53  ;;  %v4256_v33 = vmax.f32 %v4240_v7, 0.0  ;;  %v4238_v50 = vadd.f32 %v7610_v28, %v4215_v30  ;;  %v4218_v27 = vmul.f32 %v7595_v44, %v4195_v20  ;;  %v4193_v1 = vadd.f32 %v4168_v41, %v3991_v52 }
 0x375   : > { %4272 = vst.msk [vmem:[%s7627_s22 + $0x70] sm:$0xff] %vm8753_vm0, %v4256_v33  ;;  %v4254_v19 = vmax.f32 %v4238_v50, 0.0  ;;  %v4241_v36 = vadd.f32 %v7610_v28, %v4218_v27  ;;  %v4216_v58 = vmul.f32 %v7595_v44, %v4193_v1 }
 0x377   : > { %4270 = vst.msk [vmem:[%s7627_s22 + $0x60] sm:$0xff] %vm8754_vm3, %v4254_v19  ;;  %v4257_v8 = vmax.f32 %v4241_v36, 0.0  ;;  %v4239_v39 = vadd.f32 %v7610_v28, %v4216_v58 }
 0x379   : > { %4273 = vst.msk [vmem:[%s7627_s22 + $0x78] sm:$0xff] %vm8755_vm1, %v4257_v8  ;;  %v4255_v57 = vmax.f32 %v4239_v39, 0.0 }
 0x37b   : > { %4271 = vst.msk [vmem:[%s7627_s22 + $0x68] sm:$0xff] %vm8756_vm11, %v4255_v57 }
 0x37c PF: > { %s18_s27 = sadd.s32 1, %s5177_s27  }
 0x37d   : > { %p15_p4 = scmp.ge.s32.totalorder %s18_s27, 4  }
 0x37f   :  { %17 = sbr.rel (!%p15_p4) target bundleno = 1 (0x1), region = 101 }

</bundles_post_ra>
